<compile_context>
chip_gen: v7x
topology: tpu7x:2x2x1
jax: 0.10.0
libtpu: 0.0.40
codegen_flags: <defaults>
</compile_context>

<pallas_src>
import jax
import jax.numpy as jnp
from jax.experimental import pallas as pl
from jax.experimental.pallas import tpu as pltpu  # noqa: F401  (kept for TPU-specific knobs)

# ----------------------------------------------------------------------------
# Synthetic config (mirrors cfg['pointnet']['camera'] structure, small sizes).
# ----------------------------------------------------------------------------
CFG = {
    "sa1": {"npoint": 32, "radius_list": [0.2, 0.4], "nsample_list": [8, 16],
            "mlp_list": [[16, 16, 32], [16, 16, 32]]},
    "sa2": {"npoint": 16, "radius_list": [0.4, 0.8], "nsample_list": [8, 16],
            "mlp_list": [[32, 32, 64], [32, 32, 64]]},
    "sa3": {"mlp": [128, 128, 256]},
}
OUT_DIM = 128
HEAD_HIDDEN = 256
IN_DIM = 0            # use_xyz_feat=False, use_init_label=False, use_one_hot=False
BN_EPS = 1e-5
XYZ_PAD = 8           # xyz (3 ch) lane-padded to 8 inside the fused sa3 input


def _round_up(x, m):
    return ((x + m - 1) // m) * m


# ----------------------------------------------------------------------------
# Static layout helpers (pure Python ints -> usable as constants inside jit).
# ----------------------------------------------------------------------------
def _msg_fused_dims(mlp_list, in_ch):
    """Per-level (cin, cout) of the block-diagonally fused MSG branches."""
    depths = {len(m) for m in mlp_list}
    assert len(depths) == 1, "branch fusion requires equal-depth MLPs"
    cs = [in_ch] * len(mlp_list)
    cins, couts = [], []
    for level in zip(*mlp_list):
        cins.append(sum(cs))
        couts.append(sum(level))
        cs = list(level)
    return cins, couts


def _sa1_dims():
    return _msg_fused_dims(CFG["sa1"]["mlp_list"], IN_DIM + 3)


def _tail_dims():
    """Fused sa2 (block-diag MSG) + sa3 (xyz lane-padded to XYZ_PAD) + head layers."""
    sa1_out = sum(m[-1] for m in CFG["sa1"]["mlp_list"])
    cins, couts = _msg_fused_dims(CFG["sa2"]["mlp_list"], sa1_out + 3)
    sa2_n = len(cins)
    cin = XYZ_PAD + couts[-1]
    for c in CFG["sa3"]["mlp"]:
        cins.append(cin)
        couts.append(c)
        cin = c
    sa3_n = len(CFG["sa3"]["mlp"])
    cins.append(cin)
    couts.append(HEAD_HIDDEN)        # conv1 + bn1
    cins.append(HEAD_HIDDEN)
    couts.append(OUT_DIM)            # conv2 + bn2
    return cins, couts, sa2_n, sa3_n


def _slab_layout(cins):
    """8-row-aligned offsets of each layer's weight block inside the slab."""
    offsets, rows = [], []
    off = 0
    for cin in cins:
        r = _round_up(cin, 8)
        offsets.append(off)
        rows.append(r)
        off += r
    return tuple(offsets), tuple(rows), off


# ----------------------------------------------------------------------------
# Pallas kernel 1: sa1 fused-branch shared MLP + max over nsample.
# ----------------------------------------------------------------------------
def _sa1_kernel_factory(M, K):
    cins, couts = _sa1_dims()
    offsets, rows, _ = _slab_layout(cins)
    n = len(cins)
    out_c = couts[-1]

    def kernel(x_ref, w_ref, b_ref, o_ref):
        b_all = b_ref[...]                              # (8, width) f32, one load

        def layer(h, i):
            w = w_ref[offsets[i]:offsets[i] + rows[i], :couts[i]]   # bf16, static slice
            acc = jnp.dot(h, w, preferred_element_type=jnp.float32)
            return jnp.maximum(acc + b_all[i:i + 1, :couts[i]], 0.0)

        h = x_ref[...]                                  # (M*K, rows[0]) bf16
        for i in range(n - 1):
            h = layer(h, i).astype(jnp.bfloat16)
        h = layer(h, n - 1)                             # f32 (M*K, out_c)
        # Split sublane axis (K multiple of 8 -> free) and max over the K samples.
        o_ref[...] = jnp.max(h.reshape(M, K, out_c), axis=1)
    return kernel


def sa1_forward(params, grouped_flat, M, K):
    _, couts = _sa1_dims()
    return pl.pallas_call(
        _sa1_kernel_factory(M, K),
        out_shape=jax.ShapeDtypeStruct((M, couts[-1]), jnp.float32),
    )(grouped_flat, params["sa1_w"], params["sa1_b"])


# ----------------------------------------------------------------------------
# Pallas kernel 2: sa2 fused-branch MLP + max  ->  sa3 group_all MLP + max  ->  head.
# ----------------------------------------------------------------------------
def _tail_kernel_factory(B, S2, K):
    cins, couts, sa2_n, sa3_n = _tail_dims()
    offsets, rows, _ = _slab_layout(cins)
    M2 = B * S2
    sa2_out = couts[sa2_n - 1]
    sa3_out = couts[sa2_n + sa3_n - 1]

    def kernel(x_ref, xyz_ref, w_ref, b_ref, o_ref):
        b_all = b_ref[...]                              # (8, width) f32

        def layer(h, i):
            w = w_ref[offsets[i]:offsets[i] + rows[i], :couts[i]]   # bf16, static slice
            acc = jnp.dot(h, w, preferred_element_type=jnp.float32)
            return jnp.maximum(acc + b_all[i:i + 1, :couts[i]], 0.0)

        # ---- sa2: fused-branch shared MLP + max over nsample ----
        h = x_ref[...]                                  # (M2*K, rows[0]) bf16
        for i in range(sa2_n - 1):
            h = layer(h, i).astype(jnp.bfloat16)
        h = layer(h, sa2_n - 1)                         # f32 (M2*K, 128)
        l2_points = jnp.max(h.reshape(M2, K, sa2_out), axis=1)      # f32 (M2, 128)

        # ---- sa3 (group_all): concat [xyz(3)+pad(5) | points(128)] -> MLP -> max ----
        h = jnp.concatenate([xyz_ref[...], l2_points], axis=-1).astype(jnp.bfloat16)
        for i in range(sa2_n, sa2_n + sa3_n - 1):
            h = layer(h, i).astype(jnp.bfloat16)
        h = layer(h, sa2_n + sa3_n - 1)                 # f32 (M2, 256)
        pooled = jnp.max(h.reshape(B, S2, sa3_out), axis=1).astype(jnp.bfloat16)

        # ---- head: conv1/bn1/relu, Dropout(0.5)=identity (eval), conv2/bn2/relu ----
        h2 = layer(pooled, sa2_n + sa3_n).astype(jnp.bfloat16)
        o_ref[...] = layer(h2, sa2_n + sa3_n + 1)       # (B, OUT_DIM) f32, lane-dense
    return kernel


def tail_forward(params, grouped_flat, xyz_pad, B, S2, K):
    return pl.pallas_call(
        _tail_kernel_factory(B, S2, K),
        out_shape=jax.ShapeDtypeStruct((B, OUT_DIM), jnp.float32),
    )(grouped_flat, xyz_pad, params["tail_w"], params["tail_b"])


# ----------------------------------------------------------------------------
# PointNet++ glue (sampling / grouping) -- index math, kept in plain JAX.
# TODO(synk): move the gather into the kernels via PrefetchScalarGridSpec (gidx in
#             SMEM + per-row DMA) and replace jnp.sort with a masked selection for
#             realistic N; at these sizes the XLA glue is the wall-clock item.
# ----------------------------------------------------------------------------
def index_points(points, idx):
    # points: (B, N, C); idx: (B, ...) int32 -> (B, ..., C)
    return jax.vmap(lambda p, i: p[i])(points, idx)


def farthest_point_sample(xyz, npoint):
    # xyz: (B, N, 3) -> (B, npoint) int32
    # TODO(synk): PyTorch FPS seeds with torch.randint; we start deterministically at index 0.
    B, N, _ = xyz.shape

    def body(carry, _):
        distance, farthest = carry
        centroid = index_points(xyz, farthest[:, None])          # (B, 1, 3)
        dist = jnp.sum((xyz - centroid) ** 2, axis=-1)            # (B, N)
        distance = jnp.minimum(distance, dist)
        next_far = jnp.argmax(distance, axis=-1).astype(jnp.int32)
        return (distance, next_far), farthest

    init = (jnp.full((B, N), 1e10, jnp.float32), jnp.zeros((B,), jnp.int32))
    _, idx = jax.lax.scan(body, init, None, length=npoint)
    return jnp.transpose(idx)                                     # (B, npoint)


def query_ball_point(radius, nsample, xyz, new_xyz):
    # xyz: (B, N, 3), new_xyz: (B, S, 3) -> (B, S, nsample) int32
    # The ball always contains its own center, so the group_first fallback is valid.
    B, N, _ = xyz.shape
    S = new_xyz.shape[1]
    sqrdists = jnp.sum((new_xyz[:, :, None, :] - xyz[:, None, :, :]) ** 2, axis=-1)
    group_idx = jnp.broadcast_to(jnp.arange(N, dtype=jnp.int32), (B, S, N))
    group_idx = jnp.where(sqrdists > radius ** 2, jnp.int32(N), group_idx)
    group_idx = jnp.sort(group_idx, axis=-1)[:, :, :nsample]
    group_first = jnp.broadcast_to(group_idx[:, :, :1], group_idx.shape)
    group_idx = jnp.where(group_idx == N, group_first, group_idx)
    return group_idx


def group_msg_fused(xyz, points, npoint, radius_list, nsample_list, cin_pad):
    """FPS + per-branch ball-query/group, branches lane-concatenated and K-padded.

    Returns new_xyz (B, npoint, 3) f32 and the fused grouped neighborhoods flattened
    to (B*npoint*Kmax, cin_pad) bf16 (trailing zero lanes up to cin_pad).
    Duplicate-padding the small-K branch is max-invariant (max over samples).
    """
    B, _, _ = xyz.shape
    fps_idx = farthest_point_sample(xyz, npoint)
    new_xyz = index_points(xyz, fps_idx)                          # (B, S, 3)
    Kmax = max(nsample_list)
    branches = []
    for radius, K in zip(radius_list, nsample_list):
        gidx = query_ball_point(radius, K, xyz, new_xyz)          # (B, S, K)
        grouped_xyz = index_points(xyz, gidx) - new_xyz[:, :, None, :]
        if points.shape[-1] > 0:
            grouped = jnp.concatenate([index_points(points, gidx), grouped_xyz], axis=-1)
        else:
            grouped = grouped_xyz
        if K < Kmax:
            pad = jnp.broadcast_to(grouped[:, :, :1, :],
                                   (B, npoint, Kmax - K, grouped.shape[-1]))
            grouped = jnp.concatenate([grouped, pad], axis=2)
        branches.append(grouped)
    fused = jnp.concatenate(branches, axis=-1)                    # (B, S, Kmax, sum cin)
    fused = fused.reshape(B * npoint * Kmax, fused.shape[-1])
    lane_pad = cin_pad - fused.shape[-1]
    if lane_pad > 0:
        fused = jnp.concatenate(
            [fused, jnp.zeros((fused.shape[0], lane_pad), fused.dtype)], axis=-1)
    return new_xyz, fused.astype(jnp.bfloat16)


# ----------------------------------------------------------------------------
# Parameter construction: conv + folded eval-mode BN, block-diag branch fusion,
# and slab packing (weights bf16, biases f32).
# TODO(synk): fold a real checkpoint's BN running_mean/var here instead of (0, 1).
# ----------------------------------------------------------------------------
def init_conv_bn(key, cin, cout):
    kw, kb = jax.random.split(key)
    w = jax.random.normal(kw, (cin, cout), jnp.float32) * (1.0 / jnp.sqrt(jnp.float32(cin)))
    b = jax.random.normal(kb, (cout,), jnp.float32) * 0.01
    scale = 1.0 / jnp.sqrt(1.0 + BN_EPS)      # gamma=1, beta=0, mean=0, var=1 (eval init)
    return w * scale, (b * scale).reshape(1, cout)


def make_branch(key, cin, channels):
    layers = []
    for cout in channels:
        key, sub = jax.random.split(key)
        layers.append(init_conv_bn(sub, cin, cout))
        cin = cout
    return layers, key


def block_diag_fuse(branches):
    depth = len(branches[0])
    fused = []
    for li in range(depth):
        ws = [br[li][0] for br in branches]
        bs = [br[li][1] for br in branches]
        cin = sum(w.shape[0] for w in ws)
        cout = sum(w.shape[1] for w in ws)
        w = jnp.zeros((cin, cout), jnp.float32)
        ro = co = 0
        for wi in ws:
            w = w.at[ro:ro + wi.shape[0], co:co + wi.shape[1]].set(wi)
            ro += wi.shape[0]
            co += wi.shape[1]
        fused.append((w, jnp.concatenate(bs, axis=-1)))
    return fused


def pack_slab(layers, cins, width):
    """layers: list of (w (cin_i, cout_i) f32, b (1, cout_i) f32) with cin_i == cins[i]."""
    offsets, _, total = _slab_layout(cins)
    w_slab = jnp.zeros((total, width), jnp.float32)
    b_slab = jnp.zeros((_round_up(len(layers), 8), width), jnp.float32)
    for i, ((w, b), off) in enumerate(zip(layers, offsets)):
        cin, cout = w.shape
        assert cin == cins[i] and cout <= width
        w_slab = w_slab.at[off:off + cin, :cout].set(w)
        b_slab = b_slab.at[i, :cout].set(b.reshape(-1))
    return w_slab.astype(jnp.bfloat16), b_slab


def build_params(key):
    # sa1 MSG branches -> block-diagonal fusion
    sa1_branches = []
    for mlp in CFG["sa1"]["mlp_list"]:
        layers, key = make_branch(key, IN_DIM + 3, mlp)
        sa1_branches.append(layers)
    sa1_fused = block_diag_fuse(sa1_branches)
    sa1_out = sum(m[-1] for m in CFG["sa1"]["mlp_list"])

    # sa2 MSG branches -> block-diagonal fusion
    sa2_branches = []
    for mlp in CFG["sa2"]["mlp_list"]:
        layers, key = make_branch(key, sa1_out + 3, mlp)
        sa2_branches.append(layers)
    sa2_fused = block_diag_fuse(sa2_branches)
    sa2_out = sum(m[-1] for m in CFG["sa2"]["mlp_list"])

    # sa3 (group_all): natural in_channel = 3 + sa2_out; pad the first layer so the
    # 3 xyz rows occupy slots 0..2 of an XYZ_PAD-lane group (slots 3..7 zero rows),
    # matching the lane-padded [xyz | points] concat built inside the kernel.
    sa3_layers, key = make_branch(key, 3 + sa2_out, CFG["sa3"]["mlp"])
    w0, b0 = sa3_layers[0]
    w0p = jnp.concatenate(
        [w0[:3], jnp.zeros((XYZ_PAD - 3, w0.shape[1]), jnp.float32), w0[3:]], axis=0)
    sa3_layers = [(w0p, b0)] + sa3_layers[1:]

    key, k1 = jax.random.split(key)
    key, k2 = jax.random.split(key)
    head = [init_conv_bn(k1, CFG["sa3"]["mlp"][-1], HEAD_HIDDEN),
            init_conv_bn(k2, HEAD_HIDDEN, OUT_DIM)]

    sa1_cins, sa1_couts = _sa1_dims()
    tail_cins, tail_couts, _, _ = _tail_dims()
    sa1_w, sa1_b = pack_slab(sa1_fused, sa1_cins, width=_round_up(max(sa1_couts), 128))
    tail_w, tail_b = pack_slab(sa2_fused + sa3_layers + head, tail_cins,
                               width=_round_up(max(tail_couts), 128))
    return {"sa1_w": sa1_w, "sa1_b": sa1_b, "tail_w": tail_w, "tail_b": tail_b}


# ----------------------------------------------------------------------------
# Full encoder forward (matches PointNet2Encoder.forward, eval mode).
# ----------------------------------------------------------------------------
@jax.jit
def pointnet2_encoder_forward(params, inp):
    # inp: (B, 3 + in_dim, N)  -- PyTorch channel-first point cloud.
    B = inp.shape[0]
    l0_xyz = jnp.transpose(inp[:, :3, :], (0, 2, 1))        # (B, N, 3)
    l0_points = jnp.transpose(inp[:, 3:, :], (0, 2, 1))     # (B, N, in_dim) (0 channels)

    # ---- sa1 (MSG, branches fused block-diagonally in one kernel) ----
    sa1_cins, sa1_couts = _sa1_dims()
    _, sa1_rows, _ = _slab_layout(sa1_cins)
    S1 = CFG["sa1"]["npoint"]
    K1 = max(CFG["sa1"]["nsample_list"])
    l1_xyz, g1 = group_msg_fused(l0_xyz, l0_points, S1,
                                 CFG["sa1"]["radius_list"], CFG["sa1"]["nsample_list"],
                                 cin_pad=sa1_rows[0])
    l1_points = sa1_forward(params, g1, B * S1, K1).reshape(B, S1, sa1_couts[-1])

    # ---- sa2 + sa3 + head fused into one kernel ----
    tail_cins, _, _, _ = _tail_dims()
    _, tail_rows, _ = _slab_layout(tail_cins)
    S2 = CFG["sa2"]["npoint"]
    K2 = max(CFG["sa2"]["nsample_list"])
    l2_xyz, g2 = group_msg_fused(l1_xyz, l1_points, S2,
                                 CFG["sa2"]["radius_list"], CFG["sa2"]["nsample_list"],
                                 cin_pad=tail_rows[0])
    xyz_pad = jnp.concatenate(
        [l2_xyz.reshape(B * S2, 3), jnp.zeros((B * S2, XYZ_PAD - 3), jnp.float32)], axis=-1)
    feat = tail_forward(params, g2, xyz_pad, B, S2, K2)      # (B, OUT_DIM)
    return feat[:, :, None]                                  # (B, OUT_DIM, 1) like PyTorch


if __name__ == "__main__":
    key = jax.random.PRNGKey(0)
    key, kp, kx = jax.random.split(key, 3)
    params = build_params(kp)

    B, N = 2, 128
    x = jax.random.normal(kx, (B, 3 + IN_DIM, N), jnp.float32)   # point cloud (B, C, N)

    out = pointnet2_encoder_forward(params, x)
    out = jax.block_until_ready(out)
    assert out.shape == (B, OUT_DIM, 1), out.shape
    assert bool(jnp.all(jnp.isfinite(out)))
    print("KERNEL_OK")
</pallas_src>

<mosaic_0001>
module attributes {stable_mosaic.version = 11 : i64} {
  func.func @kernel(%arg0: memref<1024x8xbf16, #tpu.memory_space<vmem>>, %arg1: memref<72x128xbf16, #tpu.memory_space<vmem>>, %arg2: memref<8x128xf32, #tpu.memory_space<vmem>>, %arg3: memref<64x64xf32, #tpu.memory_space<vmem>>) attributes {dimension_semantics = [], scalar_prefetch = 0 : i64, scratch_operands = 0 : i64, tpu.core_type = #tpu.core_type<tc>} {
    %c0 = arith.constant 0 : index
    %c0_0 = arith.constant 0 : index
    %0 = vector.load %arg2[%c0, %c0_0] : memref<8x128xf32, #tpu.memory_space<vmem>>, vector<8x128xf32>
    %c0_1 = arith.constant 0 : index
    %c0_2 = arith.constant 0 : index
    %1 = vector.load %arg0[%c0_1, %c0_2] : memref<1024x8xbf16, #tpu.memory_space<vmem>>, vector<1024x8xbf16>
    %c0_3 = arith.constant 0 : index
    %c0_4 = arith.constant 0 : index
    %2 = vector.load %arg1[%c0_3, %c0_4] : memref<72x128xbf16, #tpu.memory_space<vmem>>, vector<8x32xbf16>
    %cst = arith.constant dense<0.000000e+00> : vector<1024x32xf32>
    %3 = tpu.matmul %1, %2, %cst {dimension_numbers = #tpu.dot_dimension_numbers<[1], [0], [0], [1], [0, 0, 1, 1], [], []>} : vector<1024x8xbf16>, vector<8x32xbf16>, vector<1024x32xf32> -> vector<1024x32xf32>
    %4 = vector.extract_strided_slice %0 {offsets = [0, 0], sizes = [1, 32], strides = [1, 1]} : vector<8x128xf32> to vector<1x32xf32>
    %5 = vector.broadcast %4 : vector<1x32xf32> to vector<1024x32xf32>
    %6 = arith.addf %3, %5 : vector<1024x32xf32>
    %cst_5 = arith.constant 0.000000e+00 : f32
    %7 = vector.broadcast %cst_5 : f32 to vector<1024x32xf32>
    %8 = arith.maximumf %6, %7 : vector<1024x32xf32>
    %9 = arith.truncf %8 : vector<1024x32xf32> to vector<1024x32xbf16>
    %c8 = arith.constant 8 : index
    %c0_6 = arith.constant 0 : index
    %10 = vector.load %arg1[%c8, %c0_6] : memref<72x128xbf16, #tpu.memory_space<vmem>>, vector<32x32xbf16>
    %cst_7 = arith.constant dense<0.000000e+00> : vector<1024x32xf32>
    %11 = tpu.matmul %9, %10, %cst_7 {dimension_numbers = #tpu.dot_dimension_numbers<[1], [0], [0], [1], [0, 0, 1, 1], [], []>} : vector<1024x32xbf16>, vector<32x32xbf16>, vector<1024x32xf32> -> vector<1024x32xf32>
    %12 = vector.extract_strided_slice %0 {offsets = [1, 0], sizes = [1, 32], strides = [1, 1]} : vector<8x128xf32> to vector<1x32xf32>
    %13 = vector.broadcast %12 : vector<1x32xf32> to vector<1024x32xf32>
    %14 = arith.addf %11, %13 : vector<1024x32xf32>
    %cst_8 = arith.constant 0.000000e+00 : f32
    %15 = vector.broadcast %cst_8 : f32 to vector<1024x32xf32>
    %16 = arith.maximumf %14, %15 : vector<1024x32xf32>
    %17 = arith.truncf %16 : vector<1024x32xf32> to vector<1024x32xbf16>
    %c40 = arith.constant 40 : index
    %c0_9 = arith.constant 0 : index
    %18 = vector.load %arg1[%c40, %c0_9] : memref<72x128xbf16, #tpu.memory_space<vmem>>, vector<32x64xbf16>
    %cst_10 = arith.constant dense<0.000000e+00> : vector<1024x64xf32>
    %19 = tpu.matmul %17, %18, %cst_10 {dimension_numbers = #tpu.dot_dimension_numbers<[1], [0], [0], [1], [0, 0, 1, 1], [], []>} : vector<1024x32xbf16>, vector<32x64xbf16>, vector<1024x64xf32> -> vector<1024x64xf32>
    %20 = vector.extract_strided_slice %0 {offsets = [2, 0], sizes = [1, 64], strides = [1, 1]} : vector<8x128xf32> to vector<1x64xf32>
    %21 = vector.broadcast %20 : vector<1x64xf32> to vector<1024x64xf32>
    %22 = arith.addf %19, %21 : vector<1024x64xf32>
    %cst_11 = arith.constant 0.000000e+00 : f32
    %23 = vector.broadcast %cst_11 : f32 to vector<1024x64xf32>
    %24 = arith.maximumf %22, %23 : vector<1024x64xf32>
    %25 = vector.shape_cast %24 : vector<1024x64xf32> to vector<64x16x64xf32>
    %cst_12 = arith.constant dense<0xFF800000> : vector<64x64xf32>
    %26 = vector.multi_reduction <maximumf>, %25, %cst_12 [1] : vector<64x16x64xf32> to vector<64x64xf32>
    %c0_13 = arith.constant 0 : index
    %c0_14 = arith.constant 0 : index
    %27 = vector.load %arg3[%c0_13, %c0_14] : memref<64x64xf32, #tpu.memory_space<vmem>>, vector<64x64xf32>
    tpu.vector_store %arg3[%c0_13, %c0_14], %26 {strides = array<i32>} : memref<64x64xf32, #tpu.memory_space<vmem>>, vector<64x64xf32>,
    return
  }
}

module attributes {stable_mosaic.version = 11 : i64} {
  func.func @kernel(%arg0: memref<512x136xbf16, #tpu.memory_space<vmem>>, %arg1: memref<32x8xf32, #tpu.memory_space<vmem>>, %arg2: memref<1168x256xbf16, #tpu.memory_space<vmem>>, %arg3: memref<8x256xf32, #tpu.memory_space<vmem>>, %arg4: memref<2x128xf32, #tpu.memory_space<vmem>>) attributes {dimension_semantics = [], scalar_prefetch = 0 : i64, scratch_operands = 0 : i64, tpu.core_type = #tpu.core_type<tc>} {
    %c0 = arith.constant 0 : index
    %c0_0 = arith.constant 0 : index
    %0 = vector.load %arg3[%c0, %c0_0] : memref<8x256xf32, #tpu.memory_space<vmem>>, vector<8x256xf32>
    %c0_1 = arith.constant 0 : index
    %c0_2 = arith.constant 0 : index
    %1 = vector.load %arg0[%c0_1, %c0_2] : memref<512x136xbf16, #tpu.memory_space<vmem>>, vector<512x136xbf16>
    %c0_3 = arith.constant 0 : index
    %c0_4 = arith.constant 0 : index
    %2 = vector.load %arg2[%c0_3, %c0_4] : memref<1168x256xbf16, #tpu.memory_space<vmem>>, vector<136x64xbf16>
    %cst = arith.constant dense<0.000000e+00> : vector<512x64xf32>
    %3 = tpu.matmul %1, %2, %cst {dimension_numbers = #tpu.dot_dimension_numbers<[1], [0], [0], [1], [0, 0, 1, 1], [], []>} : vector<512x136xbf16>, vector<136x64xbf16>, vector<512x64xf32> -> vector<512x64xf32>
    %4 = vector.extract_strided_slice %0 {offsets = [0, 0], sizes = [1, 64], strides = [1, 1]} : vector<8x256xf32> to vector<1x64xf32>
    %5 = vector.broadcast %4 : vector<1x64xf32> to vector<512x64xf32>
    %6 = arith.addf %3, %5 : vector<512x64xf32>
    %cst_5 = arith.constant 0.000000e+00 : f32
    %7 = vector.broadcast %cst_5 : f32 to vector<512x64xf32>
    %8 = arith.maximumf %6, %7 : vector<512x64xf32>
    %9 = arith.truncf %8 : vector<512x64xf32> to vector<512x64xbf16>
    %c136 = arith.constant 136 : index
    %c0_6 = arith.constant 0 : index
    %10 = vector.load %arg2[%c136, %c0_6] : memref<1168x256xbf16, #tpu.memory_space<vmem>>, vector<64x64xbf16>
    %cst_7 = arith.constant dense<0.000000e+00> : vector<512x64xf32>
    %11 = tpu.matmul %9, %10, %cst_7 {dimension_numbers = #tpu.dot_dimension_numbers<[1], [0], [0], [1], [0, 0, 1, 1], [], []>} : vector<512x64xbf16>, vector<64x64xbf16>, vector<512x64xf32> -> vector<512x64xf32>
    %12 = vector.extract_strided_slice %0 {offsets = [1, 0], sizes = [1, 64], strides = [1, 1]} : vector<8x256xf32> to vector<1x64xf32>
    %13 = vector.broadcast %12 : vector<1x64xf32> to vector<512x64xf32>
    %14 = arith.addf %11, %13 : vector<512x64xf32>
    %cst_8 = arith.constant 0.000000e+00 : f32
    %15 = vector.broadcast %cst_8 : f32 to vector<512x64xf32>
    %16 = arith.maximumf %14, %15 : vector<512x64xf32>
    %17 = arith.truncf %16 : vector<512x64xf32> to vector<512x64xbf16>
    %c200 = arith.constant 200 : index
    %c0_9 = arith.constant 0 : index
    %18 = vector.load %arg2[%c200, %c0_9] : memref<1168x256xbf16, #tpu.memory_space<vmem>>, vector<64x128xbf16>
    %cst_10 = arith.constant dense<0.000000e+00> : vector<512x128xf32>
    %19 = tpu.matmul %17, %18, %cst_10 {dimension_numbers = #tpu.dot_dimension_numbers<[1], [0], [0], [1], [0, 0, 1, 1], [], []>} : vector<512x64xbf16>, vector<64x128xbf16>, vector<512x128xf32> -> vector<512x128xf32>
    %20 = vector.extract_strided_slice %0 {offsets = [2, 0], sizes = [1, 128], strides = [1, 1]} : vector<8x256xf32> to vector<1x128xf32>
    %21 = vector.broadcast %20 : vector<1x128xf32> to vector<512x128xf32>
    %22 = arith.addf %19, %21 : vector<512x128xf32>
    %cst_11 = arith.constant 0.000000e+00 : f32
    %23 = vector.broadcast %cst_11 : f32 to vector<512x128xf32>
    %24 = arith.maximumf %22, %23 : vector<512x128xf32>
    %25 = vector.shape_cast %24 : vector<512x128xf32> to vector<32x16x128xf32>
    %cst_12 = arith.constant dense<0xFF800000> : vector<32x128xf32>
    %26 = vector.multi_reduction <maximumf>, %25, %cst_12 [1] : vector<32x16x128xf32> to vector<32x128xf32>
    %c0_13 = arith.constant 0 : index
    %c0_14 = arith.constant 0 : index
    %27 = vector.load %arg1[%c0_13, %c0_14] : memref<32x8xf32, #tpu.memory_space<vmem>>, vector<32x8xf32>
    %28 = tpu.concatenate %27, %26 in 1 : vector<32x8xf32>, vector<32x128xf32> -> vector<32x136xf32>
    %29 = arith.truncf %28 : vector<32x136xf32> to vector<32x136xbf16>
    %c264 = arith.constant 264 : index
    %c0_15 = arith.constant 0 : index
    %30 = vector.load %arg2[%c264, %c0_15] : memref<1168x256xbf16, #tpu.memory_space<vmem>>, vector<136x128xbf16>
    %cst_16 = arith.constant dense<0.000000e+00> : vector<32x128xf32>
    %31 = tpu.matmul %29, %30, %cst_16 {dimension_numbers = #tpu.dot_dimension_numbers<[1], [0], [0], [1], [0, 0, 1, 1], [], []>} : vector<32x136xbf16>, vector<136x128xbf16>, vector<32x128xf32> -> vector<32x128xf32>
    %32 = vector.extract_strided_slice %0 {offsets = [3, 0], sizes = [1, 128], strides = [1, 1]} : vector<8x256xf32> to vector<1x128xf32>
    %33 = vector.broadcast %32 : vector<1x128xf32> to vector<32x128xf32>
    %34 = arith.addf %31, %33 : vector<32x128xf32>
    %cst_17 = arith.constant 0.000000e+00 : f32
    %35 = vector.broadcast %cst_17 : f32 to vector<32x128xf32>
    %36 = arith.maximumf %34, %35 : vector<32x128xf32>
    %37 = arith.truncf %36 : vector<32x128xf32> to vector<32x128xbf16>
    %c400 = arith.constant 400 : index
    %c0_18 = arith.constant 0 : index
    %38 = vector.load %arg2[%c400, %c0_18] : memref<1168x256xbf16, #tpu.memory_space<vmem>>, vector<128x128xbf16>
    %cst_19 = arith.constant dense<0.000000e+00> : vector<32x128xf32>
    %39 = tpu.matmul %37, %38, %cst_19 {dimension_numbers = #tpu.dot_dimension_numbers<[1], [0], [0], [1], [0, 0, 1, 1], [], []>} : vector<32x128xbf16>, vector<128x128xbf16>, vector<32x128xf32> -> vector<32x128xf32>
    %40 = vector.extract_strided_slice %0 {offsets = [4, 0], sizes = [1, 128], strides = [1, 1]} : vector<8x256xf32> to vector<1x128xf32>
    %41 = vector.broadcast %40 : vector<1x128xf32> to vector<32x128xf32>
    %42 = arith.addf %39, %41 : vector<32x128xf32>
    %cst_20 = arith.constant 0.000000e+00 : f32
    %43 = vector.broadcast %cst_20 : f32 to vector<32x128xf32>
    %44 = arith.maximumf %42, %43 : vector<32x128xf32>
    %45 = arith.truncf %44 : vector<32x128xf32> to vector<32x128xbf16>
    %c528 = arith.constant 528 : index
    %c0_21 = arith.constant 0 : index
    %46 = vector.load %arg2[%c528, %c0_21] : memref<1168x256xbf16, #tpu.memory_space<vmem>>, vector<128x256xbf16>
    %cst_22 = arith.constant dense<0.000000e+00> : vector<32x256xf32>
    %47 = tpu.matmul %45, %46, %cst_22 {dimension_numbers = #tpu.dot_dimension_numbers<[1], [0], [0], [1], [0, 0, 1, 1], [], []>} : vector<32x128xbf16>, vector<128x256xbf16>, vector<32x256xf32> -> vector<32x256xf32>
    %48 = vector.extract_strided_slice %0 {offsets = [5, 0], sizes = [1, 256], strides = [1, 1]} : vector<8x256xf32> to vector<1x256xf32>
    %49 = vector.broadcast %48 : vector<1x256xf32> to vector<32x256xf32>
    %50 = arith.addf %47, %49 : vector<32x256xf32>
    %cst_23 = arith.constant 0.000000e+00 : f32
    %51 = vector.broadcast %cst_23 : f32 to vector<32x256xf32>
    %52 = arith.maximumf %50, %51 : vector<32x256xf32>
    %53 = vector.shape_cast %52 : vector<32x256xf32> to vector<2x16x256xf32>
    %cst_24 = arith.constant dense<0xFF800000> : vector<2x256xf32>
    %54 = vector.multi_reduction <maximumf>, %53, %cst_24 [1] : vector<2x16x256xf32> to vector<2x256xf32>
    %55 = arith.truncf %54 : vector<2x256xf32> to vector<2x256xbf16>
    %c656 = arith.constant 656 : index
    %c0_25 = arith.constant 0 : index
    %56 = vector.load %arg2[%c656, %c0_25] : memref<1168x256xbf16, #tpu.memory_space<vmem>>, vector<256x256xbf16>
    %cst_26 = arith.constant dense<0.000000e+00> : vector<2x256xf32>
    %57 = tpu.matmul %55, %56, %cst_26 {dimension_numbers = #tpu.dot_dimension_numbers<[1], [0], [0], [1], [0, 0, 1, 1], [], []>} : vector<2x256xbf16>, vector<256x256xbf16>, vector<2x256xf32> -> vector<2x256xf32>
    %58 = vector.extract_strided_slice %0 {offsets = [6, 0], sizes = [1, 256], strides = [1, 1]} : vector<8x256xf32> to vector<1x256xf32>
    %59 = vector.broadcast %58 : vector<1x256xf32> to vector<2x256xf32>
    %60 = arith.addf %57, %59 : vector<2x256xf32>
    %cst_27 = arith.constant 0.000000e+00 : f32
    %61 = vector.broadcast %cst_27 : f32 to vector<2x256xf32>
    %62 = arith.maximumf %60, %61 : vector<2x256xf32>
    %63 = arith.truncf %62 : vector<2x256xf32> to vector<2x256xbf16>
    %c912 = arith.constant 912 : index
    %c0_28 = arith.constant 0 : index
    %64 = vector.load %arg2[%c912, %c0_28] : memref<1168x256xbf16, #tpu.memory_space<vmem>>, vector<256x128xbf16>
    %cst_29 = arith.constant dense<0.000000e+00> : vector<2x128xf32>
    %65 = tpu.matmul %63, %64, %cst_29 {dimension_numbers = #tpu.dot_dimension_numbers<[1], [0], [0], [1], [0, 0, 1, 1], [], []>} : vector<2x256xbf16>, vector<256x128xbf16>, vector<2x128xf32> -> vector<2x128xf32>
    %66 = vector.extract_strided_slice %0 {offsets = [7, 0], sizes = [1, 128], strides = [1, 1]} : vector<8x256xf32> to vector<1x128xf32>
    %67 = vector.broadcast %66 : vector<1x128xf32> to vector<2x128xf32>
    %68 = arith.addf %65, %67 : vector<2x128xf32>
    %cst_30 = arith.constant 0.000000e+00 : f32
    %69 = vector.broadcast %cst_30 : f32 to vector<2x128xf32>
    %70 = arith.maximumf %68, %69 : vector<2x128xf32>
    %c0_31 = arith.constant 0 : index
    %c0_32 = arith.constant 0 : index
    %71 = vector.load %arg4[%c0_31, %c0_32] : memref<2x128xf32, #tpu.memory_space<vmem>>, vector<2x128xf32>
    tpu.vector_store %arg4[%c0_31, %c0_32], %70 {strides = array<i32>} : memref<2x128xf32, #tpu.memory_space<vmem>>, vector<2x128xf32>,
    return
  }
}

</mosaic_0001>

<bundles_post_ra>
// kernel: custom-call.20
= control target key start
LH: loop header
LB: loop body
LE: loop exit
PB: predicated region body
PF: predicated region fallthrough
CT: control target
= control target key end

     0   :  { %s6_s0 = inlined_call_operand.vmem [shape: f32[2,128], index: 0, kind: output, shape index: {}]  }

// kernel: custom-call.24
= control target key start
LH: loop header
LB: loop body
LE: loop exit
PB: predicated region body
PF: predicated region fallthrough
CT: control target
= control target key end

     0   :  { %s6_s0 = inlined_call_operand.vmem [shape: s32[32,2], index: 0, kind: output, shape index: {}]  }

// kernel: custom-call.25
= control target key start
LH: loop header
LB: loop body
LE: loop exit
PB: predicated region body
PF: predicated region fallthrough
CT: control target
= control target key end

     0   :  { %s6_s0 = inlined_call_operand.vmem [shape: s32[16,2], index: 0, kind: output, shape index: {}]  }

// kernel: custom-call.21
= control target key start
LH: loop header
LB: loop body
LE: loop exit
PB: predicated region body
PF: predicated region fallthrough
CT: control target
= control target key end

     0   :  { %s6_s0 = inlined_call_operand.vmem [shape: f32[2,32], index: 0, kind: output, shape index: {}]  }

// kernel: pointnet2_encoder_forward.2
= control target key start
LH: loop header
LB: loop body
LE: loop exit
PB: predicated region body
PF: predicated region fallthrough
CT: control target
= control target key end

     0   :  { %vm662_vm0 = vcmask 1043456   ;;  %vm469_vm1 = vcmask 64512   ;;  %vm1423_vm2 = vcmask 261120   ;;  %vm3238_vm3 = vcmask 523264   ;;  %s6022_s1 = inlined_call_operand.vmem [shape: bf16[72,128], index: 1, kind: input, shape index: {}]   ;;  %s6023_s0 = inlined_call_operand.vmem [shape: bf16[1024,8], index: 0, kind: input, shape index: {}]   ;;  %s6024_s2 = inlined_call_operand.vmem [shape: f32[8,128], index: 2, kind: input, shape index: {}]   ;;  %s6025_s3 = inlined_call_operand.vmem [shape: f32[64,64], index: 3, kind: output, shape index: {}]  }
   0x1   :  { %v144_v0 = vld [vmem:[%s6022_s1] sm:$0xf]  ;;  %v4818_v3 = vld [vmem:[%s6023_s0 + $0x8] sm:$0xff]   ;;  %v4819_v4 = vld [vmem:[%s6023_s0 + $0x10] sm:$0xff]   ;;  %vm3879_vm4 = vcmask 1041409   ;;  %vm3881_vm5 = vcmask 1042434  }
   0x2   :  { %4815 = vmatprep.subr.msk.bf16.mxu0 %vm662_vm0, %v144_v0  ;;  %v664_v1 = vsel %vm662_vm0, %v144_v0, 0  ;;  %v4817_v2 = vld [vmem:[%s6023_s0] sm:$0xff]   ;;  %4816 = vmatprep.subr.msk.bf16.mxu1 %vm662_vm0, %v144_v0  ;;  %v4820_v5 = vld [vmem:[%s6023_s0 + $0x18] sm:$0xff]   ;;  %v4822_v7 = vld [vmem:[%s6023_s0 + $0x28] sm:$0xff]   ;;  %vm3883_vm6 = vcmask 1043459   ;;  %vm3885_vm7 = vcmask 1044484  }
   0x3   :  { %4420 = vmatpush3.bf16.msra.mxu0 %v664_v1  ;;  %4814 = vmatpush3.bf16.msra.mxu1 %v664_v1  ;;  %v4821_v6 = vld [vmem:[%s6023_s0 + $0x20] sm:$0xff]   ;;  %v4823_v8 = vld [vmem:[%s6023_s0 + $0x30] sm:$0xff]   ;;  %v4824_v9 = vld [vmem:[%s6023_s0 + $0x38] sm:$0xff]   ;;  %vm3887_vm8 = vcmask 1045509   ;;  %vm3889_vm9 = vcmask 1046534   ;;  %vm3891_vm10 = vcmask 1047559  }
   0x4   :  { %4421 = vmatprep.mubr.msk.bf16.mxu0 %vm469_vm1, %v4817_v2  ;;  %v4825_v10 = vld [vmem:[%s6023_s0 + $0x40] sm:$0xff]   ;;  %v4842_v12 = vld [vmem:[%s6023_s0 + $0x108] sm:$0xff]   ;;  %v4846_v14 = vld [vmem:[%s6023_s0 + $0x110] sm:$0xff]  }
   0x5   :  { %v4841_v11 = vld [vmem:[%s6023_s0 + $0x100] sm:$0xff]   ;;  %v4826_v15 = vld [vmem:[%s6023_s0 + $0x48] sm:$0xff]   ;;  %v4847_v16 = vld [vmem:[%s6023_s0 + $0x118] sm:$0xff]  }
   0x6   :  { %4422 = vmatmul.mubr.msk.bf16.vlgmr.msra.gmra.mrb[0].mxu0 %vm469_vm1, %v4818_v3  ;;  %4485 = vmatprep.mubr.msk.bf16.mxu1 %vm469_vm1, %v4841_v11  ;;  %v4843_v13 = vld [vmem:[%s6022_s1 + $0x4] sm:$0xff]   ;;  %v4827_v17 = vld [vmem:[%s6023_s0 + $0x50] sm:$0xff]   ;;  %v4828_v19 = vld [vmem:[%s6023_s0 + $0x58] sm:$0xff]  }
   0x7   :  { %4425 = vmatprep.mubr.msk.bf16.mxu0 %vm469_vm1, %v4819_v4  ;;  %4486 = vmatmul.mubr.msk.bf16.vlgmr.msra.gmra.mrb[0].mxu1 %vm469_vm1, %v4842_v12  ;;  %v4850_v18 = vld [vmem:[%s6023_s0 + $0x120] sm:$0xff]   ;;  %v4851_v20 = vld [vmem:[%s6023_s0 + $0x128] sm:$0xff]   ;;  %v4854_v21 = vld [vmem:[%s6023_s0 + $0x130] sm:$0xff]  }
   0x8   :  { %4549 = vmatprep.subr.bf16.mxu1 %v4843_v13  ;;  %4489 = vmatprep.mubr.msk.bf16.mxu1 %vm469_vm1, %v4846_v14  ;;  %v4829_v22 = vld [vmem:[%s6023_s0 + $0x60] sm:$0xff]   ;;  %v4830_v23 = vld [vmem:[%s6023_s0 + $0x68] sm:$0xff]   ;;  %v4855_v24 = vld [vmem:[%s6023_s0 + $0x138] sm:$0xff]  }
   0x9   :  { %4550 = vmatpush3.bf16.msra.mxu1 %v4843_v13  ;;  %v4858_v25 = vld [vmem:[%s6023_s0 + $0x140] sm:$0xff]   ;;  %v4831_v26 = vld [vmem:[%s6023_s0 + $0x70] sm:$0xff]   ;;  %v4832_v28 = vld [vmem:[%s6023_s0 + $0x78] sm:$0xff]  }
   0xa   :  { %v4868_v27 = vld [vmem:[%s6022_s1 + $0xc] sm:$0xff]   ;;  %v4833_v31 = vld [vmem:[%s6023_s0 + $0x80] sm:$0xff]   ;;  %v4861_v33 = vld [vmem:[%s6023_s0 + $0x158] sm:$0xff]  }
   0xb   :  { %4551 = vmatprep.subr.bf16.mxu1 %v4868_v27  ;;  %v4859_v29 = vld [vmem:[%s6023_s0 + $0x148] sm:$0xff]   ;;  %v4860_v30 = vld [vmem:[%s6023_s0 + $0x150] sm:$0xff]   ;;  %v4862_v35 = vld [vmem:[%s6023_s0 + $0x160] sm:$0xff]  }
   0xc   :  { %v4834_v32 = vld [vmem:[%s6023_s0 + $0x88] sm:$0xff]   ;;  %v4835_v34 = vld [vmem:[%s6023_s0 + $0x90] sm:$0xff]   ;;  %v4836_v37 = vld [vmem:[%s6023_s0 + $0x98] sm:$0xff]  }
   0xd   :  { %4552 = vmatpush3.bf16.msra.mxu1 %v4868_v27  ;;  %v4863_v36 = vld [vmem:[%s6023_s0 + $0x168] sm:$0xff]   ;;  %v4864_v38 = vld [vmem:[%s6023_s0 + $0x170] sm:$0xff]   ;;  %v4837_v39 = vld [vmem:[%s6023_s0 + $0xa0] sm:$0xff]  }
   0xe   :  { %4426 = vmatmul.mubr.msk.bf16.gmra.mrb[4].mxu0 %vm469_vm1, %v4820_v5  ;;  %v4865_v40 = vld [vmem:[%s6023_s0 + $0x178] sm:$0xff]   ;;  %v4838_v41 = vld [vmem:[%s6023_s0 + $0xa8] sm:$0xff]   ;;  %v4866_v42 = vld [vmem:[%s6023_s0 + $0x180] sm:$0xff]   ;;  %v145_v5 = vlaneseq }
   0xf   :  { %4429 = vmatprep.mubr.msk.bf16.mxu0 %vm469_vm1, %v4821_v6  ;;  %4490 = vmatmul.mubr.msk.bf16.gmra.mrb[4].mxu1 %vm469_vm1, %v4847_v16  ;;  %v4839_v43 = vld [vmem:[%s6023_s0 + $0xb0] sm:$0xff]   ;;  %v4867_v44 = vld [vmem:[%s6023_s0 + $0x188] sm:$0xff]   ;;  %v4840_v45 = vld [vmem:[%s6023_s0 + $0xb8] sm:$0xff]  }
  0x10   :  { %4493 = vmatprep.mubr.msk.bf16.mxu1 %vm469_vm1, %v4850_v18  ;;  %v4869_v46 = vld [vmem:[%s6023_s0 + $0x190] sm:$0xff]   ;;  %v4844_v47 = vld [vmem:[%s6023_s0 + $0xc0] sm:$0xff]   ;;  %v4870_v48 = vld [vmem:[%s6023_s0 + $0x198] sm:$0xff]   ;;  %v5174_v6 = vshrl.u32 %v145_v5, 7 }
  0x11   :  { %v4845_v49 = vld [vmem:[%s6023_s0 + $0xc8] sm:$0xff]   ;;  %v4871_v50 = vld [vmem:[%s6023_s0 + $0x1a0] sm:$0xff]   ;;  %v4848_v51 = vld [vmem:[%s6023_s0 + $0xd0] sm:$0xff]  }
  0x12   :  { %v4872_v52 = vld [vmem:[%s6023_s0 + $0x1a8] sm:$0xff]   ;;  %v4849_v53 = vld [vmem:[%s6023_s0 + $0xd8] sm:$0xff]   ;;  %v4873_v54 = vld [vmem:[%s6023_s0 + $0x1b0] sm:$0xff]  }
  0x13   :  { %v4852_v55 = vld [vmem:[%s6023_s0 + $0xe0] sm:$0xff]   ;;  %v4874_v56 = vld [vmem:[%s6023_s0 + $0x1b8] sm:$0xff]   ;;  %v4853_v57 = vld [vmem:[%s6023_s0 + $0xe8] sm:$0xff]  }
  0x14   :  { %v4875_v58 = vld [vmem:[%s6023_s0 + $0x1c0] sm:$0xff]   ;;  %v4856_v59 = vld [vmem:[%s6023_s0 + $0xf0] sm:$0xff]   ;;  %v4876_v60 = vld [vmem:[%s6023_s0 + $0x1c8] sm:$0xff]  }
  0x15   :  { %v4857_v61 = vld [vmem:[%s6023_s0 + $0xf8] sm:$0xff]   ;;  %v4877_v62 = vld [vmem:[%s6023_s0 + $0x1d0] sm:$0xff]   ;;  %v4879_v0 = vld [vmem:[%s6023_s0 + $0x1e0] sm:$0xff]  }
  0x16   :  { %4430 = vmatmul.mubr.msk.bf16.gmra.mrb[8].mxu0 %vm469_vm1, %v4822_v7  ;;  %v4878_v63 = vld [vmem:[%s6023_s0 + $0x1d8] sm:$0xff]   ;;  %v4880_v1 = vld [vmem:[%s6023_s0 + $0x1e8] sm:$0xff]   ;;  %v4881_v2 = vld [vmem:[%s6023_s0 + $0x1f0] sm:$0xff]   ;;  %v147_v7 = vsub.s32 0, %v5174_v6 }
  0x17   :  { %4433 = vmatprep.mubr.msk.bf16.mxu0 %vm469_vm1, %v4823_v8  ;;  %4494 = vmatmul.mubr.msk.bf16.gmra.mrb[8].mxu1 %vm469_vm1, %v4851_v20  ;;  %v4882_v3 = vld [vmem:[%s6023_s0 + $0x1f8] sm:$0xff]   ;;  %v5180_v8 = vld [vmem:[%s6024_s2] sm:$0xff] }
  0x18   :  { %4497 = vmatprep.mubr.msk.bf16.mxu1 %vm469_vm1, %v4854_v21  ;;  %v4883_v4 = vld [vmem:[%s6022_s1 + $0x14] sm:$0xff]  }
  0x19   :  { %4681 = vmatprep.subr.bf16.mxu0 %v4883_v4 }
  0x1a   :  { %4682 = vmatpush3.bf16.msra.mxu0 %v4883_v4 }
  0x1e   :  { %4434 = vmatmul.mubr.msk.bf16.gmra.mrb[12].mxu0 %vm469_vm1, %v4824_v9  ;;  %v5183_v9 = vrot.slane %v5180_v8, %v147_v7 }
  0x1f   :  { %4437 = vmatprep.mubr.msk.bf16.mxu0 %vm469_vm1, %v4825_v10  ;;  %4498 = vmatmul.mubr.msk.bf16.gmra.mrb[12].mxu1 %vm469_vm1, %v4855_v24 }
  0x20   :  { %4501 = vmatprep.mubr.msk.bf16.mxu1 %vm469_vm1, %v4858_v25 }
  0x26   :  { %4438 = vmatmul.mubr.msk.bf16.gmra.mrb[16].mxu0 %vm469_vm1, %v4826_v15 }
  0x27   :  { %4441 = vmatprep.mubr.msk.bf16.mxu0 %vm469_vm1, %v4827_v17  ;;  %4502 = vmatmul.mubr.msk.bf16.gmra.mrb[16].mxu1 %vm469_vm1, %v4859_v29 }
  0x28   :  { %4505 = vmatprep.mubr.msk.bf16.mxu1 %vm469_vm1, %v4860_v30 }
  0x2e   :  { %4442 = vmatmul.mubr.msk.bf16.gmra.mrb[20].mxu0 %vm469_vm1, %v4828_v19 }
  0x2f   :  { %4445 = vmatprep.mubr.msk.bf16.mxu0 %vm469_vm1, %v4829_v22  ;;  %4506 = vmatmul.mubr.msk.bf16.gmra.mrb[20].mxu1 %vm469_vm1, %v4861_v33 }
  0x30   :  { %4509 = vmatprep.mubr.msk.bf16.mxu1 %vm469_vm1, %v4862_v35 }
  0x36   :  { %4446 = vmatmul.mubr.msk.bf16.gmra.mrb[24].mxu0 %vm469_vm1, %v4830_v23 }
  0x37   :  { %4449 = vmatprep.mubr.msk.bf16.mxu0 %vm469_vm1, %v4831_v26  ;;  %4510 = vmatmul.mubr.msk.bf16.gmra.mrb[24].mxu1 %vm469_vm1, %v4863_v36 }
  0x38   :  { %4513 = vmatprep.mubr.msk.bf16.mxu1 %vm469_vm1, %v4864_v38 }
  0x3e   :  { %4450 = vmatmul.mubr.msk.bf16.gmra.mrb[28].mxu0 %vm469_vm1, %v4832_v28 }
  0x3f   :  { %4453 = vmatprep.mubr.msk.bf16.mxu0 %vm469_vm1, %v4833_v31  ;;  %4514 = vmatmul.mubr.msk.bf16.gmra.mrb[28].mxu1 %vm469_vm1, %v4865_v40 }
  0x40   :  { %4517 = vmatprep.mubr.msk.bf16.mxu1 %vm469_vm1, %v4866_v42 }
  0x46   :  { %4454 = vmatmul.mubr.msk.bf16.gmra.mrb[32].mxu0 %vm469_vm1, %v4834_v32 }
  0x47   :  { %4457 = vmatprep.mubr.msk.bf16.mxu0 %vm469_vm1, %v4835_v34  ;;  %4518 = vmatmul.mubr.msk.bf16.gmra.mrb[32].mxu1 %vm469_vm1, %v4867_v44 }
  0x48   :  { %4521 = vmatprep.mubr.msk.bf16.mxu1 %vm469_vm1, %v4869_v46 }
  0x4e   :  { %4458 = vmatmul.mubr.msk.bf16.gmra.mrb[36].mxu0 %vm469_vm1, %v4836_v37 }
  0x4f   :  { %4461 = vmatprep.mubr.msk.bf16.mxu0 %vm469_vm1, %v4837_v39  ;;  %4522 = vmatmul.mubr.msk.bf16.gmra.mrb[36].mxu1 %vm469_vm1, %v4870_v48 }
  0x50   :  { %4525 = vmatprep.mubr.msk.bf16.mxu1 %vm469_vm1, %v4871_v50 }
  0x56   :  { %4462 = vmatmul.mubr.msk.bf16.gmra.mrb[40].mxu0 %vm469_vm1, %v4838_v41 }
  0x57   :  { %4465 = vmatprep.mubr.msk.bf16.mxu0 %vm469_vm1, %v4839_v43  ;;  %4526 = vmatmul.mubr.msk.bf16.gmra.mrb[40].mxu1 %vm469_vm1, %v4872_v52 }
  0x58   :  { %4529 = vmatprep.mubr.msk.bf16.mxu1 %vm469_vm1, %v4873_v54 }
  0x5e   :  { %4466 = vmatmul.mubr.msk.bf16.gmra.mrb[44].mxu0 %vm469_vm1, %v4840_v45 }
  0x5f   :  { %4469 = vmatprep.mubr.msk.bf16.mxu0 %vm469_vm1, %v4844_v47  ;;  %4530 = vmatmul.mubr.msk.bf16.gmra.mrb[44].mxu1 %vm469_vm1, %v4874_v56 }
  0x60   :  { %4533 = vmatprep.mubr.msk.bf16.mxu1 %vm469_vm1, %v4875_v58 }
  0x66   :  { %4470 = vmatmul.mubr.msk.bf16.gmra.mrb[48].mxu0 %vm469_vm1, %v4845_v49 }
  0x67   :  { %4473 = vmatprep.mubr.msk.bf16.mxu0 %vm469_vm1, %v4848_v51  ;;  %4534 = vmatmul.mubr.msk.bf16.gmra.mrb[48].mxu1 %vm469_vm1, %v4876_v60 }
  0x68   :  { %4537 = vmatprep.mubr.msk.bf16.mxu1 %vm469_vm1, %v4877_v62 }
  0x6e   :  { %4474 = vmatmul.mubr.msk.bf16.gmra.mrb[52].mxu0 %vm469_vm1, %v4849_v53 }
  0x6f   :  { %4477 = vmatprep.mubr.msk.bf16.mxu0 %vm469_vm1, %v4852_v55  ;;  %4538 = vmatmul.mubr.msk.bf16.gmra.mrb[52].mxu1 %vm469_vm1, %v4878_v63 }
  0x70   :  { %4541 = vmatprep.mubr.msk.bf16.mxu1 %vm469_vm1, %v4879_v0 }
  0x76   :  { %4478 = vmatmul.mubr.msk.bf16.gmra.mrb[56].mxu0 %vm469_vm1, %v4853_v57 }
  0x77   :  { %4481 = vmatprep.mubr.msk.bf16.mxu0 %vm469_vm1, %v4856_v59  ;;  %4542 = vmatmul.mubr.msk.bf16.gmra.mrb[56].mxu1 %vm469_vm1, %v4880_v1 }
  0x78   :  { %4545 = vmatprep.mubr.msk.bf16.mxu1 %vm469_vm1, %v4881_v2 }
  0x7e   :  { %4482 = vmatmul.mubr.msk.bf16.gmra.mrb[60].mxu0 %vm469_vm1, %v4857_v61 }
  0x7f   :  { %4546 = vmatmul.mubr.msk.bf16.gmra.mrb[60].mxu1 %vm469_vm1, %v4882_v3 }
  0xd9   :  { %v4423_v10 = vpop.f32.mrb[0].mxu0 }
  0xda   :  { %v709_v11 = vadd.f32 %v4423_v10, %v5183_v9  ;;  %v700_v12 = vpop.f32.mrb[1].mxu0  ;;  %v4487_v51 = vpop.f32.mrb[0].mxu1 }
  0xdb   :  { %v701_v13 = vadd.f32 %v700_v12, %v5183_v9  ;;  %v4424_v14 = vpop.f32.mrb[2].mxu0  ;;  %v965_v54 = vadd.f32 %v4487_v51, %v5183_v9  ;;  %v956_v55 = vpop.f32.mrb[1].mxu1 }
  0xdc   :  { %v712_v15 = vadd.f32 %v4424_v14, %v5183_v9  ;;  %v703_v16 = vpop.f32.mrb[3].mxu0  ;;  %v1213_v18 = vmax.f32 %v709_v11, 0.0  ;;  %v957_v58 = vadd.f32 %v956_v55, %v5183_v9  ;;  %v4488_v59 = vpop.f32.mrb[2].mxu1 }
  0xdd   :  { %v704_v17 = vadd.f32 %v703_v16, %v5183_v9  ;;  %v1211_v20 = vmax.f32 %v701_v13, 0.0  ;;  %v1277_v62 = vmax.f32 %v965_v54, 0.0  ;;  %v968_v63 = vadd.f32 %v4488_v59, %v5183_v9  ;;  %v959_v0 = vpop.f32.mrb[3].mxu1 }
  0xde   :  { %v1214_v19 = vmax.f32 %v712_v15, 0.0  ;;  %v1275_v3 = vmax.f32 %v957_v58, 0.0  ;;  %v960_v4 = vadd.f32 %v959_v0, %v5183_v9 }
  0xdf   :  { %v1212_v21 = vmax.f32 %v704_v17, 0.0  ;;  %v1278_v7 = vmax.f32 %v968_v63, 0.0 }
  0xe0   :  { %v1340_v22 = vpack.c.bf16 %v1214_v19, %v1213_v18  ;;  %v1276_v12 = vmax.f32 %v960_v4, 0.0 }
  0xe1   :  { %v1339_v23 = vpack.c.bf16 %v1212_v21, %v1211_v20  ;;  %v4427_v24 = vpop.f32.mrb[4].mxu0  ;;  %v5211_v15 = vpack.c.bf16 %v1278_v7, %v1277_v62 }
  0xe2   :  { %v725_v25 = vadd.f32 %v4427_v24, %v5183_v9  ;;  %v716_v26 = vpop.f32.mrb[5].mxu0  ;;  %v5213_v17 = vpack.c.bf16 %v1276_v12, %v1275_v3  ;;  %v4491_v18 = vpop.f32.mrb[4].mxu1 }
  0xe3   :  { %v717_v27 = vadd.f32 %v716_v26, %v5183_v9  ;;  %v4428_v28 = vpop.f32.mrb[6].mxu0  ;;  %4553 = vmatprep.mubr.msk.bf16.mxu1 %vm1423_vm2, %v1339_v23  ;;  %v981_v21 = vadd.f32 %v4491_v18, %v5183_v9 }
  0xe4   :  { %v728_v29 = vadd.f32 %v4428_v28, %v5183_v9  ;;  %v719_v30 = vpop.f32.mrb[7].mxu0  ;;  %4554 = vmatmul.mubr.msk.bf16.vlgmr.msra.gmra.mrb[64].mxu1 %vm1423_vm2, %v1340_v22  ;;  %v1217_v32 = vmax.f32 %v725_v25, 0.0  ;;  %v972_v22 = vpop.f32.mrb[5].mxu1 }
  0xe5   :  { %v720_v31 = vadd.f32 %v719_v30, %v5183_v9  ;;  %v1215_v34 = vmax.f32 %v717_v27, 0.0  ;;  %v973_v25 = vadd.f32 %v972_v22, %v5183_v9  ;;  %v4492_v26 = vpop.f32.mrb[6].mxu1 }
  0xe6   :  { %v1218_v33 = vmax.f32 %v728_v29, 0.0  ;;  %v1281_v29 = vmax.f32 %v981_v21, 0.0  ;;  %v984_v30 = vadd.f32 %v4492_v26, %v5183_v9 }
  0xe7   :  { %v1216_v35 = vmax.f32 %v720_v31, 0.0  ;;  %v975_v31 = vpop.f32.mrb[7].mxu1 }
  0xe8   :  { %v1342_v36 = vpack.c.bf16 %v1218_v33, %v1217_v32 }
  0xe9   :  { %v1341_v37 = vpack.c.bf16 %v1216_v35, %v1215_v34  ;;  %v4431_v38 = vpop.f32.mrb[8].mxu0  ;;  %v1279_v34 = vmax.f32 %v973_v25, 0.0  ;;  %v976_v35 = vadd.f32 %v975_v31, %v5183_v9 }
  0xea   :  { %v741_v39 = vadd.f32 %v4431_v38, %v5183_v9  ;;  %v732_v40 = vpop.f32.mrb[9].mxu0  ;;  %v4884_v38 = vld [vmem:[%s6022_s1 + $0x1c] sm:$0xff]  }
  0xeb   :  { %v733_v41 = vadd.f32 %v732_v40, %v5183_v9  ;;  %v4432_v42 = vpop.f32.mrb[10].mxu0  ;;  %4557 = vmatprep.mubr.msk.bf16.mxu1 %vm1423_vm2, %v1341_v37  ;;  %v1282_v37 = vmax.f32 %v984_v30, 0.0  ;;  %4683 = vmatprep.subr.bf16.mxu0 %v4884_v38 }
  0xec   :  { %v744_v43 = vadd.f32 %v4432_v42, %v5183_v9  ;;  %v735_v44 = vpop.f32.mrb[11].mxu0  ;;  %4558 = vmatmul.mubr.msk.bf16.gmra.mrb[68].mxu1 %vm1423_vm2, %v1342_v36  ;;  %v1221_v46 = vmax.f32 %v741_v39, 0.0  ;;  %4684 = vmatpush3.bf16.msra.mxu0 %v4884_v38 }
  0xed   :  { %v736_v45 = vadd.f32 %v735_v44, %v5183_v9  ;;  %v1219_v48 = vmax.f32 %v733_v41, 0.0  ;;  %v1280_v41 = vmax.f32 %v976_v35, 0.0  ;;  %v5228_v44 = vpack.c.bf16 %v1282_v37, %v1281_v29 }
  0xee   :  { %v1222_v47 = vmax.f32 %v744_v43, 0.0 }
  0xef   :  { %v1220_v49 = vmax.f32 %v736_v45, 0.0 }
  0xf0   :  { %v1344_v50 = vpack.c.bf16 %v1222_v47, %v1221_v46  ;;  %v5230_v46 = vpack.c.bf16 %v1280_v41, %v1279_v34  ;;  %v4495_v47 = vpop.f32.mrb[8].mxu1 }
  0xf1   :  { %v1343_v52 = vpack.c.bf16 %v1220_v49, %v1219_v48  ;;  %v4435_v53 = vpop.f32.mrb[12].mxu0  ;;  %v988_v51 = vpop.f32.mrb[9].mxu1 }
  0xf2   :  { %v757_v56 = vadd.f32 %v4435_v53, %v5183_v9  ;;  %v748_v57 = vpop.f32.mrb[13].mxu0  ;;  %v989_v54 = vadd.f32 %v988_v51, %v5183_v9  ;;  %v4496_v55 = vpop.f32.mrb[10].mxu1 }
  0xf3   :  { %v749_v60 = vadd.f32 %v748_v57, %v5183_v9  ;;  %v4436_v61 = vpop.f32.mrb[14].mxu0  ;;  %4561 = vmatprep.mubr.msk.bf16.mxu1 %vm1423_vm2, %v1343_v52  ;;  %v1000_v59 = vadd.f32 %v4496_v55, %v5183_v9 }
  0xf4   :  { %v760_v1 = vadd.f32 %v4436_v61, %v5183_v9  ;;  %v751_v2 = vpop.f32.mrb[15].mxu0  ;;  %4562 = vmatmul.mubr.msk.bf16.gmra.mrb[72].mxu1 %vm1423_vm2, %v1344_v50  ;;  %v1225_v10 = vmax.f32 %v757_v56, 0.0  ;;  %v997_v50 = vadd.f32 %v4495_v47, %v5183_v9  ;;  %v1283_v63 = vmax.f32 %v989_v54, 0.0 }
  0xf5   :  { %v752_v5 = vadd.f32 %v751_v2, %v5183_v9  ;;  %v1223_v13 = vmax.f32 %v749_v60, 0.0  ;;  %v991_v60 = vpop.f32.mrb[11].mxu1  ;;  %v1286_v2 = vmax.f32 %v1000_v59, 0.0 }
  0xf6   :  { %v1226_v11 = vmax.f32 %v760_v1, 0.0  ;;  %v1285_v58 = vmax.f32 %v997_v50, 0.0  ;;  %v992_v0 = vadd.f32 %v991_v60, %v5183_v9 }
  0xf7   :  { %v1224_v14 = vmax.f32 %v752_v5, 0.0 }
  0xf8   :  { %v1346_v16 = vpack.c.bf16 %v1226_v11, %v1225_v10  ;;  %v1284_v5 = vmax.f32 %v992_v0, 0.0  ;;  %v5242_v11 = vpack.c.bf16 %v1286_v2, %v1285_v58 }
  0xf9   :  { %v1345_v19 = vpack.c.bf16 %v1224_v14, %v1223_v13  ;;  %v4439_v20 = vpop.f32.mrb[16].mxu0  ;;  %v4499_v14 = vpop.f32.mrb[12].mxu1 }
  0xfa   :  { %v773_v23 = vadd.f32 %v4439_v20, %v5183_v9  ;;  %v764_v24 = vpop.f32.mrb[17].mxu0  ;;  %v5244_v13 = vpack.c.bf16 %v1284_v5, %v1283_v63  ;;  %v1004_v20 = vpop.f32.mrb[13].mxu1 }
  0xfb   :  { %v765_v27 = vadd.f32 %v764_v24, %v5183_v9  ;;  %v4440_v28 = vpop.f32.mrb[18].mxu0  ;;  %4565 = vmatprep.mubr.msk.bf16.mxu1 %vm1423_vm2, %v1345_v19  ;;  %v1013_v19 = vadd.f32 %v4499_v14, %v5183_v9  ;;  %v4500_v24 = vpop.f32.mrb[14].mxu1 }
  0xfc   :  { %v776_v32 = vadd.f32 %v4440_v28, %v5183_v9  ;;  %v767_v33 = vpop.f32.mrb[19].mxu0  ;;  %4566 = vmatmul.mubr.msk.bf16.gmra.mrb[76].mxu1 %vm1423_vm2, %v1346_v16  ;;  %v1229_v39 = vmax.f32 %v773_v23, 0.0  ;;  %v1005_v23 = vadd.f32 %v1004_v20, %v5183_v9  ;;  %v1016_v28 = vadd.f32 %v4500_v24, %v5183_v9  ;;  %v1007_v29 = vpop.f32.mrb[15].mxu1 }
  0xfd   :  { %v768_v36 = vadd.f32 %v767_v33, %v5183_v9  ;;  %v1227_v42 = vmax.f32 %v765_v27, 0.0  ;;  %v1289_v27 = vmax.f32 %v1013_v19, 0.0  ;;  %v1008_v33 = vadd.f32 %v1007_v29, %v5183_v9 }
  0xfe   :  { %v1230_v40 = vmax.f32 %v776_v32, 0.0  ;;  %v1287_v32 = vmax.f32 %v1005_v23, 0.0  ;;  %v1290_v35 = vmax.f32 %v1016_v28, 0.0 }
  0xff   :  { %v1228_v43 = vmax.f32 %v768_v36, 0.0  ;;  %v1288_v38 = vmax.f32 %v1008_v33, 0.0 }
 0x100   :  { %v1348_v45 = vpack.c.bf16 %v1230_v40, %v1229_v39  ;;  %v5256_v41 = vpack.c.bf16 %v1290_v35, %v1289_v27 }
 0x101   :  { %v1347_v48 = vpack.c.bf16 %v1228_v43, %v1227_v42  ;;  %v4443_v49 = vpop.f32.mrb[20].mxu0  ;;  %v5258_v43 = vpack.c.bf16 %v1288_v38, %v1287_v32 }
 0x102   :  { %v789_v52 = vadd.f32 %v4443_v49, %v5183_v9  ;;  %v780_v53 = vpop.f32.mrb[21].mxu0 }
 0x103   :  { %v781_v56 = vadd.f32 %v780_v53, %v5183_v9  ;;  %v4444_v57 = vpop.f32.mrb[22].mxu0  ;;  %4569 = vmatprep.mubr.msk.bf16.mxu1 %vm1423_vm2, %v1347_v48 }
 0x104   :  { %v792_v61 = vadd.f32 %v4444_v57, %v5183_v9  ;;  %v783_v62 = vpop.f32.mrb[23].mxu0  ;;  %4570 = vmatmul.mubr.msk.bf16.gmra.mrb[80].mxu1 %vm1423_vm2, %v1348_v45  ;;  %v1233_v3 = vmax.f32 %v789_v52, 0.0  ;;  %v4503_v45 = vpop.f32.mrb[16].mxu1 }
 0x105   :  { %v784_v1 = vadd.f32 %v783_v62, %v5183_v9  ;;  %v1231_v7 = vmax.f32 %v781_v56, 0.0  ;;  %v1029_v49 = vadd.f32 %v4503_v45, %v5183_v9  ;;  %v1020_v50 = vpop.f32.mrb[17].mxu1 }
 0x106   :  { %v1234_v4 = vmax.f32 %v792_v61, 0.0  ;;  %v1021_v53 = vadd.f32 %v1020_v50, %v5183_v9  ;;  %v4504_v54 = vpop.f32.mrb[18].mxu1 }
 0x107   :  { %v1232_v10 = vmax.f32 %v784_v1, 0.0  ;;  %v1293_v57 = vmax.f32 %v1029_v49, 0.0  ;;  %v1032_v58 = vadd.f32 %v4504_v54, %v5183_v9  ;;  %v1023_v59 = vpop.f32.mrb[19].mxu1 }
 0x108   :  { %v1350_v12 = vpack.c.bf16 %v1234_v4, %v1233_v3  ;;  %v1291_v62 = vmax.f32 %v1021_v53, 0.0  ;;  %v1024_v63 = vadd.f32 %v1023_v59, %v5183_v9 }
 0x109   :  { %v1349_v16 = vpack.c.bf16 %v1232_v10, %v1231_v7  ;;  %v4447_v18 = vpop.f32.mrb[24].mxu0  ;;  %v1294_v1 = vmax.f32 %v1032_v58, 0.0 }
 0x10a   :  { %v805_v21 = vadd.f32 %v4447_v18, %v5183_v9  ;;  %v796_v22 = vpop.f32.mrb[25].mxu0  ;;  %v1292_v4 = vmax.f32 %v1024_v63, 0.0 }
 0x10b   :  { %v797_v25 = vadd.f32 %v796_v22, %v5183_v9  ;;  %v4448_v26 = vpop.f32.mrb[26].mxu0  ;;  %4573 = vmatprep.mubr.msk.bf16.mxu1 %vm1423_vm2, %v1349_v16  ;;  %v5270_v10 = vpack.c.bf16 %v1294_v1, %v1293_v57  ;;  %v4507_v16 = vpop.f32.mrb[20].mxu1 }
 0x10c   :  { %v808_v30 = vadd.f32 %v4448_v26, %v5183_v9  ;;  %v799_v31 = vpop.f32.mrb[27].mxu0  ;;  %4574 = vmatmul.mubr.msk.bf16.gmra.mrb[84].mxu1 %vm1423_vm2, %v1350_v12  ;;  %v1237_v36 = vmax.f32 %v805_v21, 0.0  ;;  %v5272_v14 = vpack.c.bf16 %v1292_v4, %v1291_v62  ;;  %v1045_v20 = vadd.f32 %v4507_v16, %v5183_v9  ;;  %v1036_v21 = vpop.f32.mrb[21].mxu1 }
 0x10d   :  { %v800_v34 = vadd.f32 %v799_v31, %v5183_v9  ;;  %v1235_v39 = vmax.f32 %v797_v25, 0.0  ;;  %v1037_v24 = vadd.f32 %v1036_v21, %v5183_v9  ;;  %v4508_v25 = vpop.f32.mrb[22].mxu1 }
 0x10e   :  { %v1238_v37 = vmax.f32 %v808_v30, 0.0  ;;  %v1297_v28 = vmax.f32 %v1045_v20, 0.0  ;;  %v1048_v29 = vadd.f32 %v4508_v25, %v5183_v9  ;;  %v1039_v30 = vpop.f32.mrb[23].mxu1 }
 0x10f   :  { %v1236_v40 = vmax.f32 %v800_v34, 0.0  ;;  %v1295_v33 = vmax.f32 %v1037_v24, 0.0  ;;  %v1040_v34 = vadd.f32 %v1039_v30, %v5183_v9  ;;  %v4511_v49 = vpop.f32.mrb[24].mxu1 }
 0x110   :  { %v1352_v42 = vpack.c.bf16 %v1238_v37, %v1237_v36  ;;  %v1298_v36 = vmax.f32 %v1048_v29, 0.0  ;;  %v1052_v53 = vpop.f32.mrb[25].mxu1 }
 0x111   :  { %v1351_v47 = vpack.c.bf16 %v1236_v40, %v1235_v39  ;;  %v4451_v48 = vpop.f32.mrb[28].mxu0  ;;  %v1296_v39 = vmax.f32 %v1040_v34, 0.0  ;;  %v4512_v57 = vpop.f32.mrb[26].mxu1 }
 0x112   :  { %v821_v51 = vadd.f32 %v4451_v48, %v5183_v9  ;;  %v812_v52 = vpop.f32.mrb[29].mxu0  ;;  %v5284_v45 = vpack.c.bf16 %v1298_v36, %v1297_v28  ;;  %v1055_v62 = vpop.f32.mrb[27].mxu1 }
 0x113   :  { %v813_v55 = vadd.f32 %v812_v52, %v5183_v9  ;;  %v4452_v56 = vpop.f32.mrb[30].mxu0  ;;  %4577 = vmatprep.mubr.msk.bf16.mxu1 %vm1423_vm2, %v1351_v47  ;;  %v5286_v48 = vpack.c.bf16 %v1296_v39, %v1295_v33  ;;  %v1061_v52 = vadd.f32 %v4511_v49, %v5183_v9 }
 0x114   :  { %v824_v60 = vadd.f32 %v4452_v56, %v5183_v9  ;;  %v815_v61 = vpop.f32.mrb[31].mxu0  ;;  %4578 = vmatmul.mubr.msk.bf16.gmra.mrb[88].mxu1 %vm1423_vm2, %v1352_v42  ;;  %v1241_v2 = vmax.f32 %v821_v51, 0.0  ;;  %v1053_v56 = vadd.f32 %v1052_v53, %v5183_v9 }
 0x115   :  { %v816_v0 = vadd.f32 %v815_v61, %v5183_v9  ;;  %v1239_v5 = vmax.f32 %v813_v55, 0.0  ;;  %v1064_v61 = vadd.f32 %v4512_v57, %v5183_v9 }
 0x116   :  { %v1242_v3 = vmax.f32 %v824_v60, 0.0  ;;  %v1301_v60 = vmax.f32 %v1061_v52, 0.0  ;;  %v1299_v1 = vmax.f32 %v1053_v56, 0.0 }
 0x117   :  { %v1240_v7 = vmax.f32 %v816_v0, 0.0  ;;  %v1302_v4 = vmax.f32 %v1064_v61, 0.0 }
 0x118   :  { %v1354_v12 = vpack.c.bf16 %v1242_v3, %v1241_v2  ;;  %v1056_v2 = vadd.f32 %v1055_v62, %v5183_v9 }
 0x119   :  { %v1353_v18 = vpack.c.bf16 %v1240_v7, %v1239_v5  ;;  %v4455_v19 = vpop.f32.mrb[32].mxu0 }
 0x11a   :  { %v837_v22 = vadd.f32 %v4455_v19, %v5183_v9  ;;  %v828_v23 = vpop.f32.mrb[33].mxu0  ;;  %v5298_v19 = vpack.c.bf16 %v1302_v4, %v1301_v60 }
 0x11b   :  { %v829_v26 = vadd.f32 %v828_v23, %v5183_v9  ;;  %v4456_v27 = vpop.f32.mrb[34].mxu0  ;;  %4581 = vmatprep.mubr.msk.bf16.mxu1 %vm1423_vm2, %v1353_v18 }
 0x11c   :  { %v840_v31 = vadd.f32 %v4456_v27, %v5183_v9  ;;  %v831_v32 = vpop.f32.mrb[35].mxu0  ;;  %4582 = vmatmul.mubr.msk.bf16.gmra.mrb[92].mxu1 %vm1423_vm2, %v1354_v12  ;;  %v1245_v37 = vmax.f32 %v837_v22, 0.0  ;;  %v1300_v12 = vmax.f32 %v1056_v2, 0.0  ;;  %v4515_v22 = vpop.f32.mrb[28].mxu1 }
 0x11d   :  { %v832_v35 = vadd.f32 %v831_v32, %v5183_v9  ;;  %v1243_v40 = vmax.f32 %v829_v26, 0.0  ;;  %v1077_v25 = vadd.f32 %v4515_v22, %v5183_v9  ;;  %v1068_v26 = vpop.f32.mrb[29].mxu1 }
 0x11e   :  { %v1246_v38 = vmax.f32 %v840_v31, 0.0  ;;  %v5300_v21 = vpack.c.bf16 %v1300_v12, %v1299_v1  ;;  %v1069_v29 = vadd.f32 %v1068_v26, %v5183_v9  ;;  %v4516_v30 = vpop.f32.mrb[30].mxu1 }
 0x11f   :  { %v1244_v42 = vmax.f32 %v832_v35, 0.0  ;;  %v1305_v33 = vmax.f32 %v1077_v25, 0.0  ;;  %v1080_v34 = vadd.f32 %v4516_v30, %v5183_v9  ;;  %v1071_v35 = vpop.f32.mrb[31].mxu1 }
 0x120   :  { %v1356_v47 = vpack.c.bf16 %v1246_v38, %v1245_v37  ;;  %v1303_v38 = vmax.f32 %v1069_v29, 0.0  ;;  %v1072_v39 = vadd.f32 %v1071_v35, %v5183_v9  ;;  %v4519_v56 = vpop.f32.mrb[32].mxu1 }
 0x121   :  { %v1355_v50 = vpack.c.bf16 %v1244_v42, %v1243_v40  ;;  %v4459_v51 = vpop.f32.mrb[36].mxu0  ;;  %v1306_v42 = vmax.f32 %v1080_v34, 0.0  ;;  %v1084_v60 = vpop.f32.mrb[33].mxu1 }
 0x122   :  { %v853_v54 = vadd.f32 %v4459_v51, %v5183_v9  ;;  %v844_v55 = vpop.f32.mrb[37].mxu0 }
 0x123   :  { %v845_v58 = vadd.f32 %v844_v55, %v5183_v9  ;;  %v4460_v59 = vpop.f32.mrb[38].mxu0  ;;  %4585 = vmatprep.mubr.msk.bf16.mxu1 %vm1423_vm2, %v1355_v50  ;;  %v1304_v50 = vmax.f32 %v1072_v39, 0.0  ;;  %v5312_v53 = vpack.c.bf16 %v1306_v42, %v1305_v33 }
 0x124   :  { %v856_v63 = vadd.f32 %v4460_v59, %v5183_v9  ;;  %v847_v0 = vpop.f32.mrb[39].mxu0  ;;  %4586 = vmatmul.mubr.msk.bf16.gmra.mrb[96].mxu1 %vm1423_vm2, %v1356_v47  ;;  %v1249_v5 = vmax.f32 %v853_v54, 0.0  ;;  %v1093_v59 = vadd.f32 %v4519_v56, %v5183_v9 }
 0x125   :  { %v848_v3 = vadd.f32 %v847_v0, %v5183_v9  ;;  %v1247_v16 = vmax.f32 %v845_v58, 0.0  ;;  %v5314_v55 = vpack.c.bf16 %v1304_v50, %v1303_v38  ;;  %v4520_v0 = vpop.f32.mrb[34].mxu1 }
 0x126   :  { %v1250_v7 = vmax.f32 %v856_v63, 0.0  ;;  %v1085_v63 = vadd.f32 %v1084_v60, %v5183_v9  ;;  %v1096_v4 = vadd.f32 %v4520_v0, %v5183_v9 }
 0x127   :  { %v1248_v18 = vmax.f32 %v848_v3, 0.0  ;;  %v1309_v3 = vmax.f32 %v1093_v59, 0.0 }
 0x128   :  { %v1358_v20 = vpack.c.bf16 %v1250_v7, %v1249_v5  ;;  %v1087_v5 = vpop.f32.mrb[35].mxu1  ;;  %v1310_v22 = vmax.f32 %v1096_v4, 0.0 }
 0x129   :  { %v1357_v23 = vpack.c.bf16 %v1248_v18, %v1247_v16  ;;  %v4463_v24 = vpop.f32.mrb[40].mxu0  ;;  %v1307_v16 = vmax.f32 %v1085_v63, 0.0  ;;  %v1088_v18 = vadd.f32 %v1087_v5, %v5183_v9 }
 0x12a   :  { %v869_v27 = vadd.f32 %v4463_v24, %v5183_v9  ;;  %v860_v28 = vpop.f32.mrb[41].mxu0 }
 0x12b   :  { %v861_v31 = vadd.f32 %v860_v28, %v5183_v9  ;;  %v4464_v32 = vpop.f32.mrb[42].mxu0  ;;  %4589 = vmatprep.mubr.msk.bf16.mxu1 %vm1423_vm2, %v1357_v23  ;;  %v1308_v25 = vmax.f32 %v1088_v18, 0.0  ;;  %v5326_v28 = vpack.c.bf16 %v1310_v22, %v1309_v3 }
 0x12c   :  { %v872_v36 = vadd.f32 %v4464_v32, %v5183_v9  ;;  %v863_v37 = vpop.f32.mrb[43].mxu0  ;;  %4590 = vmatmul.mubr.msk.bf16.gmra.mrb[100].mxu1 %vm1423_vm2, %v1358_v20  ;;  %v1253_v47 = vmax.f32 %v869_v27, 0.0 }
 0x12d   :  { %v864_v40 = vadd.f32 %v863_v37, %v5183_v9  ;;  %v1251_v51 = vmax.f32 %v861_v31, 0.0  ;;  %v5328_v30 = vpack.c.bf16 %v1308_v25, %v1307_v16  ;;  %v4523_v31 = vpop.f32.mrb[36].mxu1 }
 0x12e   :  { %v1254_v49 = vmax.f32 %v872_v36, 0.0  ;;  %v1109_v34 = vadd.f32 %v4523_v31, %v5183_v9  ;;  %v1100_v35 = vpop.f32.mrb[37].mxu1 }
 0x12f   :  { %v1252_v52 = vmax.f32 %v864_v40, 0.0  ;;  %v1101_v38 = vadd.f32 %v1100_v35, %v5183_v9  ;;  %v4524_v39 = vpop.f32.mrb[38].mxu1 }
 0x130   :  { %v1360_v54 = vpack.c.bf16 %v1254_v49, %v1253_v47  ;;  %v1313_v47 = vmax.f32 %v1109_v34, 0.0  ;;  %v1112_v49 = vadd.f32 %v4524_v39, %v5183_v9  ;;  %v1103_v50 = vpop.f32.mrb[39].mxu1 }
 0x131   :  { %v1359_v57 = vpack.c.bf16 %v1252_v52, %v1251_v51  ;;  %v4467_v58 = vpop.f32.mrb[44].mxu0  ;;  %v1104_v56 = vadd.f32 %v1103_v50, %v5183_v9  ;;  %v4527_v3 = vpop.f32.mrb[40].mxu1 }
 0x132   :  { %v885_v61 = vadd.f32 %v4467_v58, %v5183_v9  ;;  %v876_v62 = vpop.f32.mrb[45].mxu0  ;;  %v1314_v58 = vmax.f32 %v1112_v49, 0.0 }
 0x133   :  { %v877_v1 = vadd.f32 %v876_v62, %v5183_v9  ;;  %v4468_v2 = vpop.f32.mrb[46].mxu0  ;;  %4593 = vmatprep.mubr.msk.bf16.mxu1 %vm1423_vm2, %v1359_v57 }
 0x134   :  { %v888_v7 = vadd.f32 %v4468_v2, %v5183_v9  ;;  %v879_v12 = vpop.f32.mrb[47].mxu0  ;;  %4594 = vmatmul.mubr.msk.bf16.gmra.mrb[104].mxu1 %vm1423_vm2, %v1360_v54  ;;  %v1257_v23 = vmax.f32 %v885_v61, 0.0  ;;  %v1311_v54 = vmax.f32 %v1101_v38, 0.0  ;;  %v1312_v61 = vmax.f32 %v1104_v56, 0.0 }
 0x135   :  { %v880_v20 = vadd.f32 %v879_v12, %v5183_v9  ;;  %v1255_v26 = vmax.f32 %v877_v1, 0.0  ;;  %v5340_v0 = vpack.c.bf16 %v1314_v58, %v1313_v47  ;;  %v1116_v12 = vpop.f32.mrb[41].mxu1 }
 0x136   :  { %v1258_v24 = vmax.f32 %v888_v7, 0.0  ;;  %v5342_v2 = vpack.c.bf16 %v1312_v61, %v1311_v54  ;;  %v1125_v7 = vadd.f32 %v4527_v3, %v5183_v9  ;;  %v4528_v22 = vpop.f32.mrb[42].mxu1 }
 0x137   :  { %v1256_v27 = vmax.f32 %v880_v20, 0.0  ;;  %v1117_v20 = vadd.f32 %v1116_v12, %v5183_v9 }
 0x138   :  { %v1362_v29 = vpack.c.bf16 %v1258_v24, %v1257_v23  ;;  %v1317_v25 = vmax.f32 %v1125_v7, 0.0 }
 0x139   :  { %v1361_v32 = vpack.c.bf16 %v1256_v27, %v1255_v26  ;;  %v4471_v33 = vpop.f32.mrb[48].mxu0  ;;  %v1128_v26 = vadd.f32 %v4528_v22, %v5183_v9  ;;  %v1119_v27 = vpop.f32.mrb[43].mxu1 }
 0x13a   :  { %v901_v36 = vadd.f32 %v4471_v33, %v5183_v9  ;;  %v892_v37 = vpop.f32.mrb[49].mxu0  ;;  %v1120_v33 = vadd.f32 %v1119_v27, %v5183_v9  ;;  %v4531_v50 = vpop.f32.mrb[44].mxu1 }
 0x13b   :  { %v893_v40 = vadd.f32 %v892_v37, %v5183_v9  ;;  %v4472_v42 = vpop.f32.mrb[50].mxu0  ;;  %4597 = vmatprep.mubr.msk.bf16.mxu1 %vm1423_vm2, %v1361_v32  ;;  %v1315_v32 = vmax.f32 %v1117_v20, 0.0  ;;  %v1318_v35 = vmax.f32 %v1128_v26, 0.0  ;;  %v1141_v54 = vadd.f32 %v4531_v50, %v5183_v9  ;;  %v1132_v56 = vpop.f32.mrb[45].mxu1 }
 0x13c   :  { %v904_v51 = vadd.f32 %v4472_v42, %v5183_v9  ;;  %v895_v52 = vpop.f32.mrb[51].mxu0  ;;  %4598 = vmatmul.mubr.msk.bf16.gmra.mrb[108].mxu1 %vm1423_vm2, %v1362_v29  ;;  %v1261_v59 = vmax.f32 %v901_v36, 0.0  ;;  %v1316_v38 = vmax.f32 %v1120_v33, 0.0 }
 0x13d   :  { %v896_v57 = vadd.f32 %v895_v52, %v5183_v9  ;;  %v1259_v62 = vmax.f32 %v893_v40, 0.0  ;;  %v5354_v42 = vpack.c.bf16 %v1318_v35, %v1317_v25 }
 0x13e   :  { %v1262_v60 = vmax.f32 %v904_v51, 0.0  ;;  %v5356_v49 = vpack.c.bf16 %v1316_v38, %v1315_v32 }
 0x13f   :  { %v1260_v63 = vmax.f32 %v896_v57, 0.0 }
 0x140   :  { %v1364_v1 = vpack.c.bf16 %v1262_v60, %v1261_v59  ;;  %v1133_v59 = vadd.f32 %v1132_v56, %v5183_v9  ;;  %v4532_v60 = vpop.f32.mrb[46].mxu1 }
 0x141   :  { %v1363_v4 = vpack.c.bf16 %v1260_v63, %v1259_v62  ;;  %v4475_v5 = vpop.f32.mrb[52].mxu0  ;;  %v1321_v63 = vmax.f32 %v1141_v54, 0.0  ;;  %v1135_v3 = vpop.f32.mrb[47].mxu1 }
 0x142   :  { %v917_v16 = vadd.f32 %v4475_v5, %v5183_v9  ;;  %v908_v18 = vpop.f32.mrb[53].mxu0  ;;  %v1319_v7 = vmax.f32 %v1133_v59, 0.0  ;;  %v1136_v12 = vadd.f32 %v1135_v3, %v5183_v9 }
 0x143   :  { %v909_v23 = vadd.f32 %v908_v18, %v5183_v9  ;;  %v4476_v24 = vpop.f32.mrb[54].mxu0  ;;  %4601 = vmatprep.mubr.msk.bf16.mxu1 %vm1423_vm2, %v1363_v4 }
 0x144   :  { %v920_v29 = vadd.f32 %v4476_v24, %v5183_v9  ;;  %v911_v31 = vpop.f32.mrb[55].mxu0  ;;  %4602 = vmatmul.mubr.msk.bf16.gmra.mrb[112].mxu1 %vm1423_vm2, %v1364_v1  ;;  %v1265_v36 = vmax.f32 %v917_v16, 0.0  ;;  %v1144_v1 = vadd.f32 %v4532_v60, %v5183_v9 }
 0x145   :  { %v912_v34 = vadd.f32 %v911_v31, %v5183_v9  ;;  %v1263_v39 = vmax.f32 %v909_v23, 0.0  ;;  %v1320_v23 = vmax.f32 %v1136_v12, 0.0  ;;  %v4535_v31 = vpop.f32.mrb[48].mxu1 }
 0x146   :  { %v1266_v37 = vmax.f32 %v920_v29, 0.0  ;;  %v1322_v18 = vmax.f32 %v1144_v1, 0.0  ;;  %v1148_v35 = vpop.f32.mrb[49].mxu1 }
 0x147   :  { %v1264_v40 = vmax.f32 %v912_v34, 0.0  ;;  %v5370_v29 = vpack.c.bf16 %v1320_v23, %v1319_v7  ;;  %v1157_v34 = vadd.f32 %v4535_v31, %v5183_v9  ;;  %v1149_v38 = vadd.f32 %v1148_v35, %v5183_v9 }
 0x148   :  { %v1366_v47 = vpack.c.bf16 %v1266_v37, %v1265_v36  ;;  %v5368_v26 = vpack.c.bf16 %v1322_v18, %v1321_v63 }
 0x149   :  { %v1365_v51 = vpack.c.bf16 %v1264_v40, %v1263_v39  ;;  %v4479_v52 = vpop.f32.mrb[56].mxu0  ;;  %v4536_v39 = vpop.f32.mrb[50].mxu1  ;;  %v1325_v50 = vmax.f32 %v1157_v34, 0.0 }
 0x14a   :  { %v933_v57 = vadd.f32 %v4479_v52, %v5183_v9  ;;  %v924_v58 = vpop.f32.mrb[57].mxu0  ;;  %v1151_v52 = vpop.f32.mrb[51].mxu1 }
 0x14b   :  { %v925_v61 = vadd.f32 %v924_v58, %v5183_v9  ;;  %v4480_v62 = vpop.f32.mrb[58].mxu0  ;;  %4605 = vmatprep.mubr.msk.bf16.mxu1 %vm1423_vm2, %v1365_v51  ;;  %v1160_v51 = vadd.f32 %v4536_v39, %v5183_v9  ;;  %v1152_v58 = vadd.f32 %v1151_v52, %v5183_v9  ;;  %v4539_v12 = vpop.f32.mrb[52].mxu1 }
 0x14c   :  { %v936_v4 = vadd.f32 %v4480_v62, %v5183_v9  ;;  %v927_v5 = vpop.f32.mrb[59].mxu0  ;;  %4606 = vmatmul.mubr.msk.bf16.gmra.mrb[116].mxu1 %vm1423_vm2, %v1366_v47  ;;  %v1269_v20 = vmax.f32 %v933_v57, 0.0  ;;  %v1323_v57 = vmax.f32 %v1149_v38, 0.0  ;;  %v1173_v18 = vadd.f32 %v4539_v12, %v5183_v9 }
 0x14d   :  { %v928_v16 = vadd.f32 %v927_v5, %v5183_v9  ;;  %v1267_v24 = vmax.f32 %v925_v61, 0.0  ;;  %v1326_v60 = vmax.f32 %v1160_v51, 0.0  ;;  %v1324_v63 = vmax.f32 %v1152_v58, 0.0 }
 0x14e   :  { %v1270_v22 = vmax.f32 %v936_v4, 0.0 }
 0x14f   :  { %v1268_v25 = vmax.f32 %v928_v16, 0.0  ;;  %v5382_v4 = vpack.c.bf16 %v1326_v60, %v1325_v50  ;;  %v5384_v7 = vpack.c.bf16 %v1324_v63, %v1323_v57 }
 0x150   :  { %v1368_v27 = vpack.c.bf16 %v1270_v22, %v1269_v20  ;;  %v1164_v20 = vpop.f32.mrb[53].mxu1 }
 0x151   :  { %v1367_v32 = vpack.c.bf16 %v1268_v25, %v1267_v24  ;;  %v4483_v33 = vpop.f32.mrb[60].mxu0  ;;  %v1165_v22 = vadd.f32 %v1164_v20, %v5183_v9  ;;  %v4540_v23 = vpop.f32.mrb[54].mxu1  ;;  %v1329_v24 = vmax.f32 %v1173_v18, 0.0 }
 0x152   :  { %v949_v36 = vadd.f32 %v4483_v33, %v5183_v9  ;;  %v940_v37 = vpop.f32.mrb[61].mxu0  ;;  %v1176_v25 = vadd.f32 %v4540_v23, %v5183_v9 }
 0x153   :  { %v941_v40 = vadd.f32 %v940_v37, %v5183_v9  ;;  %v4484_v47 = vpop.f32.mrb[62].mxu0  ;;  %4609 = vmatprep.mubr.msk.bf16.mxu1 %vm1423_vm2, %v1367_v32  ;;  %v1327_v31 = vmax.f32 %v1165_v22, 0.0 }
 0x154   :  { %v952_v54 = vadd.f32 %v4484_v47, %v5183_v9  ;;  %v943_v56 = vpop.f32.mrb[63].mxu0  ;;  %4610 = vmatmul.mubr.msk.bf16.gmra.mrb[120].mxu1 %vm1423_vm2, %v1368_v27  ;;  %v1273_v61 = vmax.f32 %v949_v36, 0.0  ;;  %v1167_v27 = vpop.f32.mrb[55].mxu1  ;;  %v1330_v33 = vmax.f32 %v1176_v25, 0.0 }
 0x155   :  { %v944_v59 = vadd.f32 %v943_v56, %v5183_v9  ;;  %v1271_v1 = vmax.f32 %v941_v40, 0.0  ;;  %v1168_v32 = vadd.f32 %v1167_v27, %v5183_v9  ;;  %v4543_v37 = vpop.f32.mrb[56].mxu1 }
 0x156   :  { %v1274_v62 = vmax.f32 %v952_v54, 0.0  ;;  %v5394_v35 = vpack.c.bf16 %v1330_v33, %v1329_v24  ;;  %v1189_v38 = vadd.f32 %v4543_v37, %v5183_v9  ;;  %v1180_v39 = vpop.f32.mrb[57].mxu1 }
 0x157   :  { %v1272_v3 = vmax.f32 %v944_v59, 0.0  ;;  %v1328_v34 = vmax.f32 %v1168_v32, 0.0  ;;  %v1181_v40 = vadd.f32 %v1180_v39, %v5183_v9  ;;  %v4544_v47 = vpop.f32.mrb[58].mxu1 }
 0x158   :  { %v1370_v5 = vpack.c.bf16 %v1274_v62, %v1273_v61  ;;  %v1333_v50 = vmax.f32 %v1189_v38, 0.0  ;;  %v1192_v51 = vadd.f32 %v4544_v47, %v5183_v9  ;;  %v1183_v52 = vpop.f32.mrb[59].mxu1 }
 0x159   :  { %v1369_v16 = vpack.c.bf16 %v1272_v3, %v1271_v1  ;;  %v5396_v36 = vpack.c.bf16 %v1328_v34, %v1327_v31  ;;  %v1184_v54 = vadd.f32 %v1183_v52, %v5183_v9  ;;  %v4547_v60 = vpop.f32.mrb[60].mxu1 }
 0x15a   :  { %v1334_v56 = vmax.f32 %v1192_v51, 0.0  ;;  %v1205_v61 = vadd.f32 %v4547_v60, %v5183_v9  ;;  %v1196_v62 = vpop.f32.mrb[61].mxu1 }
 0x15b   :  { %4613 = vmatprep.mubr.msk.bf16.mxu1 %vm1423_vm2, %v1369_v16  ;;  %v1332_v57 = vmax.f32 %v1184_v54, 0.0  ;;  %v1197_v63 = vadd.f32 %v1196_v62, %v5183_v9  ;;  %v4548_v1 = vpop.f32.mrb[62].mxu1 }
 0x15c   :  { %4614 = vmatmul.mubr.msk.bf16.gmra.mrb[124].mxu1 %vm1423_vm2, %v1370_v5  ;;  %v5406_v58 = vpack.c.bf16 %v1334_v56, %v1333_v50  ;;  %v1208_v3 = vadd.f32 %v4548_v1, %v5183_v9  ;;  %v1199_v5 = vpop.f32.mrb[63].mxu1 }
 0x15d   :  { %4617 = vmatprep.mubr.msk.bf16.mxu1 %vm1423_vm2, %v5213_v17  ;;  %v1331_v17 = vmax.f32 %v1181_v40, 0.0  ;;  %v1200_v12 = vadd.f32 %v1199_v5, %v5183_v9  ;;  %v1409_v9 = vsub.s32 1, %v5174_v6 }
 0x15e   :  { %v1338_v16 = vmax.f32 %v1208_v3, 0.0 }
 0x15f   :  { %v5408_v59 = vpack.c.bf16 %v1332_v57, %v1331_v17  ;;  %v1336_v18 = vmax.f32 %v1200_v12, 0.0 }
 0x164   :  { %4618 = vmatmul.mubr.msk.bf16.gmra.mrb[128].mxu1 %vm1423_vm2, %v5211_v15  ;;  %v1337_v15 = vmax.f32 %v1205_v61, 0.0 }
 0x165   :  { %4621 = vmatprep.mubr.msk.bf16.mxu1 %vm1423_vm2, %v5230_v46  ;;  %v1335_v46 = vmax.f32 %v1197_v63, 0.0 }
 0x166   :  { %v5418_v20 = vpack.c.bf16 %v1338_v16, %v1337_v15 }
 0x167   :  { %v5420_v22 = vpack.c.bf16 %v1336_v18, %v1335_v46 }
 0x16c   :  { %4622 = vmatmul.mubr.msk.bf16.gmra.mrb[132].mxu1 %vm1423_vm2, %v5228_v44  ;;  %v5458_v44 = vrot.slane %v5180_v8, %v1409_v9 }
 0x16d   :  { %4625 = vmatprep.mubr.msk.bf16.mxu1 %vm1423_vm2, %v5244_v13 }
 0x174   :  { %4626 = vmatmul.mubr.msk.bf16.gmra.mrb[136].mxu1 %vm1423_vm2, %v5242_v11 }
 0x175   :  { %4629 = vmatprep.mubr.msk.bf16.mxu1 %vm1423_vm2, %v5258_v43 }
 0x17c   :  { %4630 = vmatmul.mubr.msk.bf16.gmra.mrb[140].mxu1 %vm1423_vm2, %v5256_v41 }
 0x17d   :  { %4633 = vmatprep.mubr.msk.bf16.mxu1 %vm1423_vm2, %v5272_v14 }
 0x184   :  { %4634 = vmatmul.mubr.msk.bf16.gmra.mrb[144].mxu1 %vm1423_vm2, %v5270_v10 }
 0x185   :  { %4637 = vmatprep.mubr.msk.bf16.mxu1 %vm1423_vm2, %v5286_v48 }
 0x18c   :  { %4638 = vmatmul.mubr.msk.bf16.gmra.mrb[148].mxu1 %vm1423_vm2, %v5284_v45 }
 0x18d   :  { %4641 = vmatprep.mubr.msk.bf16.mxu1 %vm1423_vm2, %v5300_v21 }
 0x194   :  { %4642 = vmatmul.mubr.msk.bf16.gmra.mrb[152].mxu1 %vm1423_vm2, %v5298_v19 }
 0x195   :  { %4645 = vmatprep.mubr.msk.bf16.mxu1 %vm1423_vm2, %v5314_v55 }
 0x19c   :  { %4646 = vmatmul.mubr.msk.bf16.gmra.mrb[156].mxu1 %vm1423_vm2, %v5312_v53 }
 0x19d   :  { %4649 = vmatprep.mubr.msk.bf16.mxu1 %vm1423_vm2, %v5328_v30 }
 0x1a4   :  { %4650 = vmatmul.mubr.msk.bf16.gmra.mrb[160].mxu1 %vm1423_vm2, %v5326_v28 }
 0x1a5   :  { %4653 = vmatprep.mubr.msk.bf16.mxu1 %vm1423_vm2, %v5342_v2 }
 0x1ac   :  { %4654 = vmatmul.mubr.msk.bf16.gmra.mrb[164].mxu1 %vm1423_vm2, %v5340_v0 }
 0x1ad   :  { %4657 = vmatprep.mubr.msk.bf16.mxu1 %vm1423_vm2, %v5356_v49 }
 0x1b4   :  { %4658 = vmatmul.mubr.msk.bf16.gmra.mrb[168].mxu1 %vm1423_vm2, %v5354_v42 }
 0x1b5   :  { %4661 = vmatprep.mubr.msk.bf16.mxu1 %vm1423_vm2, %v5370_v29 }
 0x1b7   :  { %v4555_v11 = vpop.f32.mrb[64].mxu1 }
 0x1b8   :  { %v1659_v13 = vadd.f32 %v4555_v11, %v5458_v44  ;;  %v1650_v41 = vpop.f32.mrb[65].mxu1 }
 0x1b9   :  { %v1651_v43 = vadd.f32 %v1650_v41, %v5458_v44  ;;  %v4556_v10 = vpop.f32.mrb[66].mxu1 }
 0x1ba   :  { %v1662_v14 = vadd.f32 %v4556_v10, %v5458_v44  ;;  %v1653_v45 = vpop.f32.mrb[67].mxu1  ;;  %v2163_v19 = vmax.f32 %v1659_v13, 0.0 }
 0x1bb   :  { %v1654_v48 = vadd.f32 %v1653_v45, %v5458_v44  ;;  %v2161_v8 = vmax.f32 %v1651_v43, 0.0 }
 0x1bc   :  { %v2164_v21 = vmax.f32 %v1662_v14, 0.0  ;;  %4662 = vmatmul.mubr.msk.bf16.gmra.mrb[172].mxu1 %vm1423_vm2, %v5368_v26 }
 0x1bd   :  { %v2162_v53 = vmax.f32 %v1654_v48, 0.0  ;;  %4665 = vmatprep.mubr.msk.bf16.mxu1 %vm1423_vm2, %v5384_v7 }
 0x1be   :  { %v2290_v55 = vpack.c.bf16 %v2164_v21, %v2163_v19 }
 0x1bf   :  { %v2289_v28 = vpack.c.bf16 %v2162_v53, %v2161_v8  ;;  %v4559_v30 = vpop.f32.mrb[68].mxu1 }
 0x1c0   :  { %v1675_v0 = vadd.f32 %v4559_v30, %v5458_v44  ;;  %v1666_v2 = vpop.f32.mrb[69].mxu1 }
 0x1c1   :  { %v1667_v42 = vadd.f32 %v1666_v2, %v5458_v44  ;;  %v4560_v49 = vpop.f32.mrb[70].mxu1  ;;  %4685 = vmatprep.mubr.msk.bf16.mxu0 %vm1423_vm2, %v2289_v28 }
 0x1c2   :  { %v1678_v29 = vadd.f32 %v4560_v49, %v5458_v44  ;;  %v1669_v23 = vpop.f32.mrb[71].mxu1  ;;  %4686 = vmatmul.mubr.msk.bf16.vlgmr.msra.gmra.mrb[64].mxu0 %vm1423_vm2, %v2290_v55  ;;  %v2167_v24 = vmax.f32 %v1675_v0, 0.0 }
 0x1c3   :  { %v1670_v26 = vadd.f32 %v1669_v23, %v5458_v44  ;;  %v2165_v25 = vmax.f32 %v1667_v42, 0.0 }
 0x1c4   :  { %v2168_v7 = vmax.f32 %v1678_v29, 0.0  ;;  %4666 = vmatmul.mubr.msk.bf16.gmra.mrb[176].mxu1 %vm1423_vm2, %v5382_v4 }
 0x1c5   :  { %v2166_v27 = vmax.f32 %v1670_v26, 0.0  ;;  %4669 = vmatprep.mubr.msk.bf16.mxu1 %vm1423_vm2, %v5396_v36 }
 0x1c6   :  { %v2292_v31 = vpack.c.bf16 %v2168_v7, %v2167_v24 }
 0x1c7   :  { %v2291_v32 = vpack.c.bf16 %v2166_v27, %v2165_v25  ;;  %v4563_v33 = vpop.f32.mrb[72].mxu1 }
 0x1c8   :  { %v1691_v34 = vadd.f32 %v4563_v33, %v5458_v44  ;;  %v1682_v37 = vpop.f32.mrb[73].mxu1 }
 0x1c9   :  { %v1683_v38 = vadd.f32 %v1682_v37, %v5458_v44  ;;  %v4564_v39 = vpop.f32.mrb[74].mxu1  ;;  %4689 = vmatprep.mubr.msk.bf16.mxu0 %vm1423_vm2, %v2291_v32 }
 0x1ca   :  { %v1694_v40 = vadd.f32 %v4564_v39, %v5458_v44  ;;  %v1685_v47 = vpop.f32.mrb[75].mxu1  ;;  %4690 = vmatmul.mubr.msk.bf16.gmra.mrb[68].mxu0 %vm1423_vm2, %v2292_v31  ;;  %v2171_v50 = vmax.f32 %v1691_v34, 0.0 }
 0x1cb   :  { %v1686_v4 = vadd.f32 %v1685_v47, %v5458_v44  ;;  %v2169_v51 = vmax.f32 %v1683_v38, 0.0 }
 0x1cc   :  { %v2172_v36 = vmax.f32 %v1694_v40, 0.0  ;;  %4670 = vmatmul.mubr.msk.bf16.gmra.mrb[180].mxu1 %vm1423_vm2, %v5394_v35 }
 0x1cd   :  { %v2170_v52 = vmax.f32 %v1686_v4, 0.0  ;;  %4673 = vmatprep.mubr.msk.bf16.mxu1 %vm1423_vm2, %v5408_v59 }
 0x1ce   :  { %v2294_v17 = vpack.c.bf16 %v2172_v36, %v2171_v50 }
 0x1cf   :  { %v2293_v54 = vpack.c.bf16 %v2170_v52, %v2169_v51  ;;  %v4567_v56 = vpop.f32.mrb[76].mxu1 }
 0x1d0   :  { %v1707_v57 = vadd.f32 %v4567_v56, %v5458_v44  ;;  %v1698_v60 = vpop.f32.mrb[77].mxu1 }
 0x1d1   :  { %v1699_v61 = vadd.f32 %v1698_v60, %v5458_v44  ;;  %v4568_v62 = vpop.f32.mrb[78].mxu1  ;;  %4693 = vmatprep.mubr.msk.bf16.mxu0 %vm1423_vm2, %v2293_v54 }
 0x1d2   :  { %v1710_v63 = vadd.f32 %v4568_v62, %v5458_v44  ;;  %v1701_v1 = vpop.f32.mrb[79].mxu1  ;;  %4694 = vmatmul.mubr.msk.bf16.gmra.mrb[72].mxu0 %vm1423_vm2, %v2294_v17  ;;  %v2175_v15 = vmax.f32 %v1707_v57, 0.0 }
 0x1d3   :  { %v1702_v35 = vadd.f32 %v1701_v1, %v5458_v44  ;;  %v2173_v3 = vmax.f32 %v1699_v61, 0.0 }
 0x1d4   :  { %v2176_v59 = vmax.f32 %v1710_v63, 0.0  ;;  %4674 = vmatmul.mubr.msk.bf16.gmra.mrb[184].mxu1 %vm1423_vm2, %v5406_v58 }
 0x1d5   :  { %v2174_v5 = vmax.f32 %v1702_v35, 0.0  ;;  %4677 = vmatprep.mubr.msk.bf16.mxu1 %vm1423_vm2, %v5420_v22 }
 0x1d6   :  { %v2296_v46 = vpack.c.bf16 %v2176_v59, %v2175_v15 }
 0x1d7   :  { %v2295_v12 = vpack.c.bf16 %v2174_v5, %v2173_v3  ;;  %v4571_v16 = vpop.f32.mrb[80].mxu1 }
 0x1d8   :  { %v1723_v18 = vadd.f32 %v4571_v16, %v5458_v44  ;;  %v1714_v9 = vpop.f32.mrb[81].mxu1 }
 0x1d9   :  { %v1715_v11 = vadd.f32 %v1714_v9, %v5458_v44  ;;  %v4572_v13 = vpop.f32.mrb[82].mxu1  ;;  %4697 = vmatprep.mubr.msk.bf16.mxu0 %vm1423_vm2, %v2295_v12 }
 0x1da   :  { %v1726_v41 = vadd.f32 %v4572_v13, %v5458_v44  ;;  %v1717_v43 = vpop.f32.mrb[83].mxu1  ;;  %4698 = vmatmul.mubr.msk.bf16.gmra.mrb[76].mxu0 %vm1423_vm2, %v2296_v46  ;;  %v2179_v10 = vmax.f32 %v1723_v18, 0.0 }
 0x1db   :  { %v1718_v58 = vadd.f32 %v1717_v43, %v5458_v44  ;;  %v2177_v14 = vmax.f32 %v1715_v11, 0.0 }
 0x1dc   :  { %v2180_v22 = vmax.f32 %v1726_v41, 0.0  ;;  %4678 = vmatmul.mubr.msk.bf16.gmra.mrb[188].mxu1 %vm1423_vm2, %v5418_v20 }
 0x1dd   :  { %v2178_v45 = vmax.f32 %v1718_v58, 0.0 }
 0x1de   :  { %v2298_v48 = vpack.c.bf16 %v2180_v22, %v2179_v10 }
 0x1df   :  { %v2297_v19 = vpack.c.bf16 %v2178_v45, %v2177_v14  ;;  %v4575_v21 = vpop.f32.mrb[84].mxu1 }
 0x1e0   :  { %v1739_v8 = vadd.f32 %v4575_v21, %v5458_v44  ;;  %v1730_v53 = vpop.f32.mrb[85].mxu1 }
 0x1e1   :  { %v1731_v55 = vadd.f32 %v1730_v53, %v5458_v44  ;;  %v4576_v28 = vpop.f32.mrb[86].mxu1  ;;  %4701 = vmatprep.mubr.msk.bf16.mxu0 %vm1423_vm2, %v2297_v19 }
 0x1e2   :  { %v1742_v30 = vadd.f32 %v4576_v28, %v5458_v44  ;;  %v1733_v0 = vpop.f32.mrb[87].mxu1  ;;  %4702 = vmatmul.mubr.msk.bf16.gmra.mrb[80].mxu0 %vm1423_vm2, %v2298_v48  ;;  %v2183_v2 = vmax.f32 %v1739_v8, 0.0 }
 0x1e3   :  { %v1734_v20 = vadd.f32 %v1733_v0, %v5458_v44  ;;  %v2181_v49 = vmax.f32 %v1731_v55, 0.0 }
 0x1e4   :  { %v2184_v42 = vmax.f32 %v1742_v30, 0.0 }
 0x1e5   :  { %v2182_v29 = vmax.f32 %v1734_v20, 0.0 }
 0x1e6   :  { %v2300_v23 = vpack.c.bf16 %v2184_v42, %v2183_v2 }
 0x1e7   :  { %v2299_v26 = vpack.c.bf16 %v2182_v29, %v2181_v49  ;;  %v4579_v24 = vpop.f32.mrb[88].mxu1 }
 0x1e8   :  { %v1755_v7 = vadd.f32 %v4579_v24, %v5458_v44  ;;  %v1746_v25 = vpop.f32.mrb[89].mxu1 }
 0x1e9   :  { %v1747_v27 = vadd.f32 %v1746_v25, %v5458_v44  ;;  %v4580_v31 = vpop.f32.mrb[90].mxu1  ;;  %4705 = vmatprep.mubr.msk.bf16.mxu0 %vm1423_vm2, %v2299_v26 }
 0x1ea   :  { %v1758_v32 = vadd.f32 %v4580_v31, %v5458_v44  ;;  %v1749_v33 = vpop.f32.mrb[91].mxu1  ;;  %4706 = vmatmul.mubr.msk.bf16.gmra.mrb[84].mxu0 %vm1423_vm2, %v2300_v23  ;;  %v2187_v37 = vmax.f32 %v1755_v7, 0.0 }
 0x1eb   :  { %v1750_v34 = vadd.f32 %v1749_v33, %v5458_v44  ;;  %v2185_v39 = vmax.f32 %v1747_v27, 0.0 }
 0x1ec   :  { %v2188_v38 = vmax.f32 %v1758_v32, 0.0 }
 0x1ed   :  { %v2186_v40 = vmax.f32 %v1750_v34, 0.0 }
 0x1ee   :  { %v2302_v47 = vpack.c.bf16 %v2188_v38, %v2187_v37 }
 0x1ef   :  { %v2301_v4 = vpack.c.bf16 %v2186_v40, %v2185_v39  ;;  %v4583_v50 = vpop.f32.mrb[92].mxu1 }
 0x1f0   :  { %v1771_v36 = vadd.f32 %v4583_v50, %v5458_v44  ;;  %v1762_v51 = vpop.f32.mrb[93].mxu1 }
 0x1f1   :  { %v1763_v52 = vadd.f32 %v1762_v51, %v5458_v44  ;;  %v4584_v17 = vpop.f32.mrb[94].mxu1  ;;  %4709 = vmatprep.mubr.msk.bf16.mxu0 %vm1423_vm2, %v2301_v4 }
 0x1f2   :  { %v1774_v54 = vadd.f32 %v4584_v17, %v5458_v44  ;;  %v1765_v56 = vpop.f32.mrb[95].mxu1  ;;  %4710 = vmatmul.mubr.msk.bf16.gmra.mrb[88].mxu0 %vm1423_vm2, %v2302_v47  ;;  %v2191_v60 = vmax.f32 %v1771_v36, 0.0 }
 0x1f3   :  { %v1766_v57 = vadd.f32 %v1765_v56, %v5458_v44  ;;  %v2189_v62 = vmax.f32 %v1763_v52, 0.0 }
 0x1f4   :  { %v2192_v61 = vmax.f32 %v1774_v54, 0.0 }
 0x1f5   :  { %v2190_v63 = vmax.f32 %v1766_v57, 0.0 }
 0x1f6   :  { %v2304_v1 = vpack.c.bf16 %v2192_v61, %v2191_v60 }
 0x1f7   :  { %v2303_v35 = vpack.c.bf16 %v2190_v63, %v2189_v62  ;;  %v4587_v15 = vpop.f32.mrb[96].mxu1 }
 0x1f8   :  { %v1787_v59 = vadd.f32 %v4587_v15, %v5458_v44  ;;  %v1778_v3 = vpop.f32.mrb[97].mxu1 }
 0x1f9   :  { %v1779_v5 = vadd.f32 %v1778_v3, %v5458_v44  ;;  %v4588_v46 = vpop.f32.mrb[98].mxu1  ;;  %4713 = vmatprep.mubr.msk.bf16.mxu0 %vm1423_vm2, %v2303_v35 }
 0x1fa   :  { %v1790_v12 = vadd.f32 %v4588_v46, %v5458_v44  ;;  %v1781_v16 = vpop.f32.mrb[99].mxu1  ;;  %4714 = vmatmul.mubr.msk.bf16.gmra.mrb[92].mxu0 %vm1423_vm2, %v2304_v1  ;;  %v2195_v9 = vmax.f32 %v1787_v59, 0.0 }
 0x1fb   :  { %v1782_v18 = vadd.f32 %v1781_v16, %v5458_v44  ;;  %v2193_v13 = vmax.f32 %v1779_v5, 0.0 }
 0x1fc   :  { %v2196_v11 = vmax.f32 %v1790_v12, 0.0 }
 0x1fd   :  { %v2194_v41 = vmax.f32 %v1782_v18, 0.0 }
 0x1fe   :  { %v2306_v43 = vpack.c.bf16 %v2196_v11, %v2195_v9 }
 0x1ff   :  { %v2305_v58 = vpack.c.bf16 %v2194_v41, %v2193_v13  ;;  %v4591_v10 = vpop.f32.mrb[100].mxu1 }
 0x200   :  { %v1803_v22 = vadd.f32 %v4591_v10, %v5458_v44  ;;  %v1794_v14 = vpop.f32.mrb[101].mxu1 }
 0x201   :  { %v1795_v45 = vadd.f32 %v1794_v14, %v5458_v44  ;;  %v4592_v48 = vpop.f32.mrb[102].mxu1  ;;  %4717 = vmatprep.mubr.msk.bf16.mxu0 %vm1423_vm2, %v2305_v58 }
 0x202   :  { %v1806_v19 = vadd.f32 %v4592_v48, %v5458_v44  ;;  %v1797_v21 = vpop.f32.mrb[103].mxu1  ;;  %4718 = vmatmul.mubr.msk.bf16.gmra.mrb[96].mxu0 %vm1423_vm2, %v2306_v43  ;;  %v2199_v53 = vmax.f32 %v1803_v22, 0.0 }
 0x203   :  { %v1798_v8 = vadd.f32 %v1797_v21, %v5458_v44  ;;  %v2197_v28 = vmax.f32 %v1795_v45, 0.0 }
 0x204   :  { %v2200_v55 = vmax.f32 %v1806_v19, 0.0 }
 0x205   :  { %v2198_v30 = vmax.f32 %v1798_v8, 0.0 }
 0x206   :  { %v2308_v0 = vpack.c.bf16 %v2200_v55, %v2199_v53 }
 0x207   :  { %v2307_v20 = vpack.c.bf16 %v2198_v30, %v2197_v28  ;;  %v4595_v2 = vpop.f32.mrb[104].mxu1 }
 0x208   :  { %v1819_v42 = vadd.f32 %v4595_v2, %v5458_v44  ;;  %v1810_v49 = vpop.f32.mrb[105].mxu1 }
 0x209   :  { %v1811_v29 = vadd.f32 %v1810_v49, %v5458_v44  ;;  %v4596_v23 = vpop.f32.mrb[106].mxu1  ;;  %4721 = vmatprep.mubr.msk.bf16.mxu0 %vm1423_vm2, %v2307_v20 }
 0x20a   :  { %v1822_v26 = vadd.f32 %v4596_v23, %v5458_v44  ;;  %v1813_v24 = vpop.f32.mrb[107].mxu1  ;;  %4722 = vmatmul.mubr.msk.bf16.gmra.mrb[100].mxu0 %vm1423_vm2, %v2308_v0  ;;  %v2203_v25 = vmax.f32 %v1819_v42, 0.0 }
 0x20b   :  { %v1814_v7 = vadd.f32 %v1813_v24, %v5458_v44  ;;  %v2201_v31 = vmax.f32 %v1811_v29, 0.0 }
 0x20c   :  { %v2204_v27 = vmax.f32 %v1822_v26, 0.0 }
 0x20d   :  { %v2202_v32 = vmax.f32 %v1814_v7, 0.0 }
 0x20e   :  { %v2310_v33 = vpack.c.bf16 %v2204_v27, %v2203_v25 }
 0x20f   :  { %v2309_v34 = vpack.c.bf16 %v2202_v32, %v2201_v31  ;;  %v4599_v37 = vpop.f32.mrb[108].mxu1 }
 0x210   :  { %v1835_v38 = vadd.f32 %v4599_v37, %v5458_v44  ;;  %v1826_v39 = vpop.f32.mrb[109].mxu1 }
 0x211   :  { %v1827_v40 = vadd.f32 %v1826_v39, %v5458_v44  ;;  %v4600_v47 = vpop.f32.mrb[110].mxu1  ;;  %4725 = vmatprep.mubr.msk.bf16.mxu0 %vm1423_vm2, %v2309_v34 }
 0x212   :  { %v1838_v4 = vadd.f32 %v4600_v47, %v5458_v44  ;;  %v1829_v50 = vpop.f32.mrb[111].mxu1  ;;  %4726 = vmatmul.mubr.msk.bf16.gmra.mrb[104].mxu0 %vm1423_vm2, %v2310_v33  ;;  %v2207_v51 = vmax.f32 %v1835_v38, 0.0 }
 0x213   :  { %v1830_v36 = vadd.f32 %v1829_v50, %v5458_v44  ;;  %v2205_v17 = vmax.f32 %v1827_v40, 0.0 }
 0x214   :  { %v2208_v52 = vmax.f32 %v1838_v4, 0.0 }
 0x215   :  { %v2206_v54 = vmax.f32 %v1830_v36, 0.0 }
 0x216   :  { %v2312_v56 = vpack.c.bf16 %v2208_v52, %v2207_v51 }
 0x217   :  { %v2311_v57 = vpack.c.bf16 %v2206_v54, %v2205_v17  ;;  %v4603_v60 = vpop.f32.mrb[112].mxu1 }
 0x218   :  { %v1851_v61 = vadd.f32 %v4603_v60, %v5458_v44  ;;  %v1842_v62 = vpop.f32.mrb[113].mxu1 }
 0x219   :  { %v1843_v63 = vadd.f32 %v1842_v62, %v5458_v44  ;;  %v4604_v1 = vpop.f32.mrb[114].mxu1  ;;  %4729 = vmatprep.mubr.msk.bf16.mxu0 %vm1423_vm2, %v2311_v57 }
 0x21a   :  { %v1854_v35 = vadd.f32 %v4604_v1, %v5458_v44  ;;  %v1845_v15 = vpop.f32.mrb[115].mxu1  ;;  %4730 = vmatmul.mubr.msk.bf16.gmra.mrb[108].mxu0 %vm1423_vm2, %v2312_v56  ;;  %v2211_v3 = vmax.f32 %v1851_v61, 0.0 }
 0x21b   :  { %v1846_v59 = vadd.f32 %v1845_v15, %v5458_v44  ;;  %v2209_v46 = vmax.f32 %v1843_v63, 0.0 }
 0x21c   :  { %v2212_v5 = vmax.f32 %v1854_v35, 0.0 }
 0x21d   :  { %v2210_v12 = vmax.f32 %v1846_v59, 0.0 }
 0x21e   :  { %v2314_v16 = vpack.c.bf16 %v2212_v5, %v2211_v3 }
 0x21f   :  { %v2313_v18 = vpack.c.bf16 %v2210_v12, %v2209_v46  ;;  %v4607_v9 = vpop.f32.mrb[116].mxu1 }
 0x220   :  { %v1867_v11 = vadd.f32 %v4607_v9, %v5458_v44  ;;  %v1858_v13 = vpop.f32.mrb[117].mxu1 }
 0x221   :  { %v1859_v41 = vadd.f32 %v1858_v13, %v5458_v44  ;;  %v4608_v43 = vpop.f32.mrb[118].mxu1  ;;  %4733 = vmatprep.mubr.msk.bf16.mxu0 %vm1423_vm2, %v2313_v18 }
 0x222   :  { %v1870_v58 = vadd.f32 %v4608_v43, %v5458_v44  ;;  %v1861_v10 = vpop.f32.mrb[119].mxu1  ;;  %4734 = vmatmul.mubr.msk.bf16.gmra.mrb[112].mxu0 %vm1423_vm2, %v2314_v16  ;;  %v2215_v14 = vmax.f32 %v1867_v11, 0.0 }
 0x223   :  { %v1862_v22 = vadd.f32 %v1861_v10, %v5458_v44  ;;  %v2213_v48 = vmax.f32 %v1859_v41, 0.0 }
 0x224   :  { %v2216_v45 = vmax.f32 %v1870_v58, 0.0 }
 0x225   :  { %v2214_v19 = vmax.f32 %v1862_v22, 0.0 }
 0x226   :  { %v2316_v21 = vpack.c.bf16 %v2216_v45, %v2215_v14 }
 0x227   :  { %v2315_v8 = vpack.c.bf16 %v2214_v19, %v2213_v48  ;;  %v4611_v53 = vpop.f32.mrb[120].mxu1 }
 0x228   :  { %v1883_v55 = vadd.f32 %v4611_v53, %v5458_v44  ;;  %v1874_v28 = vpop.f32.mrb[121].mxu1 }
 0x229   :  { %v1875_v30 = vadd.f32 %v1874_v28, %v5458_v44  ;;  %v4612_v0 = vpop.f32.mrb[122].mxu1  ;;  %4737 = vmatprep.mubr.msk.bf16.mxu0 %vm1423_vm2, %v2315_v8 }
 0x22a   :  { %v1886_v20 = vadd.f32 %v4612_v0, %v5458_v44  ;;  %v1877_v2 = vpop.f32.mrb[123].mxu1  ;;  %4738 = vmatmul.mubr.msk.bf16.gmra.mrb[116].mxu0 %vm1423_vm2, %v2316_v21  ;;  %v2219_v49 = vmax.f32 %v1883_v55, 0.0 }
 0x22b   :  { %v1878_v42 = vadd.f32 %v1877_v2, %v5458_v44  ;;  %v2217_v23 = vmax.f32 %v1875_v30, 0.0 }
 0x22c   :  { %v2220_v29 = vmax.f32 %v1886_v20, 0.0 }
 0x22d   :  { %v2218_v26 = vmax.f32 %v1878_v42, 0.0 }
 0x22e   :  { %v2318_v24 = vpack.c.bf16 %v2220_v29, %v2219_v49 }
 0x22f   :  { %v2317_v7 = vpack.c.bf16 %v2218_v26, %v2217_v23  ;;  %v4615_v25 = vpop.f32.mrb[124].mxu1 }
 0x230   :  { %v1899_v27 = vadd.f32 %v4615_v25, %v5458_v44  ;;  %v1890_v31 = vpop.f32.mrb[125].mxu1 }
 0x231   :  { %v1891_v32 = vadd.f32 %v1890_v31, %v5458_v44  ;;  %v4616_v33 = vpop.f32.mrb[126].mxu1  ;;  %4741 = vmatprep.mubr.msk.bf16.mxu0 %vm1423_vm2, %v2317_v7 }
 0x232   :  { %v1902_v34 = vadd.f32 %v4616_v33, %v5458_v44  ;;  %v1893_v37 = vpop.f32.mrb[127].mxu1  ;;  %4742 = vmatmul.mubr.msk.bf16.gmra.mrb[120].mxu0 %vm1423_vm2, %v2318_v24  ;;  %v2223_v39 = vmax.f32 %v1899_v27, 0.0 }
 0x233   :  { %v1894_v38 = vadd.f32 %v1893_v37, %v5458_v44  ;;  %v2221_v47 = vmax.f32 %v1891_v32, 0.0 }
 0x234   :  { %v2224_v40 = vmax.f32 %v1902_v34, 0.0 }
 0x235   :  { %v2222_v4 = vmax.f32 %v1894_v38, 0.0 }
 0x236   :  { %v2320_v50 = vpack.c.bf16 %v2224_v40, %v2223_v39 }
 0x237   :  { %v2319_v36 = vpack.c.bf16 %v2222_v4, %v2221_v47  ;;  %v4619_v51 = vpop.f32.mrb[128].mxu1 }
 0x238   :  { %v1915_v52 = vadd.f32 %v4619_v51, %v5458_v44  ;;  %v1906_v17 = vpop.f32.mrb[129].mxu1 }
 0x239   :  { %v1907_v54 = vadd.f32 %v1906_v17, %v5458_v44  ;;  %v4620_v56 = vpop.f32.mrb[130].mxu1  ;;  %4745 = vmatprep.mubr.msk.bf16.mxu0 %vm1423_vm2, %v2319_v36 }
 0x23a   :  { %v1918_v57 = vadd.f32 %v4620_v56, %v5458_v44  ;;  %v1909_v60 = vpop.f32.mrb[131].mxu1  ;;  %4746 = vmatmul.mubr.msk.bf16.gmra.mrb[124].mxu0 %vm1423_vm2, %v2320_v50  ;;  %v2227_v62 = vmax.f32 %v1915_v52, 0.0 }
 0x23b   :  { %v1910_v61 = vadd.f32 %v1909_v60, %v5458_v44  ;;  %v2225_v1 = vmax.f32 %v1907_v54, 0.0 }
 0x23c   :  { %v2228_v63 = vmax.f32 %v1918_v57, 0.0 }
 0x23d   :  { %v2226_v35 = vmax.f32 %v1910_v61, 0.0 }
 0x23e   :  { %v2322_v15 = vpack.c.bf16 %v2228_v63, %v2227_v62 }
 0x23f   :  { %v2321_v59 = vpack.c.bf16 %v2226_v35, %v2225_v1  ;;  %v4623_v3 = vpop.f32.mrb[132].mxu1 }
 0x240   :  { %v1931_v5 = vadd.f32 %v4623_v3, %v5458_v44  ;;  %v1922_v46 = vpop.f32.mrb[133].mxu1 }
 0x241   :  { %v1923_v12 = vadd.f32 %v1922_v46, %v5458_v44  ;;  %v4624_v16 = vpop.f32.mrb[134].mxu1  ;;  %4749 = vmatprep.mubr.msk.bf16.mxu0 %vm1423_vm2, %v2321_v59 }
 0x242   :  { %v1934_v18 = vadd.f32 %v4624_v16, %v5458_v44  ;;  %v1925_v9 = vpop.f32.mrb[135].mxu1  ;;  %4750 = vmatmul.mubr.msk.bf16.gmra.mrb[128].mxu0 %vm1423_vm2, %v2322_v15  ;;  %v2231_v13 = vmax.f32 %v1931_v5, 0.0 }
 0x243   :  { %v1926_v11 = vadd.f32 %v1925_v9, %v5458_v44  ;;  %v2229_v43 = vmax.f32 %v1923_v12, 0.0 }
 0x244   :  { %v2232_v41 = vmax.f32 %v1934_v18, 0.0 }
 0x245   :  { %v2230_v58 = vmax.f32 %v1926_v11, 0.0 }
 0x246   :  { %v2324_v10 = vpack.c.bf16 %v2232_v41, %v2231_v13 }
 0x247   :  { %v2323_v22 = vpack.c.bf16 %v2230_v58, %v2229_v43  ;;  %v4627_v14 = vpop.f32.mrb[136].mxu1 }
 0x248   :  { %v1947_v45 = vadd.f32 %v4627_v14, %v5458_v44  ;;  %v1938_v48 = vpop.f32.mrb[137].mxu1 }
 0x249   :  { %v1939_v19 = vadd.f32 %v1938_v48, %v5458_v44  ;;  %v4628_v21 = vpop.f32.mrb[138].mxu1  ;;  %4753 = vmatprep.mubr.msk.bf16.mxu0 %vm1423_vm2, %v2323_v22 }
 0x24a   :  { %v1950_v8 = vadd.f32 %v4628_v21, %v5458_v44  ;;  %v1941_v53 = vpop.f32.mrb[139].mxu1  ;;  %4754 = vmatmul.mubr.msk.bf16.gmra.mrb[132].mxu0 %vm1423_vm2, %v2324_v10  ;;  %v2235_v28 = vmax.f32 %v1947_v45, 0.0 }
 0x24b   :  { %v1942_v55 = vadd.f32 %v1941_v53, %v5458_v44  ;;  %v2233_v0 = vmax.f32 %v1939_v19, 0.0 }
 0x24c   :  { %v2236_v30 = vmax.f32 %v1950_v8, 0.0 }
 0x24d   :  { %v2234_v20 = vmax.f32 %v1942_v55, 0.0 }
 0x24e   :  { %v2326_v2 = vpack.c.bf16 %v2236_v30, %v2235_v28 }
 0x24f   :  { %v2325_v42 = vpack.c.bf16 %v2234_v20, %v2233_v0  ;;  %v4631_v49 = vpop.f32.mrb[140].mxu1 }
 0x250   :  { %v1963_v29 = vadd.f32 %v4631_v49, %v5458_v44  ;;  %v1954_v23 = vpop.f32.mrb[141].mxu1 }
 0x251   :  { %v1955_v26 = vadd.f32 %v1954_v23, %v5458_v44  ;;  %v4632_v24 = vpop.f32.mrb[142].mxu1  ;;  %4757 = vmatprep.mubr.msk.bf16.mxu0 %vm1423_vm2, %v2325_v42 }
 0x252   :  { %v1966_v7 = vadd.f32 %v4632_v24, %v5458_v44  ;;  %v1957_v25 = vpop.f32.mrb[143].mxu1  ;;  %4758 = vmatmul.mubr.msk.bf16.gmra.mrb[136].mxu0 %vm1423_vm2, %v2326_v2  ;;  %v2239_v31 = vmax.f32 %v1963_v29, 0.0 }
 0x253   :  { %v1958_v27 = vadd.f32 %v1957_v25, %v5458_v44  ;;  %v2237_v33 = vmax.f32 %v1955_v26, 0.0 }
 0x254   :  { %v2240_v32 = vmax.f32 %v1966_v7, 0.0 }
 0x255   :  { %v2238_v34 = vmax.f32 %v1958_v27, 0.0 }
 0x256   :  { %v2328_v37 = vpack.c.bf16 %v2240_v32, %v2239_v31 }
 0x257   :  { %v2327_v38 = vpack.c.bf16 %v2238_v34, %v2237_v33  ;;  %v4635_v39 = vpop.f32.mrb[144].mxu1 }
 0x258   :  { %v1979_v40 = vadd.f32 %v4635_v39, %v5458_v44  ;;  %v1970_v47 = vpop.f32.mrb[145].mxu1 }
 0x259   :  { %v1971_v4 = vadd.f32 %v1970_v47, %v5458_v44  ;;  %v4636_v50 = vpop.f32.mrb[146].mxu1  ;;  %4761 = vmatprep.mubr.msk.bf16.mxu0 %vm1423_vm2, %v2327_v38 }
 0x25a   :  { %v1982_v36 = vadd.f32 %v4636_v50, %v5458_v44  ;;  %v1973_v51 = vpop.f32.mrb[147].mxu1  ;;  %4762 = vmatmul.mubr.msk.bf16.gmra.mrb[140].mxu0 %vm1423_vm2, %v2328_v37  ;;  %v2243_v17 = vmax.f32 %v1979_v40, 0.0 }
 0x25b   :  { %v1974_v52 = vadd.f32 %v1973_v51, %v5458_v44  ;;  %v2241_v56 = vmax.f32 %v1971_v4, 0.0 }
 0x25c   :  { %v2244_v54 = vmax.f32 %v1982_v36, 0.0 }
 0x25d   :  { %v2242_v57 = vmax.f32 %v1974_v52, 0.0 }
 0x25e   :  { %v2330_v60 = vpack.c.bf16 %v2244_v54, %v2243_v17 }
 0x25f   :  { %v2329_v61 = vpack.c.bf16 %v2242_v57, %v2241_v56  ;;  %v4639_v62 = vpop.f32.mrb[148].mxu1 }
 0x260   :  { %v1995_v63 = vadd.f32 %v4639_v62, %v5458_v44  ;;  %v1986_v1 = vpop.f32.mrb[149].mxu1 }
 0x261   :  { %v1987_v35 = vadd.f32 %v1986_v1, %v5458_v44  ;;  %v4640_v15 = vpop.f32.mrb[150].mxu1  ;;  %4765 = vmatprep.mubr.msk.bf16.mxu0 %vm1423_vm2, %v2329_v61 }
 0x262   :  { %v1998_v59 = vadd.f32 %v4640_v15, %v5458_v44  ;;  %v1989_v3 = vpop.f32.mrb[151].mxu1  ;;  %4766 = vmatmul.mubr.msk.bf16.gmra.mrb[144].mxu0 %vm1423_vm2, %v2330_v60  ;;  %v2247_v46 = vmax.f32 %v1995_v63, 0.0 }
 0x263   :  { %v1990_v5 = vadd.f32 %v1989_v3, %v5458_v44  ;;  %v2245_v16 = vmax.f32 %v1987_v35, 0.0 }
 0x264   :  { %v2248_v12 = vmax.f32 %v1998_v59, 0.0 }
 0x265   :  { %v2246_v18 = vmax.f32 %v1990_v5, 0.0 }
 0x266   :  { %v2332_v9 = vpack.c.bf16 %v2248_v12, %v2247_v46 }
 0x267   :  { %v2331_v11 = vpack.c.bf16 %v2246_v18, %v2245_v16  ;;  %v4643_v13 = vpop.f32.mrb[152].mxu1 }
 0x268   :  { %v2011_v41 = vadd.f32 %v4643_v13, %v5458_v44  ;;  %v2002_v43 = vpop.f32.mrb[153].mxu1 }
 0x269   :  { %v2003_v58 = vadd.f32 %v2002_v43, %v5458_v44  ;;  %v4644_v10 = vpop.f32.mrb[154].mxu1  ;;  %4769 = vmatprep.mubr.msk.bf16.mxu0 %vm1423_vm2, %v2331_v11 }
 0x26a   :  { %v2014_v22 = vadd.f32 %v4644_v10, %v5458_v44  ;;  %v2005_v14 = vpop.f32.mrb[155].mxu1  ;;  %4770 = vmatmul.mubr.msk.bf16.gmra.mrb[148].mxu0 %vm1423_vm2, %v2332_v9  ;;  %v2251_v48 = vmax.f32 %v2011_v41, 0.0 }
 0x26b   :  { %v2006_v45 = vadd.f32 %v2005_v14, %v5458_v44  ;;  %v2249_v21 = vmax.f32 %v2003_v58, 0.0 }
 0x26c   :  { %v2252_v19 = vmax.f32 %v2014_v22, 0.0 }
 0x26d   :  { %v2250_v8 = vmax.f32 %v2006_v45, 0.0  ;;  %v2359_v45 = vsub.s32 2, %v5174_v6 }
 0x26e   :  { %v2334_v53 = vpack.c.bf16 %v2252_v19, %v2251_v48 }
 0x26f   :  { %v2333_v55 = vpack.c.bf16 %v2250_v8, %v2249_v21  ;;  %v4647_v28 = vpop.f32.mrb[156].mxu1 }
 0x270   :  { %v2027_v30 = vadd.f32 %v4647_v28, %v5458_v44  ;;  %v2018_v0 = vpop.f32.mrb[157].mxu1 }
 0x271   :  { %v2019_v20 = vadd.f32 %v2018_v0, %v5458_v44  ;;  %v4648_v2 = vpop.f32.mrb[158].mxu1  ;;  %4773 = vmatprep.mubr.msk.bf16.mxu0 %vm1423_vm2, %v2333_v55  ;;  %v4885_v0 = vld [vmem:[%s6024_s2] sm:$0xff] }
 0x272   :  { %v2030_v42 = vadd.f32 %v4648_v2, %v5458_v44  ;;  %v2021_v49 = vpop.f32.mrb[159].mxu1  ;;  %4774 = vmatmul.mubr.msk.bf16.gmra.mrb[152].mxu0 %vm1423_vm2, %v2334_v53  ;;  %v2255_v23 = vmax.f32 %v2027_v30, 0.0  ;;  %v5649_v6 = vrot.slane %v4885_v0, %v2359_v45 }
 0x273   :  { %v2022_v29 = vadd.f32 %v2021_v49, %v5458_v44  ;;  %v2253_v24 = vmax.f32 %v2019_v20, 0.0 }
 0x274   :  { %v2256_v26 = vmax.f32 %v2030_v42, 0.0 }
 0x275   :  { %v2254_v7 = vmax.f32 %v2022_v29, 0.0 }
 0x276   :  { %v2336_v25 = vpack.c.bf16 %v2256_v26, %v2255_v23 }
 0x277   :  { %v2335_v27 = vpack.c.bf16 %v2254_v7, %v2253_v24  ;;  %v4651_v31 = vpop.f32.mrb[160].mxu1 }
 0x278   :  { %v2043_v32 = vadd.f32 %v4651_v31, %v5458_v44  ;;  %v2034_v33 = vpop.f32.mrb[161].mxu1 }
 0x279   :  { %v2035_v34 = vadd.f32 %v2034_v33, %v5458_v44  ;;  %v4652_v37 = vpop.f32.mrb[162].mxu1  ;;  %4777 = vmatprep.mubr.msk.bf16.mxu0 %vm1423_vm2, %v2335_v27 }
 0x27a   :  { %v2046_v38 = vadd.f32 %v4652_v37, %v5458_v44  ;;  %v2037_v39 = vpop.f32.mrb[163].mxu1  ;;  %4778 = vmatmul.mubr.msk.bf16.gmra.mrb[156].mxu0 %vm1423_vm2, %v2336_v25  ;;  %v2259_v47 = vmax.f32 %v2043_v32, 0.0 }
 0x27b   :  { %v2038_v40 = vadd.f32 %v2037_v39, %v5458_v44  ;;  %v2257_v50 = vmax.f32 %v2035_v34, 0.0 }
 0x27c   :  { %v2260_v4 = vmax.f32 %v2046_v38, 0.0 }
 0x27d   :  { %v2258_v36 = vmax.f32 %v2038_v40, 0.0 }
 0x27e   :  { %v2338_v51 = vpack.c.bf16 %v2260_v4, %v2259_v47 }
 0x27f   :  { %v2337_v52 = vpack.c.bf16 %v2258_v36, %v2257_v50  ;;  %v4655_v17 = vpop.f32.mrb[164].mxu1 }
 0x280   :  { %v2059_v54 = vadd.f32 %v4655_v17, %v5458_v44  ;;  %v2050_v56 = vpop.f32.mrb[165].mxu1 }
 0x281   :  { %v2051_v57 = vadd.f32 %v2050_v56, %v5458_v44  ;;  %v4656_v60 = vpop.f32.mrb[166].mxu1  ;;  %4781 = vmatprep.mubr.msk.bf16.mxu0 %vm1423_vm2, %v2337_v52 }
 0x282   :  { %v2062_v61 = vadd.f32 %v4656_v60, %v5458_v44  ;;  %v2053_v62 = vpop.f32.mrb[167].mxu1  ;;  %4782 = vmatmul.mubr.msk.bf16.gmra.mrb[160].mxu0 %vm1423_vm2, %v2338_v51  ;;  %v2263_v1 = vmax.f32 %v2059_v54, 0.0 }
 0x283   :  { %v2054_v63 = vadd.f32 %v2053_v62, %v5458_v44  ;;  %v2261_v15 = vmax.f32 %v2051_v57, 0.0 }
 0x284   :  { %v2264_v35 = vmax.f32 %v2062_v61, 0.0 }
 0x285   :  { %v2262_v59 = vmax.f32 %v2054_v63, 0.0 }
 0x286   :  { %v2340_v3 = vpack.c.bf16 %v2264_v35, %v2263_v1 }
 0x287   :  { %v2339_v5 = vpack.c.bf16 %v2262_v59, %v2261_v15  ;;  %v4659_v46 = vpop.f32.mrb[168].mxu1 }
 0x288   :  { %v2075_v12 = vadd.f32 %v4659_v46, %v5458_v44  ;;  %v2066_v16 = vpop.f32.mrb[169].mxu1 }
 0x289   :  { %v2067_v18 = vadd.f32 %v2066_v16, %v5458_v44  ;;  %v4660_v9 = vpop.f32.mrb[170].mxu1  ;;  %4785 = vmatprep.mubr.msk.bf16.mxu0 %vm1423_vm2, %v2339_v5 }
 0x28a   :  { %v2078_v11 = vadd.f32 %v4660_v9, %v5458_v44  ;;  %v2069_v13 = vpop.f32.mrb[171].mxu1  ;;  %4786 = vmatmul.mubr.msk.bf16.gmra.mrb[164].mxu0 %vm1423_vm2, %v2340_v3  ;;  %v2267_v43 = vmax.f32 %v2075_v12, 0.0 }
 0x28b   :  { %v2070_v41 = vadd.f32 %v2069_v13, %v5458_v44  ;;  %v2265_v10 = vmax.f32 %v2067_v18, 0.0 }
 0x28c   :  { %v2268_v58 = vmax.f32 %v2078_v11, 0.0 }
 0x28d   :  { %v2266_v22 = vmax.f32 %v2070_v41, 0.0 }
 0x28e   :  { %v2342_v14 = vpack.c.bf16 %v2268_v58, %v2267_v43 }
 0x28f   :  { %v2341_v48 = vpack.c.bf16 %v2266_v22, %v2265_v10  ;;  %v4663_v19 = vpop.f32.mrb[172].mxu1 }
 0x290   :  { %v2091_v21 = vadd.f32 %v4663_v19, %v5458_v44  ;;  %v2082_v8 = vpop.f32.mrb[173].mxu1 }
 0x291   :  { %v2083_v53 = vadd.f32 %v2082_v8, %v5458_v44  ;;  %v4664_v55 = vpop.f32.mrb[174].mxu1  ;;  %4789 = vmatprep.mubr.msk.bf16.mxu0 %vm1423_vm2, %v2341_v48 }
 0x292   :  { %v2094_v28 = vadd.f32 %v4664_v55, %v5458_v44  ;;  %v2085_v30 = vpop.f32.mrb[175].mxu1  ;;  %4790 = vmatmul.mubr.msk.bf16.gmra.mrb[168].mxu0 %vm1423_vm2, %v2342_v14  ;;  %v2271_v2 = vmax.f32 %v2091_v21, 0.0 }
 0x293   :  { %v2086_v20 = vadd.f32 %v2085_v30, %v5458_v44  ;;  %v2269_v49 = vmax.f32 %v2083_v53, 0.0 }
 0x294   :  { %v2272_v42 = vmax.f32 %v2094_v28, 0.0 }
 0x295   :  { %v2270_v29 = vmax.f32 %v2086_v20, 0.0  ;;  %v4687_v23 = vpop.f32.mrb[64].mxu0 }
 0x296   :  { %v2344_v26 = vpack.c.bf16 %v2272_v42, %v2271_v2  ;;  %v2608_v24 = vadd.f32 %v4687_v23, %v5649_v6  ;;  %v2599_v7 = vpop.f32.mrb[65].mxu0 }
 0x297   :  { %v2343_v25 = vpack.c.bf16 %v2270_v29, %v2269_v49  ;;  %v2600_v27 = vadd.f32 %v2599_v7, %v5649_v6  ;;  %v4667_v31 = vpop.f32.mrb[176].mxu1  ;;  %v4688_v32 = vpop.f32.mrb[66].mxu0 }
 0x298   :  { %v3112_v33 = vmax.f32 %v2608_v24, 0.0  ;;  %v2107_v34 = vadd.f32 %v4667_v31, %v5458_v44  ;;  %v2611_v37 = vadd.f32 %v4688_v32, %v5649_v6  ;;  %v2098_v38 = vpop.f32.mrb[177].mxu1  ;;  %v2602_v39 = vpop.f32.mrb[67].mxu0 }
 0x299   :  { %v3110_v40 = vmax.f32 %v2600_v27, 0.0  ;;  %v2099_v47 = vadd.f32 %v2098_v38, %v5458_v44  ;;  %v2603_v4 = vadd.f32 %v2602_v39, %v5649_v6  ;;  %v4668_v50 = vpop.f32.mrb[178].mxu1  ;;  %4793 = vmatprep.mubr.msk.bf16.mxu0 %vm1423_vm2, %v2343_v25 }
 0x29a   :  { %v3113_v36 = vmax.f32 %v2611_v37, 0.0  ;;  %v2110_v51 = vadd.f32 %v4668_v50, %v5458_v44  ;;  %v2101_v52 = vpop.f32.mrb[179].mxu1  ;;  %4794 = vmatmul.mubr.msk.bf16.gmra.mrb[172].mxu0 %vm1423_vm2, %v2344_v26  ;;  %v3248_v17 = vsel %vm3238_vm3, %v3112_v33, -inf  ;;  %v2275_v60 = vmax.f32 %v2107_v34, 0.0 }
 0x29b   :  { %v3111_v54 = vmax.f32 %v2603_v4, 0.0  ;;  %v2102_v56 = vadd.f32 %v2101_v52, %v5458_v44  ;;  %v3239_v57 = vsel %vm3238_vm3, %v3110_v40, -inf  ;;  %v2273_v1 = vmax.f32 %v2099_v47, 0.0 }
 0x29c   :  { %v3249_v61 = vsel %vm3238_vm3, %v3113_v36, -inf  ;;  %v2276_v62 = vmax.f32 %v2110_v51, 0.0 }
 0x29d   :  { %v3250_v63 = vmax.f32 %v3248_v17, %v3249_v61  ;;  %v3240_v35 = vsel %vm3238_vm3, %v3111_v54, -inf  ;;  %v2274_v15 = vmax.f32 %v2102_v56, 0.0  ;;  %v4691_v59 = vpop.f32.mrb[68].mxu0 }
 0x29e   :  { %v3241_v3 = vmax.f32 %v3239_v57, %v3240_v35  ;;  %v2346_v5 = vpack.c.bf16 %v2276_v62, %v2275_v60  ;;  %v2624_v46 = vadd.f32 %v4691_v59, %v5649_v6  ;;  %v2615_v12 = vpop.f32.mrb[69].mxu0 }
 0x29f   :  { %v3251_v16 = vrot.slane %v3250_v63, 4  ;;  %v2345_v18 = vpack.c.bf16 %v2274_v15, %v2273_v1  ;;  %v2616_v9 = vadd.f32 %v2615_v12, %v5649_v6  ;;  %v4671_v11 = vpop.f32.mrb[180].mxu1  ;;  %v4692_v13 = vpop.f32.mrb[70].mxu0 }
 0x2a0   :  { %v3242_v41 = vrot.slane %v3241_v3, 4  ;;  %v3116_v43 = vmax.f32 %v2624_v46, 0.0  ;;  %v2123_v58 = vadd.f32 %v4671_v11, %v5458_v44  ;;  %v2627_v10 = vadd.f32 %v4692_v13, %v5649_v6  ;;  %v2114_v22 = vpop.f32.mrb[181].mxu1  ;;  %v2618_v14 = vpop.f32.mrb[71].mxu0 }
 0x2a1   :  { %v3252_v45 = vmax.f32 %v3250_v63, %v3251_v16  ;;  %v3114_v48 = vmax.f32 %v2616_v9, 0.0  ;;  %v2115_v19 = vadd.f32 %v2114_v22, %v5458_v44  ;;  %v2619_v21 = vadd.f32 %v2618_v14, %v5649_v6  ;;  %v4672_v8 = vpop.f32.mrb[182].mxu1  ;;  %4797 = vmatprep.mubr.msk.bf16.mxu0 %vm1423_vm2, %v2345_v18 }
 0x2a2   :  { %v3243_v53 = vmax.f32 %v3241_v3, %v3242_v41  ;;  %v3266_v55 = vsel %vm3238_vm3, %v3116_v43, -inf  ;;  %v3117_v28 = vmax.f32 %v2627_v10, 0.0  ;;  %v2117_v30 = vpop.f32.mrb[183].mxu1  ;;  %4798 = vmatmul.mubr.msk.bf16.gmra.mrb[176].mxu0 %vm1423_vm2, %v2346_v5  ;;  %v2279_v2 = vmax.f32 %v2123_v58, 0.0 }
 0x2a3   :  { %v3253_v0 = vrot.slane %v3252_v45, 2  ;;  %v3257_v20 = vsel %vm3238_vm3, %v3114_v48, -inf  ;;  %v3115_v42 = vmax.f32 %v2619_v21, 0.0  ;;  %v2126_v23 = vadd.f32 %v4672_v8, %v5458_v44 }
 0x2a4   :  { %v3244_v49 = vrot.slane %v3243_v53, 2  ;;  %v3267_v29 = vsel %vm3238_vm3, %v3117_v28, -inf  ;;  %v2118_v26 = vadd.f32 %v2117_v30, %v5458_v44  ;;  %v2277_v25 = vmax.f32 %v2115_v19, 0.0 }
 0x2a5   :  { %v3254_v24 = vmax.f32 %v3252_v45, %v3253_v0  ;;  %v3268_v7 = vmax.f32 %v3266_v55, %v3267_v29  ;;  %v3258_v27 = vsel %vm3238_vm3, %v3115_v42, -inf  ;;  %v4695_v31 = vpop.f32.mrb[72].mxu0  ;;  %v2280_v34 = vmax.f32 %v2126_v23, 0.0 }
 0x2a6   :  { %v3245_v32 = vmax.f32 %v3243_v53, %v3244_v49  ;;  %v3259_v33 = vmax.f32 %v3257_v20, %v3258_v27  ;;  %v2278_v37 = vmax.f32 %v2118_v26, 0.0  ;;  %v2631_v38 = vpop.f32.mrb[73].mxu0  ;;  %v2640_v47 = vadd.f32 %v4695_v31, %v5649_v6 }
 0x2a7   :  { %v3255_v39 = vrot.slane %v3254_v24, 1  ;;  %v3269_v40 = vrot.slane %v3268_v7, 4  ;;  %v2632_v4 = vadd.f32 %v2631_v38, %v5649_v6  ;;  %v4675_v50 = vpop.f32.mrb[184].mxu1  ;;  %v4696_v36 = vpop.f32.mrb[74].mxu0  ;;  %v2348_v17 = vpack.c.bf16 %v2280_v34, %v2279_v2 }
 0x2a8   :  { %v3246_v51 = vrot.slane %v3245_v32, 1  ;;  %v3260_v52 = vrot.slane %v3259_v33, 4  ;;  %v2347_v54 = vpack.c.bf16 %v2278_v37, %v2277_v25  ;;  %v2130_v56 = vpop.f32.mrb[185].mxu1  ;;  %v2634_v57 = vpop.f32.mrb[75].mxu0  ;;  %v3120_v62 = vmax.f32 %v2640_v47, 0.0 }
 0x2a9   :  { %v3256_v60 = vmax.f32 %v3254_v24, %v3255_v39  ;;  %v3270_v61 = vmax.f32 %v3268_v7, %v3269_v40  ;;  %v4676_v63 = vpop.f32.mrb[186].mxu1  ;;  %v2139_v15 = vadd.f32 %v4675_v50, %v5458_v44  ;;  %v2643_v59 = vadd.f32 %v4696_v36, %v5649_v6 }
 0x2aa   :  { %v3247_v1 = vmax.f32 %v3245_v32, %v3246_v51  ;;  %v3261_v35 = vmax.f32 %v3259_v33, %v3260_v52  ;;  %4801 = vmatprep.mubr.msk.bf16.mxu0 %vm1423_vm2, %v2347_v54  ;;  %v2133_v3 = vpop.f32.mrb[187].mxu1  ;;  %v3284_v46 = vsel %vm3238_vm3, %v3120_v62, -inf  ;;  %v3118_v12 = vmax.f32 %v2632_v4, 0.0 }
 0x2ab   :  { %v3271_v5 = vrot.slane %v3270_v61, 2  ;;  %v2131_v16 = vadd.f32 %v2130_v56, %v5458_v44  ;;  %4802 = vmatmul.mubr.msk.bf16.gmra.mrb[180].mxu0 %vm1423_vm2, %v2348_v17  ;;  %v2283_v11 = vmax.f32 %v2139_v15, 0.0  ;;  %v3121_v13 = vmax.f32 %v2643_v59, 0.0 }
 0x2ac   :  { %v3880_v18 = vsel %vm3879_vm4, %v3256_v60, %v3247_v1  ;;  %v3262_v9 = vrot.slane %v3261_v35, 2  ;;  %v2635_v58 = vadd.f32 %v2634_v57, %v5649_v6  ;;  %v2142_v10 = vadd.f32 %v4676_v63, %v5458_v44 }
 0x2ad   :  { %v3272_v41 = vmax.f32 %v3270_v61, %v3271_v5  ;;  %v2281_v43 = vmax.f32 %v2131_v16, 0.0  ;;  %v4699_v22 = vpop.f32.mrb[76].mxu0  ;;  %v3285_v45 = vsel %vm3238_vm3, %v3121_v13, -inf  ;;  %v2134_v48 = vadd.f32 %v2133_v3, %v5458_v44 }
 0x2ae   :  { %v3263_v14 = vmax.f32 %v3261_v35, %v3262_v9  ;;  %v2656_v19 = vadd.f32 %v4699_v22, %v5649_v6  ;;  %v2647_v21 = vpop.f32.mrb[77].mxu0  ;;  %v3286_v53 = vmax.f32 %v3284_v46, %v3285_v45  ;;  %v3119_v55 = vmax.f32 %v2635_v58, 0.0 }
 0x2af   :  { %v3273_v8 = vrot.slane %v3272_v41, 1  ;;  %v2284_v28 = vmax.f32 %v2142_v10, 0.0  ;;  %v4679_v30 = vpop.f32.mrb[188].mxu1  ;;  %v4700_v0 = vpop.f32.mrb[78].mxu0  ;;  %v2282_v2 = vmax.f32 %v2134_v48, 0.0  ;;  %v2648_v49 = vadd.f32 %v2647_v21, %v5649_v6 }
 0x2b0   :  { %v3264_v20 = vrot.slane %v3263_v14, 1  ;;  %v3124_v42 = vmax.f32 %v2656_v19, 0.0  ;;  %v2146_v29 = vpop.f32.mrb[189].mxu1  ;;  %v2650_v23 = vpop.f32.mrb[79].mxu0  ;;  %v3275_v26 = vsel %vm3238_vm3, %v3118_v12, -inf  ;;  %v3287_v24 = vrot.slane %v3286_v53, 4 }
 0x2b1   :  { %v3276_v7 = vsel %vm3238_vm3, %v3119_v55, -inf  ;;  %v2350_v25 = vpack.c.bf16 %v2284_v28, %v2283_v11  ;;  %v4680_v27 = vpop.f32.mrb[190].mxu1  ;;  %v3274_v31 = vmax.f32 %v3272_v41, %v3273_v8  ;;  %v2349_v34 = vpack.c.bf16 %v2282_v2, %v2281_v43 }
 0x2b2   :  { %v3265_v32 = vmax.f32 %v3263_v14, %v3264_v20  ;;  %v3277_v33 = vmax.f32 %v3275_v26, %v3276_v7  ;;  %v2149_v37 = vpop.f32.mrb[191].mxu1  ;;  %v3288_v38 = vmax.f32 %v3286_v53, %v3287_v24  ;;  %v3122_v39 = vmax.f32 %v2648_v49, 0.0 }
 0x2b3   :  { %v2155_v40 = vadd.f32 %v4679_v30, %v5458_v44  ;;  %v2659_v47 = vadd.f32 %v4700_v0, %v5649_v6  ;;  %v3302_v36 = vsel %vm3238_vm3, %v3124_v42, -inf  ;;  %v2651_v51 = vadd.f32 %v2650_v23, %v5649_v6  ;;  %4805 = vmatprep.mubr.msk.bf16.mxu0 %vm1423_vm2, %v2349_v34 }
 0x2b4   :  { %v3882_v4 = vsel %vm3881_vm5, %v3265_v32, %v3880_v18  ;;  %v3278_v50 = vrot.slane %v3277_v33, 4  ;;  %v3289_v52 = vrot.slane %v3288_v38, 2  ;;  %v3293_v54 = vsel %vm3238_vm3, %v3122_v39, -inf  ;;  %4806 = vmatmul.mubr.msk.bf16.gmra.mrb[184].mxu0 %vm1423_vm2, %v2350_v25 }
 0x2b5   :  { %v3884_v17 = vsel %vm3883_vm6, %v3274_v31, %v3882_v4  ;;  %v2147_v56 = vadd.f32 %v2146_v29, %v5458_v44  ;;  %v4703_v57 = vpop.f32.mrb[80].mxu0  ;;  %v2287_v61 = vmax.f32 %v2155_v40, 0.0  ;;  %v3125_v62 = vmax.f32 %v2659_v47, 0.0 }
 0x2b6   :  { %v3279_v60 = vmax.f32 %v3277_v33, %v3278_v50  ;;  %v3123_v63 = vmax.f32 %v2651_v51, 0.0  ;;  %v2663_v1 = vpop.f32.mrb[81].mxu0  ;;  %v3290_v35 = vmax.f32 %v3288_v38, %v3289_v52  ;;  %v2158_v15 = vadd.f32 %v4680_v27, %v5458_v44 }
 0x2b7   :  { %v2150_v59 = vadd.f32 %v2149_v37, %v5458_v44  ;;  %v2672_v3 = vadd.f32 %v4703_v57, %v5649_v6  ;;  %v4704_v5 = vpop.f32.mrb[82].mxu0  ;;  %v3303_v12 = vsel %vm3238_vm3, %v3125_v62, -inf  ;;  %v2664_v18 = vadd.f32 %v2663_v1, %v5649_v6 }
 0x2b8   :  { %v3280_v46 = vrot.slane %v3279_v60, 2  ;;  %v3294_v16 = vsel %vm3238_vm3, %v3123_v63, -inf  ;;  %v2666_v9 = vpop.f32.mrb[83].mxu0  ;;  %v3304_v11 = vmax.f32 %v3302_v36, %v3303_v12  ;;  %v2285_v13 = vmax.f32 %v2147_v56, 0.0 }
 0x2b9   :  { %v3295_v41 = vmax.f32 %v3293_v54, %v3294_v16  ;;  %v2288_v43 = vmax.f32 %v2158_v15, 0.0  ;;  %v3291_v58 = vrot.slane %v3290_v35, 1  ;;  %v2286_v22 = vmax.f32 %v2150_v59, 0.0 }
 0x2ba   :  { %v3281_v10 = vmax.f32 %v3279_v60, %v3280_v46  ;;  %v3128_v14 = vmax.f32 %v2672_v3, 0.0  ;;  %v3305_v44 = vrot.slane %v3304_v11, 4  ;;  %v3126_v8 = vmax.f32 %v2664_v18, 0.0 }
 0x2bb   :  { %v3296_v45 = vrot.slane %v3295_v41, 4  ;;  %v2352_v48 = vpack.c.bf16 %v2288_v43, %v2287_v61  ;;  %v2351_v21 = vpack.c.bf16 %v2286_v22, %v2285_v13  ;;  %v2675_v28 = vadd.f32 %v4704_v5, %v5649_v6 }
 0x2bc   :  { %v3282_v19 = vrot.slane %v3281_v10, 1  ;;  %v3306_v53 = vmax.f32 %v3304_v11, %v3305_v44  ;;  %v2667_v30 = vadd.f32 %v2666_v9, %v5649_v6  ;;  %v3292_v20 = vmax.f32 %v3290_v35, %v3291_v58 }
 0x2bd   :  { %v3297_v55 = vmax.f32 %v3295_v41, %v3296_v45  ;;  %v4707_v0 = vpop.f32.mrb[84].mxu0  ;;  %v3320_v42 = vsel %vm3238_vm3, %v3128_v14, -inf  ;;  %4809 = vmatprep.mubr.msk.bf16.mxu0 %vm1423_vm2, %v2351_v21  ;;  %v3129_v24 = vmax.f32 %v2675_v28, 0.0  ;;  %v3311_v47 = vsel %vm3238_vm3, %v3126_v8, -inf }
 0x2be   :  { %v3283_v2 = vmax.f32 %v3281_v10, %v3282_v19  ;;  %v2688_v49 = vadd.f32 %v4707_v0, %v5649_v6  ;;  %v2679_v29 = vpop.f32.mrb[85].mxu0  ;;  %v3307_v23 = vrot.slane %v3306_v53, 2  ;;  %v3127_v7 = vmax.f32 %v2667_v30, 0.0  ;;  %4810 = vmatmul.mubr.msk.bf16.gmra.mrb[188].mxu0 %vm1423_vm2, %v2352_v48 }
 0x2bf   :  { %v3298_v26 = vrot.slane %v3297_v55, 2  ;;  %v4708_v25 = vpop.f32.mrb[86].mxu0  ;;  %v2680_v32 = vadd.f32 %v2679_v29, %v5649_v6  ;;  %v3321_v40 = vsel %vm3238_vm3, %v3129_v24, -inf }
 0x2c0   :  { %v3886_v27 = vsel %vm3885_vm7, %v3283_v2, %v3884_v17  ;;  %v3132_v31 = vmax.f32 %v2688_v49, 0.0  ;;  %v2691_v33 = vadd.f32 %v4708_v25, %v5649_v6  ;;  %v2682_v34 = vpop.f32.mrb[87].mxu0  ;;  %v3308_v37 = vmax.f32 %v3306_v53, %v3307_v23 }
 0x2c1   :  { %v3299_v38 = vmax.f32 %v3297_v55, %v3298_v26  ;;  %v3888_v39 = vsel %vm3887_vm8, %v3292_v20, %v3886_v27  ;;  %v3322_v4 = vmax.f32 %v3320_v42, %v3321_v40  ;;  %v3312_v50 = vsel %vm3238_vm3, %v3127_v7, -inf }
 0x2c2   :  { %v3130_v36 = vmax.f32 %v2680_v32, 0.0  ;;  %v3309_v51 = vrot.slane %v3308_v37, 1  ;;  %v3313_v17 = vmax.f32 %v3311_v47, %v3312_v50  ;;  %v3133_v54 = vmax.f32 %v2691_v33, 0.0 }
 0x2c3   :  { %v3300_v52 = vrot.slane %v3299_v38, 1  ;;  %v3323_v56 = vrot.slane %v3322_v4, 4  ;;  %v3338_v57 = vsel %vm3238_vm3, %v3132_v31, -inf  ;;  %v2683_v60 = vadd.f32 %v2682_v34, %v5649_v6 }
 0x2c4   :  { %v3310_v61 = vmax.f32 %v3308_v37, %v3309_v51  ;;  %v3314_v63 = vrot.slane %v3313_v17, 4  ;;  %v3339_v1 = vsel %vm3238_vm3, %v3133_v54, -inf  ;;  %v3329_v18 = vsel %vm3238_vm3, %v3130_v36, -inf }
 0x2c5   :  { %v3301_v62 = vmax.f32 %v3299_v38, %v3300_v52  ;;  %v4711_v35 = vpop.f32.mrb[88].mxu0  ;;  %v3324_v15 = vmax.f32 %v3322_v4, %v3323_v56  ;;  %v3340_v59 = vmax.f32 %v3338_v57, %v3339_v1  ;;  %v3131_v3 = vmax.f32 %v2683_v60, 0.0 }
 0x2c6   :  { %v2704_v5 = vadd.f32 %v4711_v35, %v5649_v6  ;;  %v2695_v46 = vpop.f32.mrb[89].mxu0  ;;  %v3315_v16 = vmax.f32 %v3313_v17, %v3314_v63 }
 0x2c7   :  { %v3890_v12 = vsel %vm3889_vm9, %v3301_v62, %v3888_v39  ;;  %v2696_v9 = vadd.f32 %v2695_v46, %v5649_v6  ;;  %v4712_v11 = vpop.f32.mrb[90].mxu0  ;;  %v3325_v41 = vrot.slane %v3324_v15, 2  ;;  %v3341_v43 = vrot.slane %v3340_v59, 4 }
 0x2c8   :  { %v3892_v13 = vsel %vm3891_vm10, %v3310_v61, %v3890_v12  ;;  %v3330_v58 = vsel %vm3238_vm3, %v3131_v3, -inf  ;;  %v2698_v10 = vpop.f32.mrb[91].mxu0  ;;  %v3316_v22 = vrot.slane %v3315_v16, 2  ;;  %v3136_v44 = vmax.f32 %v2704_v5, 0.0 }
 0x2c9   :  { %3950 = vst.msk [vmem:[%s6025_s3] sm:$0xff] %vm3238_vm3, %v3892_v13  ;;  %v3331_v14 = vmax.f32 %v3329_v18, %v3330_v58  ;;  %v3134_v45 = vmax.f32 %v2696_v9, 0.0  ;;  %v3326_v48 = vmax.f32 %v3324_v15, %v3325_v41  ;;  %v3342_v19 = vmax.f32 %v3340_v59, %v3341_v43 }
 0x2ca   :  { %v2707_v21 = vadd.f32 %v4712_v11, %v5649_v6  ;;  %v2699_v8 = vadd.f32 %v2698_v10, %v5649_v6  ;;  %v3317_v53 = vmax.f32 %v3315_v16, %v3316_v22  ;;  %v3356_v49 = vsel %vm3238_vm3, %v3136_v44, -inf }
 0x2cb   :  { %v3332_v55 = vrot.slane %v3331_v14, 4  ;;  %v3327_v28 = vrot.slane %v3326_v48, 1  ;;  %v3343_v30 = vrot.slane %v3342_v19, 2  ;;  %v3347_v29 = vsel %vm3238_vm3, %v3134_v45, -inf }
 0x2cc   :  { %v3137_v0 = vmax.f32 %v2707_v21, 0.0  ;;  %v3135_v20 = vmax.f32 %v2699_v8, 0.0  ;;  %v3318_v2 = vrot.slane %v3317_v53, 1 }
 0x2cd   :  { %v3333_v42 = vmax.f32 %v3331_v14, %v3332_v55  ;;  %v4715_v23 = vpop.f32.mrb[92].mxu0  ;;  %v3328_v26 = vmax.f32 %v3326_v48, %v3327_v28  ;;  %v3344_v24 = vmax.f32 %v3342_v19, %v3343_v30 }
 0x2ce   :  { %v3357_v7 = vsel %vm3238_vm3, %v3137_v0, -inf  ;;  %v3348_v25 = vsel %vm3238_vm3, %v3135_v20, -inf  ;;  %v2711_v27 = vpop.f32.mrb[93].mxu0  ;;  %v3319_v31 = vmax.f32 %v3317_v53, %v3318_v2  ;;  %v2720_v38 = vadd.f32 %v4715_v23, %v5649_v6 }
 0x2cf   :  { %v3334_v32 = vrot.slane %v3333_v42, 2  ;;  %v3358_v33 = vmax.f32 %v3356_v49, %v3357_v7  ;;  %v3349_v34 = vmax.f32 %v3347_v29, %v3348_v25  ;;  %v4716_v37 = vpop.f32.mrb[94].mxu0  ;;  %v2712_v39 = vadd.f32 %v2711_v27, %v5649_v6 }
 0x2d0   :  { %v2723_v40 = vadd.f32 %v4716_v37, %v5649_v6  ;;  %v2714_v47 = vpop.f32.mrb[95].mxu0  ;;  %v3893_v4 = vsel %vm3879_vm4, %v3328_v26, %v3319_v31  ;;  %v3345_v52 = vrot.slane %v3344_v24, 1  ;;  %v3140_v17 = vmax.f32 %v2720_v38, 0.0 }
 0x2d1   :  { %v3335_v50 = vmax.f32 %v3333_v42, %v3334_v32  ;;  %v3359_v36 = vrot.slane %v3358_v33, 4  ;;  %v3350_v51 = vrot.slane %v3349_v34, 4  ;;  %v3138_v54 = vmax.f32 %v2712_v39, 0.0 }
 0x2d2   :  { %v3141_v56 = vmax.f32 %v2723_v40, 0.0  ;;  %v2715_v62 = vadd.f32 %v2714_v47, %v5649_v6  ;;  %v3374_v63 = vsel %vm3238_vm3, %v3140_v17, -inf  ;;  %v3346_v46 = vmax.f32 %v3344_v24, %v3345_v52 }
 0x2d3   :  { %v3336_v57 = vrot.slane %v3335_v50, 1  ;;  %v3360_v60 = vmax.f32 %v3358_v33, %v3359_v36  ;;  %v3351_v61 = vmax.f32 %v3349_v34, %v3350_v51  ;;  %v3365_v12 = vsel %vm3238_vm3, %v3138_v54, -inf }
 0x2d4   :  { %v3375_v1 = vsel %vm3238_vm3, %v3141_v56, -inf  ;;  %v3139_v16 = vmax.f32 %v2715_v62, 0.0 }
 0x2d5   :  { %v3337_v35 = vmax.f32 %v3335_v50, %v3336_v57  ;;  %v3361_v15 = vrot.slane %v3360_v60, 2  ;;  %v3352_v59 = vrot.slane %v3351_v61, 2  ;;  %v3376_v3 = vmax.f32 %v3374_v63, %v3375_v1  ;;  %v4719_v5 = vpop.f32.mrb[96].mxu0 }
 0x2d6   :  { %v2736_v18 = vadd.f32 %v4719_v5, %v5649_v6  ;;  %v2727_v9 = vpop.f32.mrb[97].mxu0  ;;  %v3366_v22 = vsel %vm3238_vm3, %v3139_v16, -inf }
 0x2d7   :  { %v3894_v11 = vsel %vm3881_vm5, %v3337_v35, %v3893_v4  ;;  %v3362_v13 = vmax.f32 %v3360_v60, %v3361_v15  ;;  %v3353_v41 = vmax.f32 %v3351_v61, %v3352_v59  ;;  %v3377_v43 = vrot.slane %v3376_v3, 4  ;;  %v4720_v58 = vpop.f32.mrb[98].mxu0 }
 0x2d8   :  { %v3895_v10 = vsel %vm3883_vm6, %v3346_v46, %v3894_v11  ;;  %v3144_v14 = vmax.f32 %v2736_v18, 0.0  ;;  %v2728_v44 = vadd.f32 %v2727_v9, %v5649_v6  ;;  %v2730_v45 = vpop.f32.mrb[99].mxu0  ;;  %v3367_v8 = vmax.f32 %v3365_v12, %v3366_v22 }
 0x2d9   :  { %v3363_v48 = vrot.slane %v3362_v13, 1  ;;  %v3354_v19 = vrot.slane %v3353_v41, 1  ;;  %v3378_v21 = vmax.f32 %v3376_v3, %v3377_v43  ;;  %v2739_v55 = vadd.f32 %v4720_v58, %v5649_v6 }
 0x2da   :  { %v3142_v53 = vmax.f32 %v2728_v44, 0.0  ;;  %v2731_v28 = vadd.f32 %v2730_v45, %v5649_v6  ;;  %v3368_v20 = vrot.slane %v3367_v8, 4  ;;  %v3392_v42 = vsel %vm3238_vm3, %v3144_v14, -inf }
 0x2db   :  { %v3355_v30 = vmax.f32 %v3353_v41, %v3354_v19  ;;  %v3379_v0 = vrot.slane %v3378_v21, 2  ;;  %v3364_v2 = vmax.f32 %v3362_v13, %v3363_v48  ;;  %v3145_v49 = vmax.f32 %v2739_v55, 0.0 }
 0x2dc   :  { %v3143_v29 = vmax.f32 %v2731_v28, 0.0  ;;  %v3369_v24 = vmax.f32 %v3367_v8, %v3368_v20  ;;  %v3383_v7 = vsel %vm3238_vm3, %v3142_v53, -inf }
 0x2dd   :  { %v3896_v23 = vsel %vm3885_vm7, %v3355_v30, %v3895_v10  ;;  %v3380_v26 = vmax.f32 %v3378_v21, %v3379_v0  ;;  %v4723_v25 = vpop.f32.mrb[100].mxu0  ;;  %v3393_v31 = vsel %vm3238_vm3, %v3145_v49, -inf }
 0x2de   :  { %v3897_v27 = vsel %vm3887_vm8, %v3364_v2, %v3896_v23  ;;  %v3384_v32 = vsel %vm3238_vm3, %v3143_v29, -inf  ;;  %v2752_v33 = vadd.f32 %v4723_v25, %v5649_v6  ;;  %v2743_v34 = vpop.f32.mrb[101].mxu0  ;;  %v3370_v37 = vrot.slane %v3369_v24, 2 }
 0x2df   :  { %v3394_v38 = vmax.f32 %v3392_v42, %v3393_v31  ;;  %v3385_v39 = vmax.f32 %v3383_v7, %v3384_v32  ;;  %v4724_v40 = vpop.f32.mrb[102].mxu0  ;;  %v2744_v4 = vadd.f32 %v2743_v34, %v5649_v6  ;;  %v3381_v54 = vrot.slane %v3380_v26, 1 }
 0x2e0   :  { %v3148_v47 = vmax.f32 %v2752_v33, 0.0  ;;  %v2755_v50 = vadd.f32 %v4724_v40, %v5649_v6  ;;  %v2746_v36 = vpop.f32.mrb[103].mxu0  ;;  %v3371_v51 = vmax.f32 %v3369_v24, %v3370_v37 }
 0x2e1   :  { %v3395_v52 = vrot.slane %v3394_v38, 4  ;;  %v3386_v17 = vrot.slane %v3385_v39, 4  ;;  %v3146_v56 = vmax.f32 %v2744_v4, 0.0  ;;  %v2747_v60 = vadd.f32 %v2746_v36, %v5649_v6 }
 0x2e2   :  { %v3149_v57 = vmax.f32 %v2755_v50, 0.0  ;;  %v3372_v61 = vrot.slane %v3371_v51, 1  ;;  %v3410_v1 = vsel %vm3238_vm3, %v3148_v47, -inf  ;;  %v3382_v16 = vmax.f32 %v3380_v26, %v3381_v54 }
 0x2e3   :  { %v3396_v62 = vmax.f32 %v3394_v38, %v3395_v52  ;;  %v3387_v63 = vmax.f32 %v3385_v39, %v3386_v17  ;;  %v3147_v15 = vmax.f32 %v2747_v60, 0.0  ;;  %v3401_v18 = vsel %vm3238_vm3, %v3146_v56, -inf }
 0x2e4   :  { %v3411_v35 = vsel %vm3238_vm3, %v3149_v57, -inf  ;;  %v3373_v59 = vmax.f32 %v3371_v51, %v3372_v61 }
 0x2e5   :  { %v3397_v3 = vrot.slane %v3396_v62, 2  ;;  %v3388_v5 = vrot.slane %v3387_v63, 2  ;;  %v3412_v46 = vmax.f32 %v3410_v1, %v3411_v35  ;;  %v4727_v12 = vpop.f32.mrb[104].mxu0  ;;  %v3402_v9 = vsel %vm3238_vm3, %v3147_v15, -inf }
 0x2e6   :  { %v2768_v11 = vadd.f32 %v4727_v12, %v5649_v6  ;;  %v2759_v13 = vpop.f32.mrb[105].mxu0  ;;  %v3898_v41 = vsel %vm3889_vm9, %v3373_v59, %v3897_v27  ;;  %v3403_v44 = vmax.f32 %v3401_v18, %v3402_v9 }
 0x2e7   :  { %v3398_v43 = vmax.f32 %v3396_v62, %v3397_v3  ;;  %v3389_v58 = vmax.f32 %v3387_v63, %v3388_v5  ;;  %v3413_v10 = vrot.slane %v3412_v46, 4  ;;  %v4728_v22 = vpop.f32.mrb[106].mxu0  ;;  %v3899_v14 = vsel %vm3891_vm10, %v3382_v16, %v3898_v41 }
 0x2e8   :  { %v3152_v45 = vmax.f32 %v2768_v11, 0.0  ;;  %v2760_v48 = vadd.f32 %v2759_v13, %v5649_v6  ;;  %v2762_v19 = vpop.f32.mrb[107].mxu0  ;;  %3951 = vst.msk [vmem:[%s6025_s3 + $0x8] sm:$0xff] %vm3238_vm3, %v3899_v14  ;;  %v2771_v55 = vadd.f32 %v4728_v22, %v5649_v6  ;;  %v3404_v28 = vrot.slane %v3403_v44, 4 }
 0x2e9   :  { %v3399_v21 = vrot.slane %v3398_v43, 1  ;;  %v3390_v8 = vrot.slane %v3389_v58, 1  ;;  %v3414_v53 = vmax.f32 %v3412_v46, %v3413_v10  ;;  %v2763_v0 = vadd.f32 %v2762_v19, %v5649_v6 }
 0x2ea   :  { %v3150_v30 = vmax.f32 %v2760_v48, 0.0  ;;  %v3153_v49 = vmax.f32 %v2771_v55, 0.0  ;;  %v3405_v29 = vmax.f32 %v3403_v44, %v3404_v28  ;;  %v3428_v23 = vsel %vm3238_vm3, %v3152_v45, -inf }
 0x2eb   :  { %v3400_v20 = vmax.f32 %v3398_v43, %v3399_v21  ;;  %v3391_v2 = vmax.f32 %v3389_v58, %v3390_v8  ;;  %v3415_v42 = vrot.slane %v3414_v53, 2  ;;  %v3151_v26 = vmax.f32 %v2763_v0, 0.0 }
 0x2ec   :  { %v3419_v25 = vsel %vm3238_vm3, %v3150_v30, -inf  ;;  %v3429_v27 = vsel %vm3238_vm3, %v3153_v49, -inf  ;;  %v3406_v32 = vrot.slane %v3405_v29, 2 }
 0x2ed   :  { %v3900_v24 = vsel %vm3879_vm4, %v3400_v20, %v3391_v2  ;;  %v3416_v7 = vmax.f32 %v3414_v53, %v3415_v42  ;;  %v4731_v31 = vpop.f32.mrb[108].mxu0  ;;  %v3430_v33 = vmax.f32 %v3428_v23, %v3429_v27  ;;  %v3420_v34 = vsel %vm3238_vm3, %v3151_v26, -inf }
 0x2ee   :  { %v2784_v37 = vadd.f32 %v4731_v31, %v5649_v6  ;;  %v2775_v38 = vpop.f32.mrb[109].mxu0  ;;  %v3421_v40 = vmax.f32 %v3419_v25, %v3420_v34  ;;  %v3407_v50 = vmax.f32 %v3405_v29, %v3406_v32 }
 0x2ef   :  { %v3417_v39 = vrot.slane %v3416_v7, 1  ;;  %v2776_v47 = vadd.f32 %v2775_v38, %v5649_v6  ;;  %v4732_v4 = vpop.f32.mrb[110].mxu0  ;;  %v3431_v36 = vrot.slane %v3430_v33, 4 }
 0x2f0   :  { %v3156_v51 = vmax.f32 %v2784_v37, 0.0  ;;  %v2787_v52 = vadd.f32 %v4732_v4, %v5649_v6  ;;  %v2778_v17 = vpop.f32.mrb[111].mxu0  ;;  %v3422_v54 = vrot.slane %v3421_v40, 4  ;;  %v3408_v60 = vrot.slane %v3407_v50, 1 }
 0x2f1   :  { %v3154_v56 = vmax.f32 %v2776_v47, 0.0  ;;  %v2779_v57 = vadd.f32 %v2778_v17, %v5649_v6  ;;  %v3432_v61 = vmax.f32 %v3430_v33, %v3431_v36  ;;  %v3418_v63 = vmax.f32 %v3416_v7, %v3417_v39 }
 0x2f2   :  { %v3157_v62 = vmax.f32 %v2787_v52, 0.0  ;;  %v3423_v1 = vmax.f32 %v3421_v40, %v3422_v54  ;;  %v3409_v15 = vmax.f32 %v3407_v50, %v3408_v60  ;;  %v3446_v3 = vsel %vm3238_vm3, %v3156_v51, -inf }
 0x2f3   :  { %v3155_v35 = vmax.f32 %v2779_v57, 0.0  ;;  %v3433_v59 = vrot.slane %v3432_v61, 2  ;;  %v3437_v12 = vsel %vm3238_vm3, %v3154_v56, -inf }
 0x2f4   :  { %v3447_v5 = vsel %vm3238_vm3, %v3157_v62, -inf  ;;  %v3424_v46 = vrot.slane %v3423_v1, 2  ;;  %v3901_v11 = vsel %vm3881_vm5, %v3409_v15, %v3900_v24 }
 0x2f5   :  { %v3448_v16 = vmax.f32 %v3446_v3, %v3447_v5  ;;  %v3438_v18 = vsel %vm3238_vm3, %v3155_v35, -inf  ;;  %v4735_v9 = vpop.f32.mrb[112].mxu0  ;;  %v3434_v13 = vmax.f32 %v3432_v61, %v3433_v59  ;;  %v3902_v22 = vsel %vm3883_vm6, %v3418_v63, %v3901_v11 }
 0x2f6   :  { %v3439_v41 = vmax.f32 %v3437_v12, %v3438_v18  ;;  %v2800_v43 = vadd.f32 %v4735_v9, %v5649_v6  ;;  %v2791_v58 = vpop.f32.mrb[113].mxu0  ;;  %v3425_v10 = vmax.f32 %v3423_v1, %v3424_v46 }
 0x2f7   :  { %v3449_v14 = vrot.slane %v3448_v16, 4  ;;  %v2792_v44 = vadd.f32 %v2791_v58, %v5649_v6  ;;  %v4736_v45 = vpop.f32.mrb[114].mxu0  ;;  %v3435_v48 = vrot.slane %v3434_v13, 1 }
 0x2f8   :  { %v3440_v19 = vrot.slane %v3439_v41, 4  ;;  %v3160_v21 = vmax.f32 %v2800_v43, 0.0  ;;  %v2803_v8 = vadd.f32 %v4736_v45, %v5649_v6  ;;  %v2794_v53 = vpop.f32.mrb[115].mxu0  ;;  %v3426_v55 = vrot.slane %v3425_v10, 1 }
 0x2f9   :  { %v3450_v28 = vmax.f32 %v3448_v16, %v3449_v14  ;;  %v3158_v30 = vmax.f32 %v2792_v44, 0.0  ;;  %v2795_v0 = vadd.f32 %v2794_v53, %v5649_v6  ;;  %v3436_v42 = vmax.f32 %v3434_v13, %v3435_v48 }
 0x2fa   :  { %v3441_v20 = vmax.f32 %v3439_v41, %v3440_v19  ;;  %v3161_v2 = vmax.f32 %v2803_v8, 0.0  ;;  %v3427_v49 = vmax.f32 %v3425_v10, %v3426_v55  ;;  %v3464_v24 = vsel %vm3238_vm3, %v3160_v21, -inf }
 0x2fb   :  { %v3451_v29 = vrot.slane %v3450_v28, 2  ;;  %v3159_v23 = vmax.f32 %v2795_v0, 0.0  ;;  %v3455_v7 = vsel %vm3238_vm3, %v3158_v30, -inf }
 0x2fc   :  { %v3442_v26 = vrot.slane %v3441_v20, 2  ;;  %v3465_v25 = vsel %vm3238_vm3, %v3161_v2, -inf  ;;  %v3903_v27 = vsel %vm3885_vm7, %v3427_v49, %v3902_v22 }
 0x2fd   :  { %v3452_v31 = vmax.f32 %v3450_v28, %v3451_v29  ;;  %v3466_v32 = vmax.f32 %v3464_v24, %v3465_v25  ;;  %v3456_v33 = vsel %vm3238_vm3, %v3159_v23, -inf  ;;  %v4739_v34 = vpop.f32.mrb[116].mxu0  ;;  %v3904_v38 = vsel %vm3887_vm8, %v3436_v42, %v3903_v27 }
 0x2fe   :  { %v3443_v37 = vmax.f32 %v3441_v20, %v3442_v26  ;;  %v3457_v39 = vmax.f32 %v3455_v7, %v3456_v33  ;;  %v2816_v40 = vadd.f32 %v4739_v34, %v5649_v6  ;;  %v2807_v47 = vpop.f32.mrb[117].mxu0 }
 0x2ff   :  { %v3453_v4 = vrot.slane %v3452_v31, 1  ;;  %v3467_v50 = vrot.slane %v3466_v32, 4  ;;  %v2808_v36 = vadd.f32 %v2807_v47, %v5649_v6  ;;  %v4740_v51 = vpop.f32.mrb[118].mxu0 }
 0x300   :  { %v3444_v52 = vrot.slane %v3443_v37, 1  ;;  %v3458_v17 = vrot.slane %v3457_v39, 4  ;;  %v3164_v54 = vmax.f32 %v2816_v40, 0.0  ;;  %v2819_v56 = vadd.f32 %v4740_v51, %v5649_v6  ;;  %v2810_v57 = vpop.f32.mrb[119].mxu0 }
 0x301   :  { %v3468_v60 = vmax.f32 %v3466_v32, %v3467_v50  ;;  %v3162_v61 = vmax.f32 %v2808_v36, 0.0  ;;  %v2811_v62 = vadd.f32 %v2810_v57, %v5649_v6  ;;  %v3454_v15 = vmax.f32 %v3452_v31, %v3453_v4 }
 0x302   :  { %v3445_v63 = vmax.f32 %v3443_v37, %v3444_v52  ;;  %v3459_v1 = vmax.f32 %v3457_v39, %v3458_v17  ;;  %v3165_v35 = vmax.f32 %v2819_v56, 0.0  ;;  %v3482_v3 = vsel %vm3238_vm3, %v3164_v54, -inf }
 0x303   :  { %v3469_v59 = vrot.slane %v3468_v60, 2  ;;  %v3163_v5 = vmax.f32 %v2811_v62, 0.0  ;;  %v3473_v16 = vsel %vm3238_vm3, %v3162_v61, -inf }
 0x304   :  { %v3905_v46 = vsel %vm3889_vm9, %v3445_v63, %v3904_v38  ;;  %v3460_v12 = vrot.slane %v3459_v1, 2  ;;  %v3483_v18 = vsel %vm3238_vm3, %v3165_v35, -inf }
 0x305   :  { %v3906_v9 = vsel %vm3891_vm10, %v3454_v15, %v3905_v46  ;;  %v3470_v11 = vmax.f32 %v3468_v60, %v3469_v59  ;;  %v3484_v13 = vmax.f32 %v3482_v3, %v3483_v18  ;;  %v3474_v41 = vsel %vm3238_vm3, %v3163_v5, -inf  ;;  %v4743_v43 = vpop.f32.mrb[120].mxu0 }
 0x306   :  { %3952 = vst.msk [vmem:[%s6025_s3 + $0x10] sm:$0xff] %vm3238_vm3, %v3906_v9  ;;  %v3461_v58 = vmax.f32 %v3459_v1, %v3460_v12  ;;  %v3475_v10 = vmax.f32 %v3473_v16, %v3474_v41  ;;  %v2832_v22 = vadd.f32 %v4743_v43, %v5649_v6  ;;  %v2823_v14 = vpop.f32.mrb[121].mxu0 }
 0x307   :  { %v3471_v44 = vrot.slane %v3470_v11, 1  ;;  %v3485_v45 = vrot.slane %v3484_v13, 4  ;;  %v2824_v48 = vadd.f32 %v2823_v14, %v5649_v6  ;;  %v4744_v19 = vpop.f32.mrb[122].mxu0 }
 0x308   :  { %v3462_v21 = vrot.slane %v3461_v58, 1  ;;  %v3476_v8 = vrot.slane %v3475_v10, 4  ;;  %v3168_v53 = vmax.f32 %v2832_v22, 0.0  ;;  %v2835_v55 = vadd.f32 %v4744_v19, %v5649_v6  ;;  %v2826_v28 = vpop.f32.mrb[123].mxu0 }
 0x309   :  { %v3472_v30 = vmax.f32 %v3470_v11, %v3471_v44  ;;  %v3486_v0 = vmax.f32 %v3484_v13, %v3485_v45  ;;  %v3166_v20 = vmax.f32 %v2824_v48, 0.0  ;;  %v2827_v2 = vadd.f32 %v2826_v28, %v5649_v6 }
 0x30a   :  { %v3463_v42 = vmax.f32 %v3461_v58, %v3462_v21  ;;  %v3477_v49 = vmax.f32 %v3475_v10, %v3476_v8  ;;  %v3169_v29 = vmax.f32 %v2835_v55, 0.0  ;;  %v3500_v25 = vsel %vm3238_vm3, %v3168_v53, -inf }
 0x30b   :  { %v3487_v23 = vrot.slane %v3486_v0, 2  ;;  %v3167_v26 = vmax.f32 %v2827_v2, 0.0  ;;  %v3491_v32 = vsel %vm3238_vm3, %v3166_v20, -inf }
 0x30c   :  { %v3907_v24 = vsel %vm3879_vm4, %v3472_v30, %v3463_v42  ;;  %v3478_v7 = vrot.slane %v3477_v49, 2  ;;  %v3501_v27 = vsel %vm3238_vm3, %v3169_v29, -inf }
 0x30d   :  { %v3488_v31 = vmax.f32 %v3486_v0, %v3487_v23  ;;  %v3502_v33 = vmax.f32 %v3500_v25, %v3501_v27  ;;  %v3492_v34 = vsel %vm3238_vm3, %v3167_v26, -inf  ;;  %v4747_v37 = vpop.f32.mrb[124].mxu0 }
 0x30e   :  { %v3479_v38 = vmax.f32 %v3477_v49, %v3478_v7  ;;  %v3493_v39 = vmax.f32 %v3491_v32, %v3492_v34  ;;  %v2848_v40 = vadd.f32 %v4747_v37, %v5649_v6  ;;  %v2839_v47 = vpop.f32.mrb[125].mxu0 }
 0x30f   :  { %v3489_v4 = vrot.slane %v3488_v31, 1  ;;  %v3503_v50 = vrot.slane %v3502_v33, 4  ;;  %v2840_v36 = vadd.f32 %v2839_v47, %v5649_v6  ;;  %v4748_v51 = vpop.f32.mrb[126].mxu0 }
 0x310   :  { %v3480_v52 = vrot.slane %v3479_v38, 1  ;;  %v3494_v17 = vrot.slane %v3493_v39, 4  ;;  %v3172_v54 = vmax.f32 %v2848_v40, 0.0  ;;  %v2851_v56 = vadd.f32 %v4748_v51, %v5649_v6  ;;  %v2842_v57 = vpop.f32.mrb[127].mxu0 }
 0x311   :  { %v3504_v60 = vmax.f32 %v3502_v33, %v3503_v50  ;;  %v3170_v61 = vmax.f32 %v2840_v36, 0.0  ;;  %v2843_v62 = vadd.f32 %v2842_v57, %v5649_v6  ;;  %v3490_v15 = vmax.f32 %v3488_v31, %v3489_v4 }
 0x312   :  { %v3481_v63 = vmax.f32 %v3479_v38, %v3480_v52  ;;  %v3495_v1 = vmax.f32 %v3493_v39, %v3494_v17  ;;  %v3173_v35 = vmax.f32 %v2851_v56, 0.0  ;;  %v3518_v3 = vsel %vm3238_vm3, %v3172_v54, -inf }
 0x313   :  { %v3505_v59 = vrot.slane %v3504_v60, 2  ;;  %v3171_v5 = vmax.f32 %v2843_v62, 0.0  ;;  %v3509_v16 = vsel %vm3238_vm3, %v3170_v61, -inf }
 0x314   :  { %v3908_v46 = vsel %vm3881_vm5, %v3481_v63, %v3907_v24  ;;  %v3496_v12 = vrot.slane %v3495_v1, 2  ;;  %v3519_v18 = vsel %vm3238_vm3, %v3173_v35, -inf }
 0x315   :  { %v3506_v9 = vmax.f32 %v3504_v60, %v3505_v59  ;;  %v3909_v11 = vsel %vm3883_vm6, %v3490_v15, %v3908_v46  ;;  %v3520_v13 = vmax.f32 %v3518_v3, %v3519_v18  ;;  %v3510_v41 = vsel %vm3238_vm3, %v3171_v5, -inf  ;;  %v4751_v43 = vpop.f32.mrb[128].mxu0 }
 0x316   :  { %v3497_v58 = vmax.f32 %v3495_v1, %v3496_v12  ;;  %v3511_v10 = vmax.f32 %v3509_v16, %v3510_v41  ;;  %v2864_v22 = vadd.f32 %v4751_v43, %v5649_v6  ;;  %v2855_v14 = vpop.f32.mrb[129].mxu0 }
 0x317   :  { %v3507_v44 = vrot.slane %v3506_v9, 1  ;;  %v3521_v45 = vrot.slane %v3520_v13, 4  ;;  %v2856_v48 = vadd.f32 %v2855_v14, %v5649_v6  ;;  %v4752_v19 = vpop.f32.mrb[130].mxu0 }
 0x318   :  { %v3498_v21 = vrot.slane %v3497_v58, 1  ;;  %v3512_v8 = vrot.slane %v3511_v10, 4  ;;  %v3176_v53 = vmax.f32 %v2864_v22, 0.0  ;;  %v2867_v55 = vadd.f32 %v4752_v19, %v5649_v6  ;;  %v2858_v28 = vpop.f32.mrb[131].mxu0 }
 0x319   :  { %v3522_v30 = vmax.f32 %v3520_v13, %v3521_v45  ;;  %v3174_v0 = vmax.f32 %v2856_v48, 0.0  ;;  %v2859_v20 = vadd.f32 %v2858_v28, %v5649_v6  ;;  %v3508_v29 = vmax.f32 %v3506_v9, %v3507_v44 }
 0x31a   :  { %v3499_v2 = vmax.f32 %v3497_v58, %v3498_v21  ;;  %v3513_v42 = vmax.f32 %v3511_v10, %v3512_v8  ;;  %v3177_v49 = vmax.f32 %v2867_v55, 0.0  ;;  %v3536_v26 = vsel %vm3238_vm3, %v3176_v53, -inf }
 0x31b   :  { %v3523_v23 = vrot.slane %v3522_v30, 2  ;;  %v3175_v24 = vmax.f32 %v2859_v20, 0.0  ;;  %v3527_v27 = vsel %vm3238_vm3, %v3174_v0, -inf }
 0x31c   :  { %v3910_v7 = vsel %vm3885_vm7, %v3499_v2, %v3909_v11  ;;  %v3514_v25 = vrot.slane %v3513_v42, 2  ;;  %v3537_v31 = vsel %vm3238_vm3, %v3177_v49, -inf }
 0x31d   :  { %v3524_v32 = vmax.f32 %v3522_v30, %v3523_v23  ;;  %v3911_v33 = vsel %vm3887_vm8, %v3508_v29, %v3910_v7  ;;  %v3538_v34 = vmax.f32 %v3536_v26, %v3537_v31  ;;  %v3528_v37 = vsel %vm3238_vm3, %v3175_v24, -inf  ;;  %v4755_v38 = vpop.f32.mrb[132].mxu0 }
 0x31e   :  { %v3515_v39 = vmax.f32 %v3513_v42, %v3514_v25  ;;  %v3529_v40 = vmax.f32 %v3527_v27, %v3528_v37  ;;  %v2880_v47 = vadd.f32 %v4755_v38, %v5649_v6  ;;  %v2871_v4 = vpop.f32.mrb[133].mxu0 }
 0x31f   :  { %v3525_v50 = vrot.slane %v3524_v32, 1  ;;  %v3539_v36 = vrot.slane %v3538_v34, 4  ;;  %v2872_v51 = vadd.f32 %v2871_v4, %v5649_v6  ;;  %v4756_v52 = vpop.f32.mrb[134].mxu0 }
 0x320   :  { %v3516_v17 = vrot.slane %v3515_v39, 1  ;;  %v3530_v54 = vrot.slane %v3529_v40, 4  ;;  %v3180_v56 = vmax.f32 %v2880_v47, 0.0  ;;  %v2883_v57 = vadd.f32 %v4756_v52, %v5649_v6  ;;  %v2874_v60 = vpop.f32.mrb[135].mxu0 }
 0x321   :  { %v3540_v61 = vmax.f32 %v3538_v34, %v3539_v36  ;;  %v3178_v62 = vmax.f32 %v2872_v51, 0.0  ;;  %v2875_v63 = vadd.f32 %v2874_v60, %v5649_v6  ;;  %v3526_v59 = vmax.f32 %v3524_v32, %v3525_v50 }
 0x322   :  { %v3517_v1 = vmax.f32 %v3515_v39, %v3516_v17  ;;  %v3531_v35 = vmax.f32 %v3529_v40, %v3530_v54  ;;  %v3181_v15 = vmax.f32 %v2883_v57, 0.0  ;;  %v3554_v5 = vsel %vm3238_vm3, %v3180_v56, -inf }
 0x323   :  { %v3541_v3 = vrot.slane %v3540_v61, 2  ;;  %v3179_v46 = vmax.f32 %v2875_v63, 0.0  ;;  %v3545_v18 = vsel %vm3238_vm3, %v3178_v62, -inf }
 0x324   :  { %v3912_v12 = vsel %vm3889_vm9, %v3517_v1, %v3911_v33  ;;  %v3532_v16 = vrot.slane %v3531_v35, 2  ;;  %v3555_v9 = vsel %vm3238_vm3, %v3181_v15, -inf }
 0x325   :  { %v3913_v11 = vsel %vm3891_vm10, %v3526_v59, %v3912_v12  ;;  %v3542_v13 = vmax.f32 %v3540_v61, %v3541_v3  ;;  %v3556_v41 = vmax.f32 %v3554_v5, %v3555_v9  ;;  %v3546_v43 = vsel %vm3238_vm3, %v3179_v46, -inf  ;;  %v4759_v58 = vpop.f32.mrb[136].mxu0 }
 0x326   :  { %3953 = vst.msk [vmem:[%s6025_s3 + $0x18] sm:$0xff] %vm3238_vm3, %v3913_v11  ;;  %v3533_v10 = vmax.f32 %v3531_v35, %v3532_v16  ;;  %v3547_v22 = vmax.f32 %v3545_v18, %v3546_v43  ;;  %v2896_v14 = vadd.f32 %v4759_v58, %v5649_v6  ;;  %v2887_v44 = vpop.f32.mrb[137].mxu0 }
 0x327   :  { %v3543_v45 = vrot.slane %v3542_v13, 1  ;;  %v3557_v48 = vrot.slane %v3556_v41, 4  ;;  %v2888_v19 = vadd.f32 %v2887_v44, %v5649_v6  ;;  %v4760_v21 = vpop.f32.mrb[138].mxu0 }
 0x328   :  { %v3534_v8 = vrot.slane %v3533_v10, 1  ;;  %v3548_v53 = vrot.slane %v3547_v22, 4  ;;  %v3184_v55 = vmax.f32 %v2896_v14, 0.0  ;;  %v2899_v28 = vadd.f32 %v4760_v21, %v5649_v6  ;;  %v2890_v30 = vpop.f32.mrb[139].mxu0 }
 0x329   :  { %v3544_v0 = vmax.f32 %v3542_v13, %v3543_v45  ;;  %v3558_v20 = vmax.f32 %v3556_v41, %v3557_v48  ;;  %v3182_v2 = vmax.f32 %v2888_v19, 0.0  ;;  %v2891_v42 = vadd.f32 %v2890_v30, %v5649_v6 }
 0x32a   :  { %v3535_v49 = vmax.f32 %v3533_v10, %v3534_v8  ;;  %v3549_v29 = vmax.f32 %v3547_v22, %v3548_v53  ;;  %v3185_v23 = vmax.f32 %v2899_v28, 0.0  ;;  %v3572_v27 = vsel %vm3238_vm3, %v3184_v55, -inf }
 0x32b   :  { %v3559_v26 = vrot.slane %v3558_v20, 2  ;;  %v3183_v24 = vmax.f32 %v2891_v42, 0.0  ;;  %v3563_v33 = vsel %vm3238_vm3, %v3182_v2, -inf }
 0x32c   :  { %v3914_v7 = vsel %vm3879_vm4, %v3544_v0, %v3535_v49  ;;  %v3550_v25 = vrot.slane %v3549_v29, 2  ;;  %v3573_v31 = vsel %vm3238_vm3, %v3185_v23, -inf }
 0x32d   :  { %v3560_v32 = vmax.f32 %v3558_v20, %v3559_v26  ;;  %v3574_v34 = vmax.f32 %v3572_v27, %v3573_v31  ;;  %v3564_v37 = vsel %vm3238_vm3, %v3183_v24, -inf  ;;  %v4763_v38 = vpop.f32.mrb[140].mxu0 }
 0x32e   :  { %v3551_v39 = vmax.f32 %v3549_v29, %v3550_v25  ;;  %v3565_v40 = vmax.f32 %v3563_v33, %v3564_v37  ;;  %v2912_v47 = vadd.f32 %v4763_v38, %v5649_v6  ;;  %v2903_v4 = vpop.f32.mrb[141].mxu0 }
 0x32f   :  { %v3561_v50 = vrot.slane %v3560_v32, 1  ;;  %v3575_v36 = vrot.slane %v3574_v34, 4  ;;  %v2904_v51 = vadd.f32 %v2903_v4, %v5649_v6  ;;  %v4764_v52 = vpop.f32.mrb[142].mxu0 }
 0x330   :  { %v3552_v17 = vrot.slane %v3551_v39, 1  ;;  %v3566_v54 = vrot.slane %v3565_v40, 4  ;;  %v3188_v56 = vmax.f32 %v2912_v47, 0.0  ;;  %v2915_v57 = vadd.f32 %v4764_v52, %v5649_v6  ;;  %v2906_v60 = vpop.f32.mrb[143].mxu0 }
 0x331   :  { %v3576_v61 = vmax.f32 %v3574_v34, %v3575_v36  ;;  %v3186_v62 = vmax.f32 %v2904_v51, 0.0  ;;  %v2907_v63 = vadd.f32 %v2906_v60, %v5649_v6  ;;  %v3562_v59 = vmax.f32 %v3560_v32, %v3561_v50 }
 0x332   :  { %v3553_v1 = vmax.f32 %v3551_v39, %v3552_v17  ;;  %v3567_v35 = vmax.f32 %v3565_v40, %v3566_v54  ;;  %v3189_v15 = vmax.f32 %v2915_v57, 0.0  ;;  %v3590_v5 = vsel %vm3238_vm3, %v3188_v56, -inf }
 0x333   :  { %v3577_v3 = vrot.slane %v3576_v61, 2  ;;  %v3187_v46 = vmax.f32 %v2907_v63, 0.0  ;;  %v3581_v18 = vsel %vm3238_vm3, %v3186_v62, -inf }
 0x334   :  { %v3915_v12 = vsel %vm3881_vm5, %v3553_v1, %v3914_v7  ;;  %v3568_v16 = vrot.slane %v3567_v35, 2  ;;  %v3591_v9 = vsel %vm3238_vm3, %v3189_v15, -inf }
 0x335   :  { %v3578_v11 = vmax.f32 %v3576_v61, %v3577_v3  ;;  %v3916_v13 = vsel %vm3883_vm6, %v3562_v59, %v3915_v12  ;;  %v3592_v41 = vmax.f32 %v3590_v5, %v3591_v9  ;;  %v3582_v43 = vsel %vm3238_vm3, %v3187_v46, -inf  ;;  %v4767_v58 = vpop.f32.mrb[144].mxu0 }
 0x336   :  { %v3569_v10 = vmax.f32 %v3567_v35, %v3568_v16  ;;  %v3583_v22 = vmax.f32 %v3581_v18, %v3582_v43  ;;  %v2928_v14 = vadd.f32 %v4767_v58, %v5649_v6  ;;  %v2919_v44 = vpop.f32.mrb[145].mxu0 }
 0x337   :  { %v3579_v45 = vrot.slane %v3578_v11, 1  ;;  %v3593_v48 = vrot.slane %v3592_v41, 4  ;;  %v2920_v19 = vadd.f32 %v2919_v44, %v5649_v6  ;;  %v4768_v21 = vpop.f32.mrb[146].mxu0 }
 0x338   :  { %v3570_v8 = vrot.slane %v3569_v10, 1  ;;  %v3584_v53 = vrot.slane %v3583_v22, 4  ;;  %v3192_v55 = vmax.f32 %v2928_v14, 0.0  ;;  %v2931_v28 = vadd.f32 %v4768_v21, %v5649_v6  ;;  %v2922_v30 = vpop.f32.mrb[147].mxu0 }
 0x339   :  { %v3594_v0 = vmax.f32 %v3592_v41, %v3593_v48  ;;  %v3190_v20 = vmax.f32 %v2920_v19, 0.0  ;;  %v2923_v2 = vadd.f32 %v2922_v30, %v5649_v6  ;;  %v3580_v23 = vmax.f32 %v3578_v11, %v3579_v45 }
 0x33a   :  { %v3571_v42 = vmax.f32 %v3569_v10, %v3570_v8  ;;  %v3585_v49 = vmax.f32 %v3583_v22, %v3584_v53  ;;  %v3193_v29 = vmax.f32 %v2931_v28, 0.0  ;;  %v3608_v24 = vsel %vm3238_vm3, %v3192_v55, -inf }
 0x33b   :  { %v3595_v26 = vrot.slane %v3594_v0, 2  ;;  %v3191_v7 = vmax.f32 %v2923_v2, 0.0  ;;  %v3599_v31 = vsel %vm3238_vm3, %v3190_v20, -inf }
 0x33c   :  { %v3917_v25 = vsel %vm3885_vm7, %v3571_v42, %v3916_v13  ;;  %v3586_v27 = vrot.slane %v3585_v49, 2  ;;  %v3609_v32 = vsel %vm3238_vm3, %v3193_v29, -inf }
 0x33d   :  { %v3596_v33 = vmax.f32 %v3594_v0, %v3595_v26  ;;  %v3918_v34 = vsel %vm3887_vm8, %v3580_v23, %v3917_v25  ;;  %v3610_v37 = vmax.f32 %v3608_v24, %v3609_v32  ;;  %v3600_v38 = vsel %vm3238_vm3, %v3191_v7, -inf  ;;  %v4771_v39 = vpop.f32.mrb[148].mxu0 }
 0x33e   :  { %v3587_v40 = vmax.f32 %v3585_v49, %v3586_v27  ;;  %v3601_v47 = vmax.f32 %v3599_v31, %v3600_v38  ;;  %v2944_v4 = vadd.f32 %v4771_v39, %v5649_v6  ;;  %v2935_v50 = vpop.f32.mrb[149].mxu0 }
 0x33f   :  { %v3597_v36 = vrot.slane %v3596_v33, 1  ;;  %v3611_v51 = vrot.slane %v3610_v37, 4  ;;  %v2936_v52 = vadd.f32 %v2935_v50, %v5649_v6  ;;  %v4772_v17 = vpop.f32.mrb[150].mxu0 }
 0x340   :  { %v3588_v54 = vrot.slane %v3587_v40, 1  ;;  %v3602_v56 = vrot.slane %v3601_v47, 4  ;;  %v3196_v57 = vmax.f32 %v2944_v4, 0.0  ;;  %v2947_v60 = vadd.f32 %v4772_v17, %v5649_v6  ;;  %v2938_v61 = vpop.f32.mrb[151].mxu0 }
 0x341   :  { %v3612_v62 = vmax.f32 %v3610_v37, %v3611_v51  ;;  %v3194_v63 = vmax.f32 %v2936_v52, 0.0  ;;  %v2939_v1 = vadd.f32 %v2938_v61, %v5649_v6  ;;  %v3598_v3 = vmax.f32 %v3596_v33, %v3597_v36 }
 0x342   :  { %v3589_v35 = vmax.f32 %v3587_v40, %v3588_v54  ;;  %v3603_v15 = vmax.f32 %v3601_v47, %v3602_v56  ;;  %v3197_v59 = vmax.f32 %v2947_v60, 0.0  ;;  %v3626_v46 = vsel %vm3238_vm3, %v3196_v57, -inf }
 0x343   :  { %v3613_v5 = vrot.slane %v3612_v62, 2  ;;  %v3195_v12 = vmax.f32 %v2939_v1, 0.0  ;;  %v3617_v9 = vsel %vm3238_vm3, %v3194_v63, -inf }
 0x344   :  { %v3919_v16 = vsel %vm3889_vm9, %v3589_v35, %v3918_v34  ;;  %v3604_v18 = vrot.slane %v3603_v15, 2  ;;  %v3627_v11 = vsel %vm3238_vm3, %v3197_v59, -inf }
 0x345   :  { %v3920_v13 = vsel %vm3891_vm10, %v3598_v3, %v3919_v16  ;;  %v3614_v41 = vmax.f32 %v3612_v62, %v3613_v5  ;;  %v3628_v43 = vmax.f32 %v3626_v46, %v3627_v11  ;;  %v3618_v58 = vsel %vm3238_vm3, %v3195_v12, -inf  ;;  %v4775_v10 = vpop.f32.mrb[152].mxu0 }
 0x346   :  { %3954 = vst.msk [vmem:[%s6025_s3 + $0x20] sm:$0xff] %vm3238_vm3, %v3920_v13  ;;  %v3605_v22 = vmax.f32 %v3603_v15, %v3604_v18  ;;  %v3619_v14 = vmax.f32 %v3617_v9, %v3618_v58  ;;  %v2960_v44 = vadd.f32 %v4775_v10, %v5649_v6  ;;  %v2951_v45 = vpop.f32.mrb[153].mxu0 }
 0x347   :  { %v3615_v48 = vrot.slane %v3614_v41, 1  ;;  %v3629_v19 = vrot.slane %v3628_v43, 4  ;;  %v2952_v21 = vadd.f32 %v2951_v45, %v5649_v6  ;;  %v4776_v8 = vpop.f32.mrb[154].mxu0 }
 0x348   :  { %v3606_v53 = vrot.slane %v3605_v22, 1  ;;  %v3620_v55 = vrot.slane %v3619_v14, 4  ;;  %v3200_v28 = vmax.f32 %v2960_v44, 0.0  ;;  %v2963_v30 = vadd.f32 %v4776_v8, %v5649_v6  ;;  %v2954_v0 = vpop.f32.mrb[155].mxu0 }
 0x349   :  { %v3616_v20 = vmax.f32 %v3614_v41, %v3615_v48  ;;  %v3630_v2 = vmax.f32 %v3628_v43, %v3629_v19  ;;  %v3198_v42 = vmax.f32 %v2952_v21, 0.0  ;;  %v2955_v49 = vadd.f32 %v2954_v0, %v5649_v6 }
 0x34a   :  { %v3607_v29 = vmax.f32 %v3605_v22, %v3606_v53  ;;  %v3621_v23 = vmax.f32 %v3619_v14, %v3620_v55  ;;  %v3201_v26 = vmax.f32 %v2963_v30, 0.0  ;;  %v3644_v31 = vsel %vm3238_vm3, %v3200_v28, -inf }
 0x34b   :  { %v3631_v24 = vrot.slane %v3630_v2, 2  ;;  %v3199_v7 = vmax.f32 %v2955_v49, 0.0  ;;  %v3635_v34 = vsel %vm3238_vm3, %v3198_v42, -inf }
 0x34c   :  { %v3921_v25 = vsel %vm3879_vm4, %v3616_v20, %v3607_v29  ;;  %v3622_v27 = vrot.slane %v3621_v23, 2  ;;  %v3645_v32 = vsel %vm3238_vm3, %v3201_v26, -inf }
 0x34d   :  { %v3632_v33 = vmax.f32 %v3630_v2, %v3631_v24  ;;  %v3646_v37 = vmax.f32 %v3644_v31, %v3645_v32  ;;  %v3636_v38 = vsel %vm3238_vm3, %v3199_v7, -inf  ;;  %v4779_v39 = vpop.f32.mrb[156].mxu0 }
 0x34e   :  { %v3623_v40 = vmax.f32 %v3621_v23, %v3622_v27  ;;  %v3637_v47 = vmax.f32 %v3635_v34, %v3636_v38  ;;  %v2976_v4 = vadd.f32 %v4779_v39, %v5649_v6  ;;  %v2967_v50 = vpop.f32.mrb[157].mxu0 }
 0x34f   :  { %v3633_v36 = vrot.slane %v3632_v33, 1  ;;  %v3647_v51 = vrot.slane %v3646_v37, 4  ;;  %v2968_v52 = vadd.f32 %v2967_v50, %v5649_v6  ;;  %v4780_v17 = vpop.f32.mrb[158].mxu0 }
 0x350   :  { %v3624_v54 = vrot.slane %v3623_v40, 1  ;;  %v3638_v56 = vrot.slane %v3637_v47, 4  ;;  %v3204_v57 = vmax.f32 %v2976_v4, 0.0  ;;  %v2979_v60 = vadd.f32 %v4780_v17, %v5649_v6  ;;  %v2970_v61 = vpop.f32.mrb[159].mxu0 }
 0x351   :  { %v3648_v62 = vmax.f32 %v3646_v37, %v3647_v51  ;;  %v3202_v63 = vmax.f32 %v2968_v52, 0.0  ;;  %v2971_v1 = vadd.f32 %v2970_v61, %v5649_v6  ;;  %v3634_v3 = vmax.f32 %v3632_v33, %v3633_v36 }
 0x352   :  { %v3625_v35 = vmax.f32 %v3623_v40, %v3624_v54  ;;  %v3639_v15 = vmax.f32 %v3637_v47, %v3638_v56  ;;  %v3205_v59 = vmax.f32 %v2979_v60, 0.0  ;;  %v3662_v46 = vsel %vm3238_vm3, %v3204_v57, -inf }
 0x353   :  { %v3649_v5 = vrot.slane %v3648_v62, 2  ;;  %v3203_v12 = vmax.f32 %v2971_v1, 0.0  ;;  %v3653_v9 = vsel %vm3238_vm3, %v3202_v63, -inf }
 0x354   :  { %v3922_v16 = vsel %vm3881_vm5, %v3625_v35, %v3921_v25  ;;  %v3640_v18 = vrot.slane %v3639_v15, 2  ;;  %v3663_v11 = vsel %vm3238_vm3, %v3205_v59, -inf }
 0x355   :  { %v3650_v13 = vmax.f32 %v3648_v62, %v3649_v5  ;;  %v3923_v41 = vsel %vm3883_vm6, %v3634_v3, %v3922_v16  ;;  %v3664_v43 = vmax.f32 %v3662_v46, %v3663_v11  ;;  %v3654_v58 = vsel %vm3238_vm3, %v3203_v12, -inf  ;;  %v4783_v10 = vpop.f32.mrb[160].mxu0 }
 0x356   :  { %v3641_v22 = vmax.f32 %v3639_v15, %v3640_v18  ;;  %v3655_v14 = vmax.f32 %v3653_v9, %v3654_v58  ;;  %v2992_v44 = vadd.f32 %v4783_v10, %v5649_v6  ;;  %v2983_v45 = vpop.f32.mrb[161].mxu0 }
 0x357   :  { %v3651_v48 = vrot.slane %v3650_v13, 1  ;;  %v3665_v19 = vrot.slane %v3664_v43, 4  ;;  %v2984_v21 = vadd.f32 %v2983_v45, %v5649_v6  ;;  %v4784_v8 = vpop.f32.mrb[162].mxu0 }
 0x358   :  { %v3642_v53 = vrot.slane %v3641_v22, 1  ;;  %v3656_v55 = vrot.slane %v3655_v14, 4  ;;  %v3208_v28 = vmax.f32 %v2992_v44, 0.0  ;;  %v2995_v30 = vadd.f32 %v4784_v8, %v5649_v6  ;;  %v2986_v0 = vpop.f32.mrb[163].mxu0 }
 0x359   :  { %v3666_v20 = vmax.f32 %v3664_v43, %v3665_v19  ;;  %v3206_v2 = vmax.f32 %v2984_v21, 0.0  ;;  %v2987_v42 = vadd.f32 %v2986_v0, %v5649_v6  ;;  %v3652_v26 = vmax.f32 %v3650_v13, %v3651_v48 }
 0x35a   :  { %v3643_v49 = vmax.f32 %v3641_v22, %v3642_v53  ;;  %v3657_v29 = vmax.f32 %v3655_v14, %v3656_v55  ;;  %v3209_v23 = vmax.f32 %v2995_v30, 0.0  ;;  %v3680_v7 = vsel %vm3238_vm3, %v3208_v28, -inf }
 0x35b   :  { %v3667_v24 = vrot.slane %v3666_v20, 2  ;;  %v3207_v25 = vmax.f32 %v2987_v42, 0.0  ;;  %v3671_v32 = vsel %vm3238_vm3, %v3206_v2, -inf }
 0x35c   :  { %v3924_v27 = vsel %vm3885_vm7, %v3643_v49, %v3923_v41  ;;  %v3658_v31 = vrot.slane %v3657_v29, 2  ;;  %v3681_v33 = vsel %vm3238_vm3, %v3209_v23, -inf }
 0x35d   :  { %v3668_v34 = vmax.f32 %v3666_v20, %v3667_v24  ;;  %v3925_v37 = vsel %vm3887_vm8, %v3652_v26, %v3924_v27  ;;  %v3682_v38 = vmax.f32 %v3680_v7, %v3681_v33  ;;  %v3672_v39 = vsel %vm3238_vm3, %v3207_v25, -inf  ;;  %v4787_v40 = vpop.f32.mrb[164].mxu0 }
 0x35e   :  { %v3659_v47 = vmax.f32 %v3657_v29, %v3658_v31  ;;  %v3673_v4 = vmax.f32 %v3671_v32, %v3672_v39  ;;  %v3008_v50 = vadd.f32 %v4787_v40, %v5649_v6  ;;  %v2999_v36 = vpop.f32.mrb[165].mxu0 }
 0x35f   :  { %v3669_v51 = vrot.slane %v3668_v34, 1  ;;  %v3683_v52 = vrot.slane %v3682_v38, 4  ;;  %v3000_v17 = vadd.f32 %v2999_v36, %v5649_v6  ;;  %v4788_v54 = vpop.f32.mrb[166].mxu0 }
 0x360   :  { %v3660_v56 = vrot.slane %v3659_v47, 1  ;;  %v3674_v57 = vrot.slane %v3673_v4, 4  ;;  %v3212_v60 = vmax.f32 %v3008_v50, 0.0  ;;  %v3011_v61 = vadd.f32 %v4788_v54, %v5649_v6  ;;  %v3002_v62 = vpop.f32.mrb[167].mxu0 }
 0x361   :  { %v3684_v63 = vmax.f32 %v3682_v38, %v3683_v52  ;;  %v3210_v1 = vmax.f32 %v3000_v17, 0.0  ;;  %v3003_v35 = vadd.f32 %v3002_v62, %v5649_v6  ;;  %v3670_v5 = vmax.f32 %v3668_v34, %v3669_v51 }
 0x362   :  { %v3661_v15 = vmax.f32 %v3659_v47, %v3660_v56  ;;  %v3675_v59 = vmax.f32 %v3673_v4, %v3674_v57  ;;  %v3213_v3 = vmax.f32 %v3011_v61, 0.0  ;;  %v3698_v12 = vsel %vm3238_vm3, %v3212_v60, -inf }
 0x363   :  { %v3685_v46 = vrot.slane %v3684_v63, 2  ;;  %v3211_v16 = vmax.f32 %v3003_v35, 0.0  ;;  %v3689_v11 = vsel %vm3238_vm3, %v3210_v1, -inf }
 0x364   :  { %v3926_v18 = vsel %vm3889_vm9, %v3661_v15, %v3925_v37  ;;  %v3676_v9 = vrot.slane %v3675_v59, 2  ;;  %v3699_v13 = vsel %vm3238_vm3, %v3213_v3, -inf }
 0x365   :  { %v3927_v41 = vsel %vm3891_vm10, %v3670_v5, %v3926_v18  ;;  %v3686_v43 = vmax.f32 %v3684_v63, %v3685_v46  ;;  %v3700_v58 = vmax.f32 %v3698_v12, %v3699_v13  ;;  %v3690_v10 = vsel %vm3238_vm3, %v3211_v16, -inf  ;;  %v4791_v22 = vpop.f32.mrb[168].mxu0 }
 0x366   :  { %3955 = vst.msk [vmem:[%s6025_s3 + $0x28] sm:$0xff] %vm3238_vm3, %v3927_v41  ;;  %v3677_v14 = vmax.f32 %v3675_v59, %v3676_v9  ;;  %v3691_v44 = vmax.f32 %v3689_v11, %v3690_v10  ;;  %v3024_v45 = vadd.f32 %v4791_v22, %v5649_v6  ;;  %v3015_v48 = vpop.f32.mrb[169].mxu0 }
 0x367   :  { %v3687_v19 = vrot.slane %v3686_v43, 1  ;;  %v3701_v21 = vrot.slane %v3700_v58, 4  ;;  %v3016_v8 = vadd.f32 %v3015_v48, %v5649_v6  ;;  %v4792_v53 = vpop.f32.mrb[170].mxu0 }
 0x368   :  { %v3678_v55 = vrot.slane %v3677_v14, 1  ;;  %v3692_v28 = vrot.slane %v3691_v44, 4  ;;  %v3216_v30 = vmax.f32 %v3024_v45, 0.0  ;;  %v3027_v0 = vadd.f32 %v4792_v53, %v5649_v6  ;;  %v3018_v20 = vpop.f32.mrb[171].mxu0 }
 0x369   :  { %v3688_v2 = vmax.f32 %v3686_v43, %v3687_v19  ;;  %v3702_v42 = vmax.f32 %v3700_v58, %v3701_v21  ;;  %v3214_v49 = vmax.f32 %v3016_v8, 0.0  ;;  %v3019_v29 = vadd.f32 %v3018_v20, %v5649_v6 }
 0x36a   :  { %v3679_v23 = vmax.f32 %v3677_v14, %v3678_v55  ;;  %v3693_v26 = vmax.f32 %v3691_v44, %v3692_v28  ;;  %v3217_v24 = vmax.f32 %v3027_v0, 0.0  ;;  %v3716_v32 = vsel %vm3238_vm3, %v3216_v30, -inf }
 0x36b   :  { %v3703_v7 = vrot.slane %v3702_v42, 2  ;;  %v3215_v25 = vmax.f32 %v3019_v29, 0.0  ;;  %v3707_v37 = vsel %vm3238_vm3, %v3214_v49, -inf }
 0x36c   :  { %v3928_v27 = vsel %vm3879_vm4, %v3688_v2, %v3679_v23  ;;  %v3694_v31 = vrot.slane %v3693_v26, 2  ;;  %v3717_v33 = vsel %vm3238_vm3, %v3217_v24, -inf }
 0x36d   :  { %v3704_v34 = vmax.f32 %v3702_v42, %v3703_v7  ;;  %v3718_v38 = vmax.f32 %v3716_v32, %v3717_v33  ;;  %v3708_v39 = vsel %vm3238_vm3, %v3215_v25, -inf  ;;  %v4795_v40 = vpop.f32.mrb[172].mxu0 }
 0x36e   :  { %v3695_v47 = vmax.f32 %v3693_v26, %v3694_v31  ;;  %v3709_v4 = vmax.f32 %v3707_v37, %v3708_v39  ;;  %v3040_v50 = vadd.f32 %v4795_v40, %v5649_v6  ;;  %v3031_v36 = vpop.f32.mrb[173].mxu0 }
 0x36f   :  { %v3705_v51 = vrot.slane %v3704_v34, 1  ;;  %v3719_v52 = vrot.slane %v3718_v38, 4  ;;  %v3032_v17 = vadd.f32 %v3031_v36, %v5649_v6  ;;  %v4796_v54 = vpop.f32.mrb[174].mxu0 }
 0x370   :  { %v3696_v56 = vrot.slane %v3695_v47, 1  ;;  %v3710_v57 = vrot.slane %v3709_v4, 4  ;;  %v3220_v60 = vmax.f32 %v3040_v50, 0.0  ;;  %v3043_v61 = vadd.f32 %v4796_v54, %v5649_v6  ;;  %v3034_v62 = vpop.f32.mrb[175].mxu0 }
 0x371   :  { %v3720_v63 = vmax.f32 %v3718_v38, %v3719_v52  ;;  %v3218_v1 = vmax.f32 %v3032_v17, 0.0  ;;  %v3035_v35 = vadd.f32 %v3034_v62, %v5649_v6  ;;  %v3706_v5 = vmax.f32 %v3704_v34, %v3705_v51 }
 0x372   :  { %v3697_v15 = vmax.f32 %v3695_v47, %v3696_v56  ;;  %v3711_v59 = vmax.f32 %v3709_v4, %v3710_v57  ;;  %v3221_v3 = vmax.f32 %v3043_v61, 0.0  ;;  %v3734_v12 = vsel %vm3238_vm3, %v3220_v60, -inf }
 0x373   :  { %v3721_v46 = vrot.slane %v3720_v63, 2  ;;  %v3219_v16 = vmax.f32 %v3035_v35, 0.0  ;;  %v3725_v11 = vsel %vm3238_vm3, %v3218_v1, -inf }
 0x374   :  { %v3929_v18 = vsel %vm3881_vm5, %v3697_v15, %v3928_v27  ;;  %v3712_v9 = vrot.slane %v3711_v59, 2  ;;  %v3735_v13 = vsel %vm3238_vm3, %v3221_v3, -inf }
 0x375   :  { %v3722_v41 = vmax.f32 %v3720_v63, %v3721_v46  ;;  %v3930_v43 = vsel %vm3883_vm6, %v3706_v5, %v3929_v18  ;;  %v3736_v58 = vmax.f32 %v3734_v12, %v3735_v13  ;;  %v3726_v10 = vsel %vm3238_vm3, %v3219_v16, -inf  ;;  %v4799_v22 = vpop.f32.mrb[176].mxu0 }
 0x376   :  { %v3713_v14 = vmax.f32 %v3711_v59, %v3712_v9  ;;  %v3727_v44 = vmax.f32 %v3725_v11, %v3726_v10  ;;  %v3056_v45 = vadd.f32 %v4799_v22, %v5649_v6  ;;  %v3047_v48 = vpop.f32.mrb[177].mxu0 }
 0x377   :  { %v3723_v19 = vrot.slane %v3722_v41, 1  ;;  %v3737_v21 = vrot.slane %v3736_v58, 4  ;;  %v3048_v8 = vadd.f32 %v3047_v48, %v5649_v6  ;;  %v4800_v53 = vpop.f32.mrb[178].mxu0 }
 0x378   :  { %v3714_v55 = vrot.slane %v3713_v14, 1  ;;  %v3728_v28 = vrot.slane %v3727_v44, 4  ;;  %v3224_v30 = vmax.f32 %v3056_v45, 0.0  ;;  %v3059_v0 = vadd.f32 %v4800_v53, %v5649_v6  ;;  %v3050_v20 = vpop.f32.mrb[179].mxu0 }
 0x379   :  { %v3738_v2 = vmax.f32 %v3736_v58, %v3737_v21  ;;  %v3222_v42 = vmax.f32 %v3048_v8, 0.0  ;;  %v3051_v49 = vadd.f32 %v3050_v20, %v5649_v6  ;;  %v3724_v24 = vmax.f32 %v3722_v41, %v3723_v19 }
 0x37a   :  { %v3715_v29 = vmax.f32 %v3713_v14, %v3714_v55  ;;  %v3729_v23 = vmax.f32 %v3727_v44, %v3728_v28  ;;  %v3225_v26 = vmax.f32 %v3059_v0, 0.0  ;;  %v3752_v25 = vsel %vm3238_vm3, %v3224_v30, -inf }
 0x37b   :  { %v3739_v7 = vrot.slane %v3738_v2, 2  ;;  %v3223_v27 = vmax.f32 %v3051_v49, 0.0  ;;  %v3743_v33 = vsel %vm3238_vm3, %v3222_v42, -inf }
 0x37c   :  { %v3931_v31 = vsel %vm3885_vm7, %v3715_v29, %v3930_v43  ;;  %v3730_v32 = vrot.slane %v3729_v23, 2  ;;  %v3753_v34 = vsel %vm3238_vm3, %v3225_v26, -inf }
 0x37d   :  { %v3740_v37 = vmax.f32 %v3738_v2, %v3739_v7  ;;  %v3932_v38 = vsel %vm3887_vm8, %v3724_v24, %v3931_v31  ;;  %v3754_v39 = vmax.f32 %v3752_v25, %v3753_v34  ;;  %v3744_v40 = vsel %vm3238_vm3, %v3223_v27, -inf }
 0x37e   :  { %v3731_v47 = vmax.f32 %v3729_v23, %v3730_v32  ;;  %v3745_v4 = vmax.f32 %v3743_v33, %v3744_v40  ;;  %v4803_v50 = vpop.f32.mrb[180].mxu0 }
 0x37f   :  { %v3741_v36 = vrot.slane %v3740_v37, 1  ;;  %v3755_v51 = vrot.slane %v3754_v39, 4  ;;  %v3072_v52 = vadd.f32 %v4803_v50, %v5649_v6  ;;  %v3063_v17 = vpop.f32.mrb[181].mxu0 }
 0x380   :  { %v3732_v54 = vrot.slane %v3731_v47, 1  ;;  %v3746_v56 = vrot.slane %v3745_v4, 4  ;;  %v3064_v57 = vadd.f32 %v3063_v17, %v5649_v6  ;;  %v4804_v60 = vpop.f32.mrb[182].mxu0 }
 0x381   :  { %v3756_v61 = vmax.f32 %v3754_v39, %v3755_v51  ;;  %v3228_v62 = vmax.f32 %v3072_v52, 0.0  ;;  %v3075_v63 = vadd.f32 %v4804_v60, %v5649_v6  ;;  %v3066_v1 = vpop.f32.mrb[183].mxu0  ;;  %v3742_v5 = vmax.f32 %v3740_v37, %v3741_v36 }
 0x382   :  { %v3733_v35 = vmax.f32 %v3731_v47, %v3732_v54  ;;  %v3747_v15 = vmax.f32 %v3745_v4, %v3746_v56  ;;  %v3226_v59 = vmax.f32 %v3064_v57, 0.0  ;;  %v3067_v3 = vadd.f32 %v3066_v1, %v5649_v6 }
 0x383   :  { %v3757_v46 = vrot.slane %v3756_v61, 2  ;;  %v3229_v12 = vmax.f32 %v3075_v63, 0.0  ;;  %v3770_v41 = vsel %vm3238_vm3, %v3228_v62, -inf }
 0x384   :  { %v3933_v16 = vsel %vm3889_vm9, %v3733_v35, %v3932_v38  ;;  %v3748_v18 = vrot.slane %v3747_v15, 2  ;;  %v3227_v9 = vmax.f32 %v3067_v3, 0.0  ;;  %v3761_v10 = vsel %vm3238_vm3, %v3226_v59, -inf }
 0x385   :  { %v3934_v11 = vsel %vm3891_vm10, %v3742_v5, %v3933_v16  ;;  %v3758_v13 = vmax.f32 %v3756_v61, %v3757_v46  ;;  %v3771_v43 = vsel %vm3238_vm3, %v3229_v12, -inf }
 0x386   :  { %3956 = vst.msk [vmem:[%s6025_s3 + $0x30] sm:$0xff] %vm3238_vm3, %v3934_v11  ;;  %v3749_v58 = vmax.f32 %v3747_v15, %v3748_v18  ;;  %v3772_v22 = vmax.f32 %v3770_v41, %v3771_v43  ;;  %v3762_v14 = vsel %vm3238_vm3, %v3227_v9, -inf }
 0x387   :  { %v3759_v44 = vrot.slane %v3758_v13, 1  ;;  %v3763_v45 = vmax.f32 %v3761_v10, %v3762_v14  ;;  %v4807_v21 = vpop.f32.mrb[184].mxu0 }
 0x388   :  { %v3750_v48 = vrot.slane %v3749_v58, 1  ;;  %v3773_v19 = vrot.slane %v3772_v22, 4  ;;  %v3088_v55 = vadd.f32 %v4807_v21, %v5649_v6  ;;  %v3079_v28 = vpop.f32.mrb[185].mxu0 }
 0x389   :  { %v3760_v8 = vmax.f32 %v3758_v13, %v3759_v44  ;;  %v3764_v53 = vrot.slane %v3763_v45, 4  ;;  %v3080_v20 = vadd.f32 %v3079_v28, %v5649_v6  ;;  %v4808_v2 = vpop.f32.mrb[186].mxu0 }
 0x38a   :  { %v3751_v30 = vmax.f32 %v3749_v58, %v3750_v48  ;;  %v3774_v0 = vmax.f32 %v3772_v22, %v3773_v19  ;;  %v3232_v49 = vmax.f32 %v3088_v55, 0.0  ;;  %v3091_v29 = vadd.f32 %v4808_v2, %v5649_v6  ;;  %v3082_v23 = vpop.f32.mrb[187].mxu0 }
 0x38b   :  { %v3765_v42 = vmax.f32 %v3763_v45, %v3764_v53  ;;  %v3230_v7 = vmax.f32 %v3080_v20, 0.0  ;;  %v3083_v25 = vadd.f32 %v3082_v23, %v5649_v6 }
 0x38c   :  { %v3935_v26 = vsel %vm3879_vm4, %v3760_v8, %v3751_v30  ;;  %v3775_v24 = vrot.slane %v3774_v0, 2  ;;  %v3233_v31 = vmax.f32 %v3091_v29, 0.0  ;;  %v3788_v37 = vsel %vm3238_vm3, %v3232_v49, -inf }
 0x38d   :  { %v3766_v27 = vrot.slane %v3765_v42, 2  ;;  %v3231_v33 = vmax.f32 %v3083_v25, 0.0  ;;  %v3779_v40 = vsel %vm3238_vm3, %v3230_v7, -inf }
 0x38e   :  { %v3776_v32 = vmax.f32 %v3774_v0, %v3775_v24  ;;  %v3789_v38 = vsel %vm3238_vm3, %v3233_v31, -inf }
 0x38f   :  { %v3767_v34 = vmax.f32 %v3765_v42, %v3766_v27  ;;  %v3790_v47 = vmax.f32 %v3788_v37, %v3789_v38  ;;  %v3780_v4 = vsel %vm3238_vm3, %v3231_v33, -inf }
 0x390   :  { %v3777_v39 = vrot.slane %v3776_v32, 1  ;;  %v3781_v36 = vmax.f32 %v3779_v40, %v3780_v4 }
 0x391   :  { %v3768_v50 = vrot.slane %v3767_v34, 1  ;;  %v3791_v51 = vrot.slane %v3790_v47, 4  ;;  %v4811_v52 = vpop.f32.mrb[188].mxu0 }
 0x392   :  { %v3782_v54 = vrot.slane %v3781_v36, 4  ;;  %v3104_v56 = vadd.f32 %v4811_v52, %v5649_v6  ;;  %v3095_v57 = vpop.f32.mrb[189].mxu0  ;;  %v3778_v60 = vmax.f32 %v3776_v32, %v3777_v39 }
 0x393   :  { %v3769_v17 = vmax.f32 %v3767_v34, %v3768_v50  ;;  %v3792_v61 = vmax.f32 %v3790_v47, %v3791_v51  ;;  %v3096_v62 = vadd.f32 %v3095_v57, %v5649_v6  ;;  %v4812_v63 = vpop.f32.mrb[190].mxu0 }
 0x394   :  { %v3783_v35 = vmax.f32 %v3781_v36, %v3782_v54  ;;  %v3236_v15 = vmax.f32 %v3104_v56, 0.0  ;;  %v3107_v59 = vadd.f32 %v4812_v63, %v5649_v6  ;;  %v3098_v3 = vpop.f32.mrb[191].mxu0 }
 0x395   :  { %v3936_v1 = vsel %vm3881_vm5, %v3769_v17, %v3935_v26  ;;  %v3793_v5 = vrot.slane %v3792_v61, 2  ;;  %v3234_v12 = vmax.f32 %v3096_v62, 0.0  ;;  %v3099_v16 = vadd.f32 %v3098_v3, %v5649_v6 }
 0x396   :  { %v3937_v46 = vsel %vm3883_vm6, %v3778_v60, %v3936_v1  ;;  %v3784_v18 = vrot.slane %v3783_v35, 2  ;;  %v3237_v9 = vmax.f32 %v3107_v59, 0.0  ;;  %v3806_v43 = vsel %vm3238_vm3, %v3236_v15, -inf }
 0x397   :  { %v3794_v11 = vmax.f32 %v3792_v61, %v3793_v5  ;;  %v3235_v13 = vmax.f32 %v3099_v16, 0.0  ;;  %v3797_v22 = vsel %vm3238_vm3, %v3234_v12, -inf }
 0x398   :  { %v3785_v41 = vmax.f32 %v3783_v35, %v3784_v18  ;;  %v3807_v58 = vsel %vm3238_vm3, %v3237_v9, -inf }
 0x399   :  { %v3795_v10 = vrot.slane %v3794_v11, 1  ;;  %v3808_v14 = vmax.f32 %v3806_v43, %v3807_v58  ;;  %v3798_v44 = vsel %vm3238_vm3, %v3235_v13, -inf }
 0x39a   :  { %v3786_v45 = vrot.slane %v3785_v41, 1  ;;  %v3799_v48 = vmax.f32 %v3797_v22, %v3798_v44 }
 0x39b   :  { %v3809_v19 = vrot.slane %v3808_v14, 4  ;;  %v3796_v8 = vmax.f32 %v3794_v11, %v3795_v10 }
 0x39c   :  { %v3787_v21 = vmax.f32 %v3785_v41, %v3786_v45  ;;  %v3800_v6 = vrot.slane %v3799_v48, 4 }
 0x39d   :  { %v3810_v53 = vmax.f32 %v3808_v14, %v3809_v19 }
 0x39e   :  { %v3938_v55 = vsel %vm3885_vm7, %v3787_v21, %v3937_v46  ;;  %v3801_v28 = vmax.f32 %v3799_v48, %v3800_v6 }
 0x39f   :  { %v3811_v30 = vrot.slane %v3810_v53, 2  ;;  %v3939_v0 = vsel %vm3887_vm8, %v3796_v8, %v3938_v55 }
 0x3a0   :  { %v3802_v20 = vrot.slane %v3801_v28, 2 }
 0x3a1   :  { %v3812_v2 = vmax.f32 %v3810_v53, %v3811_v30 }
 0x3a2   :  { %v3803_v42 = vmax.f32 %v3801_v28, %v3802_v20 }
 0x3a3   :  { %v3813_v49 = vrot.slane %v3812_v2, 1 }
 0x3a4   :  { %v3804_v29 = vrot.slane %v3803_v42, 1 }
 0x3a5   :  { %v3814_v26 = vmax.f32 %v3812_v2, %v3813_v49 }
 0x3a6   :  { %v3805_v23 = vmax.f32 %v3803_v42, %v3804_v29 }
 0x3a8   :  { %v3940_v24 = vsel %vm3889_vm9, %v3805_v23, %v3939_v0 }
 0x3a9   :  { %v3941_v7 = vsel %vm3891_vm10, %v3814_v26, %v3940_v24 }
 0x3aa   :  { %3957 = vst.msk [vmem:[%s6025_s3 + $0x38] sm:$0xff] %vm3238_vm3, %v3941_v7 }

// kernel: pointnet2_encoder_forward.3
= control target key start
LH: loop header
LB: loop body
LE: loop exit
PB: predicated region body
PF: predicated region fallthrough
CT: control target
= control target key end

     0   :  { %v3937_v0 = vmov 0   ;;  %vm445_vm0 = vcmask 64512   ;;  %vm542_vm1 = vcmask 1043456   ;;  %s4872_s0 = inlined_call_operand.vmem [shape: bf16[512,136], index: 0, kind: input, shape index: {}]   ;;  %s4873_s1 = inlined_call_operand.vmem [shape: f32[32,8], index: 1, kind: input, shape index: {}]   ;;  %s4874_s2 = inlined_call_operand.vmem [shape: bf16[1168,256], index: 2, kind: input, shape index: {}]   ;;  %s4875_s3 = inlined_call_operand.vmem [shape: f32[8,256], index: 3, kind: input, shape index: {}]   ;;  %s4876_s4 = inlined_call_operand.hbm [shape: f32[2,128], index: 4, kind: output, shape index: {}]  }
   0x1   :  { %546 = vmatprep.subr.bf16.mxu0 %v3937_v0  ;;  %v3693_v1 = vld [vmem:[%s4874_s2] ss:$8 sps:$4 sm:$0xff]   ;;  %v3694_v2 = vld [vmem:[%s4874_s2 + $0x10] ss:$8 sps:$4 sm:$0xff]   ;;  %v3704_v4 = vld [vmem:[%s4872_s0 + $0x4] ss:$8 sps:$4 sm:$0xff]  }
   0x2   :  { %547 = vmatpush1.bf16.msra.mxu0 %v3693_v1  ;;  %v3695_v3 = vld [vmem:[%s4874_s2 + $0x20] ss:$8 sps:$4 sm:$0xff]   ;;  %v3696_v5 = vld [vmem:[%s4874_s2 + $0x30] ss:$8 sps:$4 sm:$0xff]   ;;  %3225 = vmatprep.mubr.msk.bf16.mxu0 %vm445_vm0, %v3704_v4  ;;  %v3705_v13 = vld [vmem:[%s4872_s0 + $0x14] ss:$8 sps:$4 sm:$0xff]  }
   0x3   :  { %548 = vmatprep.subr.bf16.mxu0 %v3937_v0  ;;  %v3697_v6 = vld [vmem:[%s4874_s2 + $0x40] ss:$8 sps:$4 sm:$0xff]   ;;  %v3698_v7 = vld [vmem:[%s4874_s2 + $0x50] ss:$8 sps:$4 sm:$0xff]   ;;  %v3708_v15 = vld [vmem:[%s4872_s0 + $0x24] ss:$8 sps:$4 sm:$0xff]  }
   0x4   :  { %v3699_v8 = vld [vmem:[%s4874_s2 + $0x60] ss:$8 sps:$4 sm:$0xff]   ;;  %v3700_v9 = vld [vmem:[%s4874_s2 + $0x70] ss:$8 sps:$4 sm:$0xff]   ;;  %v3711_v17 = vld [vmem:[%s4872_s0 + $0x34] ss:$8 sps:$4 sm:$0xff]  }
   0x5   :  { %v3701_v10 = vld [vmem:[%s4874_s2 + $0x80] ss:$0 sps:$4 sm:$0xff]   ;;  %v3707_v14 = vld [vmem:[%s4872_s0 + $0x10] ss:$8 sps:$4 sm:$0xff]   ;;  %v3714_v19 = vld [vmem:[%s4872_s0 + $0x44] ss:$8 sps:$4 sm:$0xff]  }
   0x6   :  { %549 = vmatpush1.bf16.msra.mxu0 %v3694_v2  ;;  %v544_v11 = vsel %vm542_vm1, %v3701_v10, 0  ;;  %v3702_v12 = vld [vmem:[%s4872_s0] ss:$8 sps:$4 sm:$0xff]   ;;  %v3713_v18 = vld [vmem:[%s4872_s0 + $0x30] ss:$8 sps:$4 sm:$0xff]  }
   0x7   :  { %550 = vmatprep.subr.bf16.mxu0 %v3937_v0  ;;  %v3710_v16 = vld [vmem:[%s4872_s0 + $0x20] ss:$8 sps:$4 sm:$0xff]   ;;  %v3717_v21 = vld [vmem:[%s4872_s0 + $0x54] ss:$8 sps:$4 sm:$0xff]   ;;  %v3719_v22 = vld [vmem:[%s4872_s0 + $0x50] ss:$8 sps:$4 sm:$0xff]  }
   0x8   :  { %v3716_v20 = vld [vmem:[%s4872_s0 + $0x40] ss:$8 sps:$4 sm:$0xff]   ;;  %v3720_v23 = vld [vmem:[%s4872_s0 + $0x64] ss:$8 sps:$4 sm:$0xff]   ;;  %v3723_v25 = vld [vmem:[%s4872_s0 + $0x74] ss:$8 sps:$4 sm:$0xff]  }
   0x9   :  { %v3722_v24 = vld [vmem:[%s4872_s0 + $0x60] ss:$8 sps:$4 sm:$0xff]  }
   0xa   :  { %551 = vmatpush1.bf16.msra.mxu0 %v3695_v3 }
   0xb   :  { %552 = vmatprep.subr.bf16.mxu0 %v3937_v0 }
   0xe   :  { %553 = vmatpush1.bf16.msra.mxu0 %v3696_v5 }
   0xf   :  { %554 = vmatprep.subr.bf16.mxu0 %v3937_v0 }
  0x12   :  { %555 = vmatpush1.bf16.msra.mxu0 %v3697_v6 }
  0x13   :  { %556 = vmatprep.subr.bf16.mxu0 %v3937_v0 }
  0x16   :  { %557 = vmatpush1.bf16.msra.mxu0 %v3698_v7 }
  0x17   :  { %558 = vmatprep.subr.bf16.mxu0 %v3937_v0 }
  0x1a   :  { %559 = vmatpush1.bf16.msra.mxu0 %v3699_v8 }
  0x1b   :  { %560 = vmatprep.subr.bf16.mxu0 %v3937_v0 }
  0x1e   :  { %561 = vmatpush1.bf16.msra.mxu0 %v3700_v9 }
  0x1f   :  { %562 = vmatprep.subr.bf16.mxu0 %v3937_v0 }
  0x22   :  { %563 = vmatpush1.bf16.msra.mxu0 %v544_v11 }
  0x25   :  { %579 = vmatmul.mubr.bf16.vlgmr.msra.gmra.mrb[0].mxu0 %v3702_v12 }
  0x26   :  { %3226 = vmatprep.mubr.msk.bf16.mxu0 %vm445_vm0, %v3705_v13 }
  0x2d   :  { %587 = vmatmul.mubr.bf16.gmra.mrb[4].mxu0 %v3707_v14 }
  0x2e   :  { %3227 = vmatprep.mubr.msk.bf16.mxu0 %vm445_vm0, %v3708_v15 }
  0x35   :  { %595 = vmatmul.mubr.bf16.gmra.mrb[8].mxu0 %v3710_v16 }
  0x36   :  { %3228 = vmatprep.mubr.msk.bf16.mxu0 %vm445_vm0, %v3711_v17 }
  0x3d   :  { %603 = vmatmul.mubr.bf16.gmra.mrb[12].mxu0 %v3713_v18 }
  0x3e   :  { %3229 = vmatprep.mubr.msk.bf16.mxu0 %vm445_vm0, %v3714_v19 }
  0x45   :  { %611 = vmatmul.mubr.bf16.gmra.mrb[16].mxu0 %v3716_v20 }
  0x46   :  { %3230 = vmatprep.mubr.msk.bf16.mxu0 %vm445_vm0, %v3717_v21 }
  0x4d   :  { %619 = vmatmul.mubr.bf16.gmra.mrb[20].mxu0 %v3719_v22 }
  0x4e   :  { %3231 = vmatprep.mubr.msk.bf16.mxu0 %vm445_vm0, %v3720_v23 }
  0x55   :  { %627 = vmatmul.mubr.bf16.gmra.mrb[24].mxu0 %v3722_v24 }
  0x56   :  { %3232 = vmatprep.mubr.msk.bf16.mxu0 %vm445_vm0, %v3723_v25 }
  0x57   :  { %9 = vsyncpa [#allocation3], 0  ;;  %v3725_v26 = vld [vmem:[%s4872_s0 + $0x70] ss:$8 sps:$4 sm:$0xff]   ;;  %v3726_v27 = vld [vmem:[%s4872_s0 + $0x84] ss:$8 sps:$4 sm:$0xff]   ;;  %v102_v4 = vlaneseq }
  0x58   :  { %v3728_v28 = vld [vmem:[%s4872_s0 + $0x80] ss:$8 sps:$4 sm:$0xff]   ;;  %v3729_v29 = vld [vmem:[%s4872_s0 + $0x94] ss:$8 sps:$4 sm:$0xff]   ;;  %v3731_v30 = vld [vmem:[%s4872_s0 + $0x90] ss:$8 sps:$4 sm:$0xff]  }
  0x59   :  { %v3732_v31 = vld [vmem:[%s4872_s0 + $0xa4] ss:$8 sps:$4 sm:$0xff]   ;;  %v3734_v32 = vld [vmem:[%s4872_s0 + $0xa0] ss:$8 sps:$4 sm:$0xff]   ;;  %v3735_v33 = vld [vmem:[%s4872_s0 + $0xb4] ss:$8 sps:$4 sm:$0xff]  }
  0x5a   :  { %v3783_v34 = vld [vmem:[%s4874_s2 + $0x88] ss:$8 sps:$4 sm:$0xff]   ;;  %v3738_v36 = vld [vmem:[%s4872_s0 + $0xc4] ss:$8 sps:$4 sm:$0xff]   ;;  %v3787_v37 = vld [vmem:[%s4874_s2 + $0x98] ss:$8 sps:$4 sm:$0xff]  }
  0x5b   :  { %v3737_v35 = vld [vmem:[%s4872_s0 + $0xb0] ss:$8 sps:$4 sm:$0xff]   ;;  %3516 = vmatprep.subr.bf16.mxu1 %v3783_v34  ;;  %v3740_v39 = vld [vmem:[%s4872_s0 + $0xc0] ss:$8 sps:$4 sm:$0xff]   ;;  %v3741_v40 = vld [vmem:[%s4872_s0 + $0xd4] ss:$8 sps:$4 sm:$0xff]  }
  0x5c   :  { %3517 = vmatpush3.bf16.msra.mxu1 %v3783_v34  ;;  %v3788_v38 = vld [vmem:[%s4874_s2 + $0xa8] ss:$8 sps:$4 sm:$0xff]   ;;  %v3792_v41 = vld [vmem:[%s4874_s2 + $0xb8] ss:$8 sps:$4 sm:$0xff]   ;;  %v3744_v43 = vld [vmem:[%s4872_s0 + $0xe4] ss:$8 sps:$4 sm:$0xff]  }
  0x5d   :  { %635 = vmatmul.mubr.bf16.gmra.mrb[28].mxu0 %v3725_v26  ;;  %3518 = vmatprep.subr.bf16.mxu1 %v3787_v37  ;;  %v3743_v42 = vld [vmem:[%s4872_s0 + $0xd0] ss:$8 sps:$4 sm:$0xff]   ;;  %v3746_v44 = vld [vmem:[%s4872_s0 + $0xe0] ss:$8 sps:$4 sm:$0xff]   ;;  %v3747_v45 = vld [vmem:[%s4872_s0 + $0xf4] ss:$8 sps:$4 sm:$0xff]  }
  0x5e   :  { %3233 = vmatprep.mubr.msk.bf16.mxu0 %vm445_vm0, %v3726_v27  ;;  %v3749_v46 = vld [vmem:[%s4872_s0 + $0xf0] ss:$8 sps:$4 sm:$0xff]   ;;  %v3750_v47 = vld [vmem:[%s4872_s0 + $0x104] ss:$8 sps:$4 sm:$0xff]   ;;  %v3752_v48 = vld [vmem:[%s4872_s0 + $0x100] ss:$8 sps:$4 sm:$0xff]  }
  0x5f   :  { %v3753_v49 = vld [vmem:[%s4872_s0 + $0x114] ss:$8 sps:$4 sm:$0xff]   ;;  %v3755_v50 = vld [vmem:[%s4872_s0 + $0x110] ss:$8 sps:$4 sm:$0xff]   ;;  %v3756_v51 = vld [vmem:[%s4872_s0 + $0x124] ss:$8 sps:$4 sm:$0xff]  }
  0x60   :  { %3519 = vmatpush3.bf16.msra.mxu1 %v3787_v37  ;;  %v3758_v52 = vld [vmem:[%s4872_s0 + $0x120] ss:$8 sps:$4 sm:$0xff]   ;;  %v3759_v53 = vld [vmem:[%s4872_s0 + $0x134] ss:$8 sps:$4 sm:$0xff]   ;;  %v3761_v54 = vld [vmem:[%s4872_s0 + $0x130] ss:$8 sps:$4 sm:$0xff]  }
  0x61   :  { %3520 = vmatprep.subr.bf16.mxu1 %v3788_v38  ;;  %v3762_v55 = vld [vmem:[%s4872_s0 + $0x144] ss:$8 sps:$4 sm:$0xff]   ;;  %v3764_v56 = vld [vmem:[%s4872_s0 + $0x140] ss:$8 sps:$4 sm:$0xff]   ;;  %v3765_v57 = vld [vmem:[%s4872_s0 + $0x154] ss:$8 sps:$4 sm:$0xff]  }
  0x62   :  { %v3767_v58 = vld [vmem:[%s4872_s0 + $0x150] ss:$8 sps:$4 sm:$0xff]   ;;  %v3768_v59 = vld [vmem:[%s4872_s0 + $0x164] ss:$8 sps:$4 sm:$0xff]   ;;  %v3770_v60 = vld [vmem:[%s4872_s0 + $0x160] ss:$8 sps:$4 sm:$0xff]  }
  0x63   :  { %v3771_v61 = vld [vmem:[%s4872_s0 + $0x174] ss:$8 sps:$4 sm:$0xff]   ;;  %v3773_v62 = vld [vmem:[%s4872_s0 + $0x170] ss:$8 sps:$4 sm:$0xff]   ;;  %v3774_v63 = vld [vmem:[%s4872_s0 + $0x184] ss:$8 sps:$4 sm:$0xff]  }
  0x64   :  { %3521 = vmatpush3.bf16.msra.mxu1 %v3788_v38  ;;  %v3776_v1 = vld [vmem:[%s4872_s0 + $0x180] ss:$8 sps:$4 sm:$0xff]   ;;  %v3777_v2 = vld [vmem:[%s4872_s0 + $0x194] ss:$8 sps:$4 sm:$0xff]   ;;  %v3779_v3 = vld [vmem:[%s4872_s0 + $0x190] ss:$8 sps:$4 sm:$0xff]  }
  0x65   :  { %643 = vmatmul.mubr.bf16.gmra.mrb[32].mxu0 %v3728_v28  ;;  %3522 = vmatprep.subr.bf16.mxu1 %v3792_v41  ;;  %v3780_v5 = vld [vmem:[%s4872_s0 + $0x1a4] ss:$8 sps:$4 sm:$0xff]   ;;  %v4199_v6 = vshrl.u32 %v102_v4, 7  ;;  %v3782_v7 = vld [vmem:[%s4872_s0 + $0x1a0] ss:$8 sps:$4 sm:$0xff]   ;;  %vm967_vm2 = vcmask 523264  }
  0x66   :  { %3234 = vmatprep.mubr.msk.bf16.mxu0 %vm445_vm0, %v3729_v29  ;;  %v4209_v9 = vld [vmem:[%s4875_s3] sm:$0xff]  ;;  %v3784_v10 = vld [vmem:[%s4872_s0 + $0x1b4] ss:$8 sps:$4 sm:$0xff]   ;;  %v3786_v15 = vld [vmem:[%s4872_s0 + $0x1b0] ss:$8 sps:$4 sm:$0xff]   ;;  %vm2194_vm3 = vcmask 1041409  }
  0x67   :  { %v104_v8 = vsub.s32 0, %v4199_v6  ;;  %v3789_v17 = vld [vmem:[%s4872_s0 + $0x1c4] ss:$8 sps:$4 sm:$0xff]   ;;  %v3791_v26 = vld [vmem:[%s4872_s0 + $0x1c0] ss:$8 sps:$4 sm:$0xff]   ;;  %vm2196_vm4 = vcmask 1042434  }
  0x68   :  { %3523 = vmatpush3.bf16.msra.mxu1 %v3792_v41  ;;  %v3793_v28 = vld [vmem:[%s4872_s0 + $0x1d4] ss:$8 sps:$4 sm:$0xff]   ;;  %v3795_v37 = vld [vmem:[%s4872_s0 + $0x1d0] ss:$8 sps:$4 sm:$0xff]   ;;  %vm2198_vm5 = vcmask 1043459   ;;  %vm2200_vm6 = vcmask 1044484  }
  0x69   :  { %v4215_v11 = vrot.slane %v4209_v9, %v104_v8  ;;  %vm2202_vm7 = vcmask 1045509   ;;  %vm2204_vm8 = vcmask 1046534   ;;  %vm2206_vm9 = vcmask 1047559   ;;  %s3938_s15 = smov 8  }
  0x6d   :  { %651 = vmatmul.mubr.bf16.gmra.mrb[36].mxu0 %v3731_v30 }
  0x6e   :  { %3235 = vmatprep.mubr.msk.bf16.mxu0 %vm445_vm0, %v3732_v31 }
  0x75   :  { %659 = vmatmul.mubr.bf16.gmra.mrb[40].mxu0 %v3734_v32 }
  0x76   :  { %3236 = vmatprep.mubr.msk.bf16.mxu0 %vm445_vm0, %v3735_v33 }
  0x7d   :  { %667 = vmatmul.mubr.bf16.gmra.mrb[44].mxu0 %v3737_v35 }
  0x7e   :  { %3237 = vmatprep.mubr.msk.bf16.mxu0 %vm445_vm0, %v3738_v36 }
  0x85   :  { %675 = vmatmul.mubr.bf16.gmra.mrb[48].mxu0 %v3740_v39  ;;  %v3796_v39 = vld [vmem:[%s4872_s0 + $0x1e4] ss:$8 sps:$4 sm:$0xff]  }
  0x86   :  { %3238 = vmatprep.mubr.msk.bf16.mxu0 %vm445_vm0, %v3741_v40 }
  0x8d   :  { %683 = vmatmul.mubr.bf16.gmra.mrb[52].mxu0 %v3743_v42 }
  0x8e   :  { %3239 = vmatprep.mubr.msk.bf16.mxu0 %vm445_vm0, %v3744_v43 }
  0x95   :  { %691 = vmatmul.mubr.bf16.gmra.mrb[56].mxu0 %v3746_v44 }
  0x96   :  { %3240 = vmatprep.mubr.msk.bf16.mxu0 %vm445_vm0, %v3747_v45 }
  0x9d   :  { %699 = vmatmul.mubr.bf16.gmra.mrb[60].mxu0 %v3749_v46 }
  0x9e   :  { %3241 = vmatprep.mubr.msk.bf16.mxu0 %vm445_vm0, %v3750_v47 }
  0xa5   :  { %707 = vmatmul.mubr.bf16.gmra.mrb[64].mxu0 %v3752_v48  ;;  %v3798_v48 = vld [vmem:[%s4872_s0 + $0x1e0] ss:$8 sps:$4 sm:$0xff]  }
  0xa6   :  { %3242 = vmatprep.mubr.msk.bf16.mxu0 %vm445_vm0, %v3753_v49 }
  0xad   :  { %715 = vmatmul.mubr.bf16.gmra.mrb[68].mxu0 %v3755_v50  ;;  %v3799_v50 = vld [vmem:[%s4872_s0 + $0x1f4] ss:$8 sps:$4 sm:$0xff]  }
  0xae   :  { %3243 = vmatprep.mubr.msk.bf16.mxu0 %vm445_vm0, %v3756_v51 }
  0xb5   :  { %723 = vmatmul.mubr.bf16.gmra.mrb[72].mxu0 %v3758_v52 }
  0xb6   :  { %3244 = vmatprep.mubr.msk.bf16.mxu0 %vm445_vm0, %v3759_v53 }
  0xbd   :  { %731 = vmatmul.mubr.bf16.gmra.mrb[76].mxu0 %v3761_v54 }
  0xbe   :  { %3245 = vmatprep.mubr.msk.bf16.mxu0 %vm445_vm0, %v3762_v55 }
  0xc5   :  { %739 = vmatmul.mubr.bf16.gmra.mrb[80].mxu0 %v3764_v56 }
  0xc6   :  { %3246 = vmatprep.mubr.msk.bf16.mxu0 %vm445_vm0, %v3765_v57 }
  0xcd   :  { %747 = vmatmul.mubr.bf16.gmra.mrb[84].mxu0 %v3767_v58 }
  0xce   :  { %3247 = vmatprep.mubr.msk.bf16.mxu0 %vm445_vm0, %v3768_v59  ;;  %v3801_v59 = vld [vmem:[%s4872_s0 + $0x1f0] ss:$8 sps:$4 sm:$0xff]  }
  0xd5   :  { %755 = vmatmul.mubr.bf16.gmra.mrb[88].mxu0 %v3770_v60 }
  0xd6   :  { %3248 = vmatprep.mubr.msk.bf16.mxu0 %vm445_vm0, %v3771_v61 }
  0xdd   :  { %763 = vmatmul.mubr.bf16.gmra.mrb[92].mxu0 %v3773_v62 }
  0xde   :  { %3249 = vmatprep.mubr.msk.bf16.mxu0 %vm445_vm0, %v3774_v63 }
  0xe5   :  { %771 = vmatmul.mubr.bf16.gmra.mrb[96].mxu0 %v3776_v1 }
  0xe6   :  { %3250 = vmatprep.mubr.msk.bf16.mxu0 %vm445_vm0, %v3777_v2 }
  0xed   :  { %779 = vmatmul.mubr.bf16.gmra.mrb[100].mxu0 %v3779_v3 }
  0xee   :  { %3251 = vmatprep.mubr.msk.bf16.mxu0 %vm445_vm0, %v3780_v5 }
  0xf5   :  { %787 = vmatmul.mubr.bf16.gmra.mrb[104].mxu0 %v3782_v7 }
  0xf6   :  { %3252 = vmatprep.mubr.msk.bf16.mxu0 %vm445_vm0, %v3784_v10 }
  0xf8   :  { %v580_v12 = vpop.f32.mrb[0].mxu0 }
  0xf9   :  { %v581_v13 = vadd.f32 %v580_v12, %v4215_v11  ;;  %v582_v14 = vpop.f32.mrb[1].mxu0 }
  0xfa   :  { %v583_v16 = vpop.f32.mrb[2].mxu0 }
  0xfb   :  { %v584_v18 = vadd.f32 %v583_v16, %v4215_v11  ;;  %v585_v19 = vpop.f32.mrb[3].mxu0  ;;  %v835_v20 = vmax.f32 %v581_v13, 0.0 }
  0xfd   :  { %v836_v21 = vmax.f32 %v584_v18, 0.0  ;;  %795 = vmatmul.mubr.bf16.gmra.mrb[108].mxu0 %v3786_v15 }
  0xfe   :  { %3253 = vmatprep.mubr.msk.bf16.mxu0 %vm445_vm0, %v3789_v17 }
  0xff   :  { %v899_v22 = vpack.c.bf16 %v836_v21, %v835_v20 }
 0x100   :  { %v588_v23 = vpop.f32.mrb[4].mxu0 }
 0x101   :  { %v589_v24 = vadd.f32 %v588_v23, %v4215_v11  ;;  %v590_v25 = vpop.f32.mrb[5].mxu0  ;;  %3524 = vmatprep.mubr.msk.bf16.mxu1 %vm967_vm2, %v899_v22 }
 0x102   :  { %v591_v27 = vpop.f32.mrb[6].mxu0 }
 0x103   :  { %v592_v29 = vadd.f32 %v591_v27, %v4215_v11  ;;  %v593_v30 = vpop.f32.mrb[7].mxu0  ;;  %v837_v31 = vmax.f32 %v589_v24, 0.0 }
 0x105   :  { %v838_v32 = vmax.f32 %v592_v29, 0.0  ;;  %803 = vmatmul.mubr.bf16.gmra.mrb[112].mxu0 %v3791_v26 }
 0x106   :  { %3254 = vmatprep.mubr.msk.bf16.mxu0 %vm445_vm0, %v3793_v28 }
 0x107   :  { %v900_v33 = vpack.c.bf16 %v838_v32, %v837_v31 }
 0x108   :  { %v596_v34 = vpop.f32.mrb[8].mxu0 }
 0x109   :  { %v597_v35 = vadd.f32 %v596_v34, %v4215_v11  ;;  %v598_v36 = vpop.f32.mrb[9].mxu0  ;;  %3525 = vmatmul.mubr.msk.bf16.vlgmr.msra.gmra.mrb[0].mxu1 %vm967_vm2, %v900_v33 }
 0x10a   :  { %v599_v38 = vpop.f32.mrb[10].mxu0 }
 0x10b   :  { %v600_v40 = vadd.f32 %v599_v38, %v4215_v11  ;;  %v601_v41 = vpop.f32.mrb[11].mxu0  ;;  %v839_v42 = vmax.f32 %v597_v35, 0.0 }
 0x10d   :  { %v840_v43 = vmax.f32 %v600_v40, 0.0  ;;  %811 = vmatmul.mubr.bf16.gmra.mrb[116].mxu0 %v3795_v37 }
 0x10e   :  { %3255 = vmatprep.mubr.msk.bf16.mxu0 %vm445_vm0, %v3796_v39 }
 0x10f   :  { %v901_v44 = vpack.c.bf16 %v840_v43, %v839_v42 }
 0x110   :  { %v604_v45 = vpop.f32.mrb[12].mxu0 }
 0x111   :  { %v605_v46 = vadd.f32 %v604_v45, %v4215_v11  ;;  %v606_v47 = vpop.f32.mrb[13].mxu0  ;;  %3528 = vmatprep.mubr.msk.bf16.mxu1 %vm967_vm2, %v901_v44 }
 0x112   :  { %v607_v49 = vpop.f32.mrb[14].mxu0 }
 0x113   :  { %v608_v51 = vadd.f32 %v607_v49, %v4215_v11  ;;  %v609_v52 = vpop.f32.mrb[15].mxu0  ;;  %v841_v53 = vmax.f32 %v605_v46, 0.0 }
 0x115   :  { %v842_v54 = vmax.f32 %v608_v51, 0.0  ;;  %819 = vmatmul.mubr.bf16.gmra.mrb[120].mxu0 %v3798_v48 }
 0x116   :  { %3256 = vmatprep.mubr.msk.bf16.mxu0 %vm445_vm0, %v3799_v50 }
 0x117   :  { %v902_v55 = vpack.c.bf16 %v842_v54, %v841_v53 }
 0x118   :  { %v612_v56 = vpop.f32.mrb[16].mxu0 }
 0x119   :  { %v613_v57 = vadd.f32 %v612_v56, %v4215_v11  ;;  %v614_v58 = vpop.f32.mrb[17].mxu0  ;;  %3529 = vmatmul.mubr.msk.bf16.gmra.mrb[4].mxu1 %vm967_vm2, %v902_v55 }
 0x11a   :  { %v615_v60 = vpop.f32.mrb[18].mxu0 }
 0x11b   :  { %v616_v61 = vadd.f32 %v615_v60, %v4215_v11  ;;  %v617_v62 = vpop.f32.mrb[19].mxu0  ;;  %v843_v63 = vmax.f32 %v613_v57, 0.0 }
 0x11d   :  { %v844_v1 = vmax.f32 %v616_v61, 0.0  ;;  %827 = vmatmul.mubr.bf16.gmra.mrb[124].mxu0 %v3801_v59 }
 0x11f   :  { %v903_v2 = vpack.c.bf16 %v844_v1, %v843_v63 }
 0x120   :  { %v620_v3 = vpop.f32.mrb[20].mxu0 }
 0x121   :  { %v621_v4 = vadd.f32 %v620_v3, %v4215_v11  ;;  %v622_v5 = vpop.f32.mrb[21].mxu0  ;;  %3532 = vmatprep.mubr.msk.bf16.mxu1 %vm967_vm2, %v903_v2 }
 0x122   :  { %v623_v7 = vpop.f32.mrb[22].mxu0 }
 0x123   :  { %v624_v8 = vadd.f32 %v623_v7, %v4215_v11  ;;  %v625_v10 = vpop.f32.mrb[23].mxu0  ;;  %v845_v12 = vmax.f32 %v621_v4, 0.0 }
 0x125   :  { %v846_v13 = vmax.f32 %v624_v8, 0.0 }
 0x127   :  { %v904_v14 = vpack.c.bf16 %v846_v13, %v845_v12 }
 0x128   :  { %v628_v15 = vpop.f32.mrb[24].mxu0 }
 0x129   :  { %v629_v16 = vadd.f32 %v628_v15, %v4215_v11  ;;  %v630_v17 = vpop.f32.mrb[25].mxu0  ;;  %3533 = vmatmul.mubr.msk.bf16.gmra.mrb[8].mxu1 %vm967_vm2, %v904_v14 }
 0x12a   :  { %v631_v18 = vpop.f32.mrb[26].mxu0 }
 0x12b   :  { %v632_v19 = vadd.f32 %v631_v18, %v4215_v11  ;;  %v633_v20 = vpop.f32.mrb[27].mxu0  ;;  %v847_v21 = vmax.f32 %v629_v16, 0.0 }
 0x12d   :  { %v848_v22 = vmax.f32 %v632_v19, 0.0 }
 0x12f   :  { %v905_v23 = vpack.c.bf16 %v848_v22, %v847_v21 }
 0x130   :  { %v636_v24 = vpop.f32.mrb[28].mxu0 }
 0x131   :  { %v637_v25 = vadd.f32 %v636_v24, %v4215_v11  ;;  %v638_v26 = vpop.f32.mrb[29].mxu0  ;;  %3536 = vmatprep.mubr.msk.bf16.mxu1 %vm967_vm2, %v905_v23  ;;  %v3802_v24 = vld [vmem:[%s4874_s2 + $0xc8] ss:$8 sps:$4 sm:$0xff]  }
 0x132   :  { %v639_v27 = vpop.f32.mrb[30].mxu0  ;;  %3588 = vmatprep.subr.bf16.mxu1 %v3802_v24 }
 0x133   :  { %v640_v28 = vadd.f32 %v639_v27, %v4215_v11  ;;  %v641_v29 = vpop.f32.mrb[31].mxu0  ;;  %v849_v30 = vmax.f32 %v637_v25, 0.0  ;;  %3589 = vmatpush3.bf16.msra.mxu1 %v3802_v24 }
 0x135   :  { %v850_v31 = vmax.f32 %v640_v28, 0.0 }
 0x137   :  { %v906_v32 = vpack.c.bf16 %v850_v31, %v849_v30 }
 0x138   :  { %v644_v33 = vpop.f32.mrb[32].mxu0 }
 0x139   :  { %v645_v34 = vadd.f32 %v644_v33, %v4215_v11  ;;  %v646_v35 = vpop.f32.mrb[33].mxu0  ;;  %3537 = vmatmul.mubr.msk.bf16.gmra.mrb[12].mxu1 %vm967_vm2, %v906_v32 }
 0x13a   :  { %v647_v36 = vpop.f32.mrb[34].mxu0 }
 0x13b   :  { %v648_v37 = vadd.f32 %v647_v36, %v4215_v11  ;;  %v649_v38 = vpop.f32.mrb[35].mxu0  ;;  %v851_v39 = vmax.f32 %v645_v34, 0.0 }
 0x13d   :  { %v852_v40 = vmax.f32 %v648_v37, 0.0 }
 0x13f   :  { %v907_v41 = vpack.c.bf16 %v852_v40, %v851_v39 }
 0x140   :  { %v652_v42 = vpop.f32.mrb[36].mxu0 }
 0x141   :  { %v653_v43 = vadd.f32 %v652_v42, %v4215_v11  ;;  %v654_v44 = vpop.f32.mrb[37].mxu0  ;;  %3540 = vmatprep.mubr.msk.bf16.mxu1 %vm967_vm2, %v907_v41 }
 0x142   :  { %v655_v45 = vpop.f32.mrb[38].mxu0 }
 0x143   :  { %v656_v46 = vadd.f32 %v655_v45, %v4215_v11  ;;  %v657_v47 = vpop.f32.mrb[39].mxu0  ;;  %v853_v48 = vmax.f32 %v653_v43, 0.0  ;;  %v3803_v43 = vld [vmem:[%s4874_s2 + $0xd8] ss:$8 sps:$4 sm:$0xff]  }
 0x144   :  { %3590 = vmatprep.subr.bf16.mxu1 %v3803_v43  ;;  %v3804_v47 = vld [vmem:[%s4874_s2 + $0xe8] ss:$8 sps:$4 sm:$0xff]  }
 0x145   :  { %v854_v49 = vmax.f32 %v656_v46, 0.0  ;;  %3591 = vmatpush3.bf16.msra.mxu1 %v3803_v43 }
 0x146   :  { %3592 = vmatprep.subr.bf16.mxu1 %v3804_v47 }
 0x147   :  { %v908_v50 = vpack.c.bf16 %v854_v49, %v853_v48 }
 0x148   :  { %v660_v51 = vpop.f32.mrb[40].mxu0 }
 0x149   :  { %v661_v52 = vadd.f32 %v660_v51, %v4215_v11  ;;  %v662_v53 = vpop.f32.mrb[41].mxu0  ;;  %3541 = vmatmul.mubr.msk.bf16.gmra.mrb[16].mxu1 %vm967_vm2, %v908_v50 }
 0x14a   :  { %v663_v54 = vpop.f32.mrb[42].mxu0  ;;  %3593 = vmatpush3.bf16.msra.mxu1 %v3804_v47 }
 0x14b   :  { %v664_v55 = vadd.f32 %v663_v54, %v4215_v11  ;;  %v665_v56 = vpop.f32.mrb[43].mxu0  ;;  %v855_v57 = vmax.f32 %v661_v52, 0.0  ;;  %v3805_v54 = vld [vmem:[%s4874_s2 + $0xf8] ss:$8 sps:$4 sm:$0xff]  }
 0x14c   :  { %3594 = vmatprep.subr.bf16.mxu1 %v3805_v54 }
 0x14d   :  { %v856_v58 = vmax.f32 %v664_v55, 0.0 }
 0x14e   :  { %3595 = vmatpush3.bf16.msra.mxu1 %v3805_v54 }
 0x14f   :  { %v909_v59 = vpack.c.bf16 %v856_v58, %v855_v57  ;;  %2330 = vmatprep.subr.bf16.mxu1 %v3937_v0 }
 0x150   :  { %v668_v60 = vpop.f32.mrb[44].mxu0 }
 0x151   :  { %v669_v61 = vadd.f32 %v668_v60, %v4215_v11  ;;  %v670_v62 = vpop.f32.mrb[45].mxu0  ;;  %3544 = vmatprep.mubr.msk.bf16.mxu1 %vm967_vm2, %v909_v59 }
 0x152   :  { %v671_v63 = vpop.f32.mrb[46].mxu0 }
 0x153   :  { %v672_v1 = vadd.f32 %v671_v63, %v4215_v11  ;;  %v673_v2 = vpop.f32.mrb[47].mxu0  ;;  %v857_v3 = vmax.f32 %v669_v61, 0.0 }
 0x155   :  { %v858_v4 = vmax.f32 %v672_v1, 0.0 }
 0x157   :  { %v910_v5 = vpack.c.bf16 %v858_v4, %v857_v3 }
 0x158   :  { %v676_v7 = vpop.f32.mrb[48].mxu0 }
 0x159   :  { %v677_v8 = vadd.f32 %v676_v7, %v4215_v11  ;;  %v678_v10 = vpop.f32.mrb[49].mxu0  ;;  %3545 = vmatmul.mubr.msk.bf16.gmra.mrb[20].mxu1 %vm967_vm2, %v910_v5 }
 0x15a   :  { %v679_v12 = vpop.f32.mrb[50].mxu0 }
 0x15b   :  { %v680_v13 = vadd.f32 %v679_v12, %v4215_v11  ;;  %v681_v14 = vpop.f32.mrb[51].mxu0  ;;  %v859_v15 = vmax.f32 %v677_v8, 0.0 }
 0x15d   :  { %v860_v16 = vmax.f32 %v680_v13, 0.0 }
 0x15f   :  { %v911_v17 = vpack.c.bf16 %v860_v16, %v859_v15 }
 0x160   :  { %v684_v18 = vpop.f32.mrb[52].mxu0 }
 0x161   :  { %v685_v19 = vadd.f32 %v684_v18, %v4215_v11  ;;  %v686_v20 = vpop.f32.mrb[53].mxu0  ;;  %3548 = vmatprep.mubr.msk.bf16.mxu1 %vm967_vm2, %v911_v17 }
 0x162   :  { %v687_v21 = vpop.f32.mrb[54].mxu0 }
 0x163   :  { %v688_v22 = vadd.f32 %v687_v21, %v4215_v11  ;;  %v689_v23 = vpop.f32.mrb[55].mxu0  ;;  %v861_v25 = vmax.f32 %v685_v19, 0.0 }
 0x165   :  { %v862_v26 = vmax.f32 %v688_v22, 0.0 }
 0x167   :  { %v912_v27 = vpack.c.bf16 %v862_v26, %v861_v25 }
 0x168   :  { %v692_v28 = vpop.f32.mrb[56].mxu0 }
 0x169   :  { %v693_v29 = vadd.f32 %v692_v28, %v4215_v11  ;;  %v694_v30 = vpop.f32.mrb[57].mxu0  ;;  %3549 = vmatmul.mubr.msk.bf16.gmra.mrb[24].mxu1 %vm967_vm2, %v912_v27 }
 0x16a   :  { %v695_v31 = vpop.f32.mrb[58].mxu0 }
 0x16b   :  { %v696_v32 = vadd.f32 %v695_v31, %v4215_v11  ;;  %v697_v33 = vpop.f32.mrb[59].mxu0  ;;  %v863_v34 = vmax.f32 %v693_v29, 0.0 }
 0x16d   :  { %v864_v35 = vmax.f32 %v696_v32, 0.0 }
 0x16f   :  { %v913_v36 = vpack.c.bf16 %v864_v35, %v863_v34 }
 0x170   :  { %v700_v37 = vpop.f32.mrb[60].mxu0 }
 0x171   :  { %v701_v38 = vadd.f32 %v700_v37, %v4215_v11  ;;  %v702_v39 = vpop.f32.mrb[61].mxu0  ;;  %3552 = vmatprep.mubr.msk.bf16.mxu1 %vm967_vm2, %v913_v36 }
 0x172   :  { %v703_v40 = vpop.f32.mrb[62].mxu0 }
 0x173   :  { %v704_v41 = vadd.f32 %v703_v40, %v4215_v11  ;;  %v705_v42 = vpop.f32.mrb[63].mxu0  ;;  %v865_v44 = vmax.f32 %v701_v38, 0.0 }
 0x175   :  { %v866_v45 = vmax.f32 %v704_v41, 0.0 }
 0x177   :  { %v914_v46 = vpack.c.bf16 %v866_v45, %v865_v44 }
 0x178   :  { %v708_v48 = vpop.f32.mrb[64].mxu0 }
 0x179   :  { %v709_v49 = vadd.f32 %v708_v48, %v4215_v11  ;;  %v710_v50 = vpop.f32.mrb[65].mxu0  ;;  %3553 = vmatmul.mubr.msk.bf16.gmra.mrb[28].mxu1 %vm967_vm2, %v914_v46 }
 0x17a   :  { %v711_v51 = vpop.f32.mrb[66].mxu0 }
 0x17b   :  { %v712_v52 = vadd.f32 %v711_v51, %v4215_v11  ;;  %v713_v53 = vpop.f32.mrb[67].mxu0  ;;  %v867_v55 = vmax.f32 %v709_v49, 0.0 }
 0x17d   :  { %v868_v56 = vmax.f32 %v712_v52, 0.0 }
 0x17f   :  { %v915_v57 = vpack.c.bf16 %v868_v56, %v867_v55 }
 0x180   :  { %v716_v58 = vpop.f32.mrb[68].mxu0 }
 0x181   :  { %v717_v59 = vadd.f32 %v716_v58, %v4215_v11  ;;  %v718_v60 = vpop.f32.mrb[69].mxu0  ;;  %3556 = vmatprep.mubr.msk.bf16.mxu1 %vm967_vm2, %v915_v57 }
 0x182   :  { %v719_v61 = vpop.f32.mrb[70].mxu0 }
 0x183   :  { %v720_v62 = vadd.f32 %v719_v61, %v4215_v11  ;;  %v721_v63 = vpop.f32.mrb[71].mxu0  ;;  %v869_v1 = vmax.f32 %v717_v59, 0.0 }
 0x185   :  { %v870_v2 = vmax.f32 %v720_v62, 0.0 }
 0x187   :  { %v916_v3 = vpack.c.bf16 %v870_v2, %v869_v1 }
 0x188   :  { %v724_v4 = vpop.f32.mrb[72].mxu0 }
 0x189   :  { %v725_v5 = vadd.f32 %v724_v4, %v4215_v11  ;;  %v726_v7 = vpop.f32.mrb[73].mxu0  ;;  %3557 = vmatmul.mubr.msk.bf16.gmra.mrb[32].mxu1 %vm967_vm2, %v916_v3 }
 0x18a   :  { %v727_v8 = vpop.f32.mrb[74].mxu0 }
 0x18b   :  { %v728_v10 = vadd.f32 %v727_v8, %v4215_v11  ;;  %v729_v12 = vpop.f32.mrb[75].mxu0  ;;  %v871_v13 = vmax.f32 %v725_v5, 0.0 }
 0x18d   :  { %v872_v14 = vmax.f32 %v728_v10, 0.0 }
 0x18f   :  { %v917_v15 = vpack.c.bf16 %v872_v14, %v871_v13 }
 0x190   :  { %v732_v16 = vpop.f32.mrb[76].mxu0 }
 0x191   :  { %v733_v17 = vadd.f32 %v732_v16, %v4215_v11  ;;  %v734_v18 = vpop.f32.mrb[77].mxu0  ;;  %3560 = vmatprep.mubr.msk.bf16.mxu1 %vm967_vm2, %v917_v15 }
 0x192   :  { %v735_v19 = vpop.f32.mrb[78].mxu0 }
 0x193   :  { %v736_v20 = vadd.f32 %v735_v19, %v4215_v11  ;;  %v737_v21 = vpop.f32.mrb[79].mxu0  ;;  %v873_v22 = vmax.f32 %v733_v17, 0.0 }
 0x195   :  { %v874_v23 = vmax.f32 %v736_v20, 0.0 }
 0x197   :  { %v918_v24 = vpack.c.bf16 %v874_v23, %v873_v22 }
 0x198   :  { %v740_v25 = vpop.f32.mrb[80].mxu0 }
 0x199   :  { %v741_v26 = vadd.f32 %v740_v25, %v4215_v11  ;;  %v742_v27 = vpop.f32.mrb[81].mxu0  ;;  %3561 = vmatmul.mubr.msk.bf16.gmra.mrb[36].mxu1 %vm967_vm2, %v918_v24 }
 0x19a   :  { %v743_v28 = vpop.f32.mrb[82].mxu0 }
 0x19b   :  { %v744_v29 = vadd.f32 %v743_v28, %v4215_v11  ;;  %v745_v30 = vpop.f32.mrb[83].mxu0  ;;  %v875_v31 = vmax.f32 %v741_v26, 0.0 }
 0x19d   :  { %v876_v32 = vmax.f32 %v744_v29, 0.0 }
 0x19f   :  { %v919_v33 = vpack.c.bf16 %v876_v32, %v875_v31 }
 0x1a0   :  { %v748_v34 = vpop.f32.mrb[84].mxu0 }
 0x1a1   :  { %v749_v35 = vadd.f32 %v748_v34, %v4215_v11  ;;  %v750_v36 = vpop.f32.mrb[85].mxu0  ;;  %3564 = vmatprep.mubr.msk.bf16.mxu1 %vm967_vm2, %v919_v33 }
 0x1a2   :  { %v751_v37 = vpop.f32.mrb[86].mxu0  ;;  %v941_v36 = vsub.s32 1, %v4199_v6 }
 0x1a3   :  { %v752_v38 = vadd.f32 %v751_v37, %v4215_v11  ;;  %v753_v39 = vpop.f32.mrb[87].mxu0  ;;  %v877_v40 = vmax.f32 %v749_v35, 0.0 }
 0x1a5   :  { %v878_v41 = vmax.f32 %v752_v38, 0.0 }
 0x1a7   :  { %v920_v42 = vpack.c.bf16 %v878_v41, %v877_v40  ;;  %v4349_v41 = vrot.slane %v4209_v9, %v941_v36 }
 0x1a8   :  { %v756_v43 = vpop.f32.mrb[88].mxu0 }
 0x1a9   :  { %v757_v44 = vadd.f32 %v756_v43, %v4215_v11  ;;  %v758_v45 = vpop.f32.mrb[89].mxu0  ;;  %3565 = vmatmul.mubr.msk.bf16.gmra.mrb[40].mxu1 %vm967_vm2, %v920_v42 }
 0x1aa   :  { %v759_v46 = vpop.f32.mrb[90].mxu0 }
 0x1ab   :  { %v760_v47 = vadd.f32 %v759_v46, %v4215_v11  ;;  %v761_v48 = vpop.f32.mrb[91].mxu0  ;;  %v879_v49 = vmax.f32 %v757_v44, 0.0 }
 0x1ad   :  { %v880_v50 = vmax.f32 %v760_v47, 0.0 }
 0x1af   :  { %v921_v51 = vpack.c.bf16 %v880_v50, %v879_v49 }
 0x1b0   :  { %v764_v52 = vpop.f32.mrb[92].mxu0 }
 0x1b1   :  { %v765_v53 = vadd.f32 %v764_v52, %v4215_v11  ;;  %v766_v54 = vpop.f32.mrb[93].mxu0  ;;  %3568 = vmatprep.mubr.msk.bf16.mxu1 %vm967_vm2, %v921_v51 }
 0x1b2   :  { %v767_v55 = vpop.f32.mrb[94].mxu0 }
 0x1b3   :  { %v768_v56 = vadd.f32 %v767_v55, %v4215_v11  ;;  %v769_v57 = vpop.f32.mrb[95].mxu0  ;;  %v881_v58 = vmax.f32 %v765_v53, 0.0 }
 0x1b5   :  { %v882_v59 = vmax.f32 %v768_v56, 0.0 }
 0x1b7   :  { %v922_v60 = vpack.c.bf16 %v882_v59, %v881_v58 }
 0x1b8   :  { %v772_v61 = vpop.f32.mrb[96].mxu0 }
 0x1b9   :  { %v773_v62 = vadd.f32 %v772_v61, %v4215_v11  ;;  %v774_v63 = vpop.f32.mrb[97].mxu0  ;;  %3569 = vmatmul.mubr.msk.bf16.gmra.mrb[44].mxu1 %vm967_vm2, %v922_v60 }
 0x1ba   :  { %v775_v1 = vpop.f32.mrb[98].mxu0 }
 0x1bb   :  { %v776_v2 = vadd.f32 %v775_v1, %v4215_v11  ;;  %v777_v3 = vpop.f32.mrb[99].mxu0  ;;  %v883_v4 = vmax.f32 %v773_v62, 0.0 }
 0x1bd   :  { %v884_v5 = vmax.f32 %v776_v2, 0.0 }
 0x1bf   :  { %v923_v7 = vpack.c.bf16 %v884_v5, %v883_v4 }
 0x1c0   :  { %v780_v8 = vpop.f32.mrb[100].mxu0 }
 0x1c1   :  { %v781_v10 = vadd.f32 %v780_v8, %v4215_v11  ;;  %v782_v12 = vpop.f32.mrb[101].mxu0  ;;  %3572 = vmatprep.mubr.msk.bf16.mxu1 %vm967_vm2, %v923_v7 }
 0x1c2   :  { %v783_v13 = vpop.f32.mrb[102].mxu0 }
 0x1c3   :  { %v784_v14 = vadd.f32 %v783_v13, %v4215_v11  ;;  %v785_v15 = vpop.f32.mrb[103].mxu0  ;;  %v885_v16 = vmax.f32 %v781_v10, 0.0 }
 0x1c5   :  { %v886_v17 = vmax.f32 %v784_v14, 0.0 }
 0x1c7   :  { %v924_v18 = vpack.c.bf16 %v886_v17, %v885_v16 }
 0x1c8   :  { %v788_v19 = vpop.f32.mrb[104].mxu0 }
 0x1c9   :  { %v789_v20 = vadd.f32 %v788_v19, %v4215_v11  ;;  %v790_v21 = vpop.f32.mrb[105].mxu0  ;;  %3573 = vmatmul.mubr.msk.bf16.gmra.mrb[48].mxu1 %vm967_vm2, %v924_v18 }
 0x1ca   :  { %v791_v22 = vpop.f32.mrb[106].mxu0 }
 0x1cb   :  { %v792_v23 = vadd.f32 %v791_v22, %v4215_v11  ;;  %v793_v24 = vpop.f32.mrb[107].mxu0  ;;  %v887_v25 = vmax.f32 %v789_v20, 0.0 }
 0x1cd   :  { %v888_v26 = vmax.f32 %v792_v23, 0.0 }
 0x1cf   :  { %v925_v27 = vpack.c.bf16 %v888_v26, %v887_v25 }
 0x1d0   :  { %v796_v28 = vpop.f32.mrb[108].mxu0 }
 0x1d1   :  { %v797_v29 = vadd.f32 %v796_v28, %v4215_v11  ;;  %v798_v30 = vpop.f32.mrb[109].mxu0  ;;  %3576 = vmatprep.mubr.msk.bf16.mxu1 %vm967_vm2, %v925_v27 }
 0x1d2   :  { %v799_v31 = vpop.f32.mrb[110].mxu0 }
 0x1d3   :  { %v800_v32 = vadd.f32 %v799_v31, %v4215_v11  ;;  %v801_v33 = vpop.f32.mrb[111].mxu0  ;;  %v889_v34 = vmax.f32 %v797_v29, 0.0 }
 0x1d5   :  { %v890_v35 = vmax.f32 %v800_v32, 0.0 }
 0x1d7   :  { %v926_v37 = vpack.c.bf16 %v890_v35, %v889_v34 }
 0x1d8   :  { %v804_v38 = vpop.f32.mrb[112].mxu0 }
 0x1d9   :  { %v805_v39 = vadd.f32 %v804_v38, %v4215_v11  ;;  %v806_v40 = vpop.f32.mrb[113].mxu0  ;;  %3577 = vmatmul.mubr.msk.bf16.gmra.mrb[52].mxu1 %vm967_vm2, %v926_v37 }
 0x1da   :  { %v807_v42 = vpop.f32.mrb[114].mxu0 }
 0x1db   :  { %v808_v43 = vadd.f32 %v807_v42, %v4215_v11  ;;  %v809_v44 = vpop.f32.mrb[115].mxu0  ;;  %v891_v46 = vmax.f32 %v805_v39, 0.0 }
 0x1dc   :  { %v3526_v45 = vpop.f32.mrb[0].mxu1 }
 0x1dd   :  { %v892_v47 = vmax.f32 %v808_v43, 0.0  ;;  %v1107_v48 = vadd.f32 %v3526_v45, %v4349_v41  ;;  %v1098_v49 = vpop.f32.mrb[1].mxu1 }
 0x1de   :  { %v1099_v50 = vadd.f32 %v1098_v49, %v4349_v41  ;;  %v3527_v51 = vpop.f32.mrb[2].mxu1 }
 0x1df   :  { %v927_v52 = vpack.c.bf16 %v892_v47, %v891_v46  ;;  %v1110_v53 = vadd.f32 %v3527_v51, %v4349_v41  ;;  %v1101_v54 = vpop.f32.mrb[3].mxu1  ;;  %v1355_v56 = vmax.f32 %v1107_v48, 0.0 }
 0x1e0   :  { %v1102_v9 = vadd.f32 %v1101_v54, %v4349_v41  ;;  %v812_v55 = vpop.f32.mrb[116].mxu0  ;;  %v1353_v60 = vmax.f32 %v1099_v50, 0.0 }
 0x1e1   :  { %v1356_v57 = vmax.f32 %v1110_v53, 0.0  ;;  %v813_v58 = vadd.f32 %v812_v55, %v4215_v11  ;;  %v814_v59 = vpop.f32.mrb[117].mxu0  ;;  %3580 = vmatprep.mubr.msk.bf16.mxu1 %vm967_vm2, %v927_v52 }
 0x1e2   :  { %v1354_v61 = vmax.f32 %v1102_v9, 0.0  ;;  %v815_v62 = vpop.f32.mrb[118].mxu0 }
 0x1e3   :  { %v1418_v63 = vpack.c.bf16 %v1356_v57, %v1355_v56  ;;  %v816_v1 = vadd.f32 %v815_v62, %v4215_v11  ;;  %v817_v2 = vpop.f32.mrb[119].mxu0  ;;  %v893_v4 = vmax.f32 %v813_v58, 0.0 }
 0x1e4   :  { %v1417_v3 = vpack.c.bf16 %v1354_v61, %v1353_v60 }
 0x1e5   :  { %v894_v5 = vmax.f32 %v816_v1, 0.0 }
 0x1e7   :  { %v928_v7 = vpack.c.bf16 %v894_v5, %v893_v4 }
 0x1e8   :  { %v820_v8 = vpop.f32.mrb[120].mxu0 }
 0x1e9   :  { %v821_v10 = vadd.f32 %v820_v8, %v4215_v11  ;;  %v822_v12 = vpop.f32.mrb[121].mxu0  ;;  %3581 = vmatmul.mubr.msk.bf16.gmra.mrb[56].mxu1 %vm967_vm2, %v928_v7 }
 0x1ea   :  { %v823_v13 = vpop.f32.mrb[122].mxu0 }
 0x1eb   :  { %v824_v14 = vadd.f32 %v823_v13, %v4215_v11  ;;  %v825_v15 = vpop.f32.mrb[123].mxu0  ;;  %v895_v17 = vmax.f32 %v821_v10, 0.0 }
 0x1ec   :  { %v3530_v16 = vpop.f32.mrb[4].mxu1 }
 0x1ed   :  { %v896_v18 = vmax.f32 %v824_v14, 0.0  ;;  %v1123_v19 = vadd.f32 %v3530_v16, %v4349_v41  ;;  %v1114_v20 = vpop.f32.mrb[5].mxu1 }
 0x1ee   :  { %v1115_v21 = vadd.f32 %v1114_v20, %v4349_v41  ;;  %v3531_v22 = vpop.f32.mrb[6].mxu1 }
 0x1ef   :  { %v929_v23 = vpack.c.bf16 %v896_v18, %v895_v17  ;;  %v1126_v24 = vadd.f32 %v3531_v22, %v4349_v41  ;;  %v1117_v25 = vpop.f32.mrb[7].mxu1  ;;  %v1359_v28 = vmax.f32 %v1123_v19, 0.0 }
 0x1f0   :  { %v1118_v26 = vadd.f32 %v1117_v25, %v4349_v41  ;;  %v828_v27 = vpop.f32.mrb[124].mxu0  ;;  %v1357_v32 = vmax.f32 %v1115_v21, 0.0 }
 0x1f1   :  { %v1360_v29 = vmax.f32 %v1126_v24, 0.0  ;;  %v829_v30 = vadd.f32 %v828_v27, %v4215_v11  ;;  %v830_v31 = vpop.f32.mrb[125].mxu0  ;;  %3584 = vmatprep.mubr.msk.bf16.mxu1 %vm967_vm2, %v929_v23 }
 0x1f2   :  { %v1358_v33 = vmax.f32 %v1118_v26, 0.0  ;;  %v831_v34 = vpop.f32.mrb[126].mxu0 }
 0x1f3   :  { %v1420_v35 = vpack.c.bf16 %v1360_v29, %v1359_v28  ;;  %v832_v36 = vadd.f32 %v831_v34, %v4215_v11  ;;  %v833_v37 = vpop.f32.mrb[127].mxu0  ;;  %v897_v39 = vmax.f32 %v829_v30, 0.0 }
 0x1f4   :  { %v1419_v38 = vpack.c.bf16 %v1358_v33, %v1357_v32 }
 0x1f5   :  { %v898_v40 = vmax.f32 %v832_v36, 0.0 }
 0x1f7   :  { %v930_v42 = vpack.c.bf16 %v898_v40, %v897_v39 }
 0x1f9   :  { %3585 = vmatmul.mubr.msk.bf16.gmra.mrb[60].mxu1 %vm967_vm2, %v930_v42 }
 0x1fa   :  { %3596 = vmatprep.mubr.msk.bf16.mxu1 %vm967_vm2, %v1417_v3 }
 0x1fc   :  { %v3534_v43 = vpop.f32.mrb[8].mxu1 }
 0x1fd   :  { %v1139_v44 = vadd.f32 %v3534_v43, %v4349_v41  ;;  %v1130_v45 = vpop.f32.mrb[9].mxu1 }
 0x1fe   :  { %v1131_v46 = vadd.f32 %v1130_v45, %v4349_v41  ;;  %v3535_v47 = vpop.f32.mrb[10].mxu1 }
 0x1ff   :  { %v1142_v48 = vadd.f32 %v3535_v47, %v4349_v41  ;;  %v1133_v49 = vpop.f32.mrb[11].mxu1  ;;  %v1363_v50 = vmax.f32 %v1139_v44, 0.0 }
 0x200   :  { %v1134_v11 = vadd.f32 %v1133_v49, %v4349_v41  ;;  %v1361_v52 = vmax.f32 %v1131_v46, 0.0 }
 0x201   :  { %v1364_v51 = vmax.f32 %v1142_v48, 0.0  ;;  %3597 = vmatmul.mubr.msk.bf16.vlgmr.msra.gmra.mrb[64].mxu1 %vm967_vm2, %v1418_v63 }
 0x202   :  { %v1362_v53 = vmax.f32 %v1134_v11, 0.0  ;;  %3600 = vmatprep.mubr.msk.bf16.mxu1 %vm967_vm2, %v1419_v38 }
 0x203   :  { %v1422_v54 = vpack.c.bf16 %v1364_v51, %v1363_v50 }
 0x204   :  { %v1421_v9 = vpack.c.bf16 %v1362_v53, %v1361_v52 }
 0x209   :  { %3601 = vmatmul.mubr.msk.bf16.gmra.mrb[68].mxu1 %vm967_vm2, %v1420_v35 }
 0x20a   :  { %3604 = vmatprep.mubr.msk.bf16.mxu1 %vm967_vm2, %v1421_v9 }
 0x20c   :  { %v3538_v55 = vpop.f32.mrb[12].mxu1 }
 0x20d   :  { %v1155_v56 = vadd.f32 %v3538_v55, %v4349_v41  ;;  %v1146_v57 = vpop.f32.mrb[13].mxu1 }
 0x20e   :  { %v1147_v58 = vadd.f32 %v1146_v57, %v4349_v41  ;;  %v3539_v59 = vpop.f32.mrb[14].mxu1 }
 0x20f   :  { %v1158_v60 = vadd.f32 %v3539_v59, %v4349_v41  ;;  %v1149_v61 = vpop.f32.mrb[15].mxu1  ;;  %v1367_v63 = vmax.f32 %v1155_v56, 0.0 }
 0x210   :  { %v1150_v62 = vadd.f32 %v1149_v61, %v4349_v41  ;;  %v1365_v2 = vmax.f32 %v1147_v58, 0.0 }
 0x211   :  { %v1368_v1 = vmax.f32 %v1158_v60, 0.0  ;;  %3605 = vmatmul.mubr.msk.bf16.gmra.mrb[72].mxu1 %vm967_vm2, %v1422_v54 }
 0x212   :  { %v1366_v3 = vmax.f32 %v1150_v62, 0.0 }
 0x213   :  { %v1424_v4 = vpack.c.bf16 %v1368_v1, %v1367_v63 }
 0x214   :  { %v1423_v5 = vpack.c.bf16 %v1366_v3, %v1365_v2 }
 0x216   :  { %3608 = vmatprep.mubr.msk.bf16.mxu1 %vm967_vm2, %v1423_v5 }
 0x219   :  { %3609 = vmatmul.mubr.msk.bf16.gmra.mrb[76].mxu1 %vm967_vm2, %v1424_v4 }
 0x21c   :  { %v3542_v7 = vpop.f32.mrb[16].mxu1 }
 0x21d   :  { %v1171_v8 = vadd.f32 %v3542_v7, %v4349_v41  ;;  %v1162_v10 = vpop.f32.mrb[17].mxu1 }
 0x21e   :  { %v1163_v12 = vadd.f32 %v1162_v10, %v4349_v41  ;;  %v3543_v13 = vpop.f32.mrb[18].mxu1 }
 0x21f   :  { %v1174_v14 = vadd.f32 %v3543_v13, %v4349_v41  ;;  %v1165_v15 = vpop.f32.mrb[19].mxu1  ;;  %v1371_v17 = vmax.f32 %v1171_v8, 0.0 }
 0x220   :  { %v1166_v16 = vadd.f32 %v1165_v15, %v4349_v41  ;;  %v1369_v19 = vmax.f32 %v1163_v12, 0.0 }
 0x221   :  { %v1372_v18 = vmax.f32 %v1174_v14, 0.0 }
 0x222   :  { %v1370_v20 = vmax.f32 %v1166_v16, 0.0 }
 0x223   :  { %v1426_v21 = vpack.c.bf16 %v1372_v18, %v1371_v17 }
 0x224   :  { %v1425_v22 = vpack.c.bf16 %v1370_v20, %v1369_v19 }
 0x226   :  { %3612 = vmatprep.mubr.msk.bf16.mxu1 %vm967_vm2, %v1425_v22 }
 0x227   :  { %3613 = vmatmul.mubr.msk.bf16.gmra.mrb[80].mxu1 %vm967_vm2, %v1426_v21 }
 0x22c   :  { %v3546_v23 = vpop.f32.mrb[20].mxu1 }
 0x22d   :  { %v1187_v24 = vadd.f32 %v3546_v23, %v4349_v41  ;;  %v1178_v25 = vpop.f32.mrb[21].mxu1 }
 0x22e   :  { %v1179_v26 = vadd.f32 %v1178_v25, %v4349_v41  ;;  %v3547_v27 = vpop.f32.mrb[22].mxu1 }
 0x22f   :  { %v1190_v28 = vadd.f32 %v3547_v27, %v4349_v41  ;;  %v1181_v29 = vpop.f32.mrb[23].mxu1  ;;  %v1375_v31 = vmax.f32 %v1187_v24, 0.0 }
 0x230   :  { %v1182_v30 = vadd.f32 %v1181_v29, %v4349_v41  ;;  %v1373_v33 = vmax.f32 %v1179_v26, 0.0 }
 0x231   :  { %v1376_v32 = vmax.f32 %v1190_v28, 0.0 }
 0x232   :  { %v1374_v34 = vmax.f32 %v1182_v30, 0.0 }
 0x233   :  { %v1428_v35 = vpack.c.bf16 %v1376_v32, %v1375_v31 }
 0x234   :  { %v1427_v36 = vpack.c.bf16 %v1374_v34, %v1373_v33 }
 0x236   :  { %3616 = vmatprep.mubr.msk.bf16.mxu1 %vm967_vm2, %v1427_v36 }
 0x237   :  { %3617 = vmatmul.mubr.msk.bf16.gmra.mrb[84].mxu1 %vm967_vm2, %v1428_v35 }
 0x23c   :  { %v3550_v37 = vpop.f32.mrb[24].mxu1 }
 0x23d   :  { %v1203_v38 = vadd.f32 %v3550_v37, %v4349_v41  ;;  %v1194_v39 = vpop.f32.mrb[25].mxu1 }
 0x23e   :  { %v1195_v40 = vadd.f32 %v1194_v39, %v4349_v41  ;;  %v3551_v42 = vpop.f32.mrb[26].mxu1 }
 0x23f   :  { %v1206_v43 = vadd.f32 %v3551_v42, %v4349_v41  ;;  %v1197_v44 = vpop.f32.mrb[27].mxu1  ;;  %v1379_v46 = vmax.f32 %v1203_v38, 0.0 }
 0x240   :  { %v1198_v45 = vadd.f32 %v1197_v44, %v4349_v41  ;;  %v1377_v48 = vmax.f32 %v1195_v40, 0.0 }
 0x241   :  { %v1380_v47 = vmax.f32 %v1206_v43, 0.0 }
 0x242   :  { %v1378_v49 = vmax.f32 %v1198_v45, 0.0 }
 0x243   :  { %v1430_v11 = vpack.c.bf16 %v1380_v47, %v1379_v46 }
 0x244   :  { %v1429_v50 = vpack.c.bf16 %v1378_v49, %v1377_v48 }
 0x246   :  { %3620 = vmatprep.mubr.msk.bf16.mxu1 %vm967_vm2, %v1429_v50 }
 0x247   :  { %3621 = vmatmul.mubr.msk.bf16.gmra.mrb[88].mxu1 %vm967_vm2, %v1430_v11 }
 0x24c   :  { %v3554_v51 = vpop.f32.mrb[28].mxu1 }
 0x24d   :  { %v1219_v52 = vadd.f32 %v3554_v51, %v4349_v41  ;;  %v1210_v53 = vpop.f32.mrb[29].mxu1 }
 0x24e   :  { %v1211_v54 = vadd.f32 %v1210_v53, %v4349_v41  ;;  %v3555_v9 = vpop.f32.mrb[30].mxu1 }
 0x24f   :  { %v1222_v55 = vadd.f32 %v3555_v9, %v4349_v41  ;;  %v1213_v56 = vpop.f32.mrb[31].mxu1  ;;  %v1383_v58 = vmax.f32 %v1219_v52, 0.0 }
 0x250   :  { %v1214_v57 = vadd.f32 %v1213_v56, %v4349_v41  ;;  %v1381_v60 = vmax.f32 %v1211_v54, 0.0 }
 0x251   :  { %v1384_v59 = vmax.f32 %v1222_v55, 0.0 }
 0x252   :  { %v1382_v61 = vmax.f32 %v1214_v57, 0.0 }
 0x253   :  { %v1432_v62 = vpack.c.bf16 %v1384_v59, %v1383_v58 }
 0x254   :  { %v1431_v63 = vpack.c.bf16 %v1382_v61, %v1381_v60 }
 0x256   :  { %3624 = vmatprep.mubr.msk.bf16.mxu1 %vm967_vm2, %v1431_v63 }
 0x257   :  { %3625 = vmatmul.mubr.msk.bf16.gmra.mrb[92].mxu1 %vm967_vm2, %v1432_v62 }
 0x25c   :  { %v3558_v1 = vpop.f32.mrb[32].mxu1 }
 0x25d   :  { %v1235_v2 = vadd.f32 %v3558_v1, %v4349_v41  ;;  %v1226_v3 = vpop.f32.mrb[33].mxu1 }
 0x25e   :  { %v1227_v4 = vadd.f32 %v1226_v3, %v4349_v41  ;;  %v3559_v5 = vpop.f32.mrb[34].mxu1 }
 0x25f   :  { %v1238_v7 = vadd.f32 %v3559_v5, %v4349_v41  ;;  %v1229_v8 = vpop.f32.mrb[35].mxu1  ;;  %v1387_v12 = vmax.f32 %v1235_v2, 0.0 }
 0x260   :  { %v1230_v10 = vadd.f32 %v1229_v8, %v4349_v41  ;;  %v1385_v14 = vmax.f32 %v1227_v4, 0.0 }
 0x261   :  { %v1388_v13 = vmax.f32 %v1238_v7, 0.0 }
 0x262   :  { %v1386_v15 = vmax.f32 %v1230_v10, 0.0 }
 0x263   :  { %v1434_v16 = vpack.c.bf16 %v1388_v13, %v1387_v12 }
 0x264   :  { %v1433_v17 = vpack.c.bf16 %v1386_v15, %v1385_v14 }
 0x266   :  { %3628 = vmatprep.mubr.msk.bf16.mxu1 %vm967_vm2, %v1433_v17 }
 0x267   :  { %3629 = vmatmul.mubr.msk.bf16.gmra.mrb[96].mxu1 %vm967_vm2, %v1434_v16 }
 0x26c   :  { %v3562_v18 = vpop.f32.mrb[36].mxu1 }
 0x26d   :  { %v1251_v19 = vadd.f32 %v3562_v18, %v4349_v41  ;;  %v1242_v20 = vpop.f32.mrb[37].mxu1 }
 0x26e   :  { %v1243_v21 = vadd.f32 %v1242_v20, %v4349_v41  ;;  %v3563_v22 = vpop.f32.mrb[38].mxu1 }
 0x26f   :  { %v1254_v23 = vadd.f32 %v3563_v22, %v4349_v41  ;;  %v1245_v24 = vpop.f32.mrb[39].mxu1  ;;  %v1391_v26 = vmax.f32 %v1251_v19, 0.0 }
 0x270   :  { %v1246_v25 = vadd.f32 %v1245_v24, %v4349_v41  ;;  %v1389_v28 = vmax.f32 %v1243_v21, 0.0 }
 0x271   :  { %v1392_v27 = vmax.f32 %v1254_v23, 0.0 }
 0x272   :  { %v1390_v29 = vmax.f32 %v1246_v25, 0.0 }
 0x273   :  { %v1436_v30 = vpack.c.bf16 %v1392_v27, %v1391_v26 }
 0x274   :  { %v1435_v31 = vpack.c.bf16 %v1390_v29, %v1389_v28 }
 0x276   :  { %3632 = vmatprep.mubr.msk.bf16.mxu1 %vm967_vm2, %v1435_v31 }
 0x277   :  { %3633 = vmatmul.mubr.msk.bf16.gmra.mrb[100].mxu1 %vm967_vm2, %v1436_v30 }
 0x27c   :  { %v3566_v32 = vpop.f32.mrb[40].mxu1 }
 0x27d   :  { %v1267_v33 = vadd.f32 %v3566_v32, %v4349_v41  ;;  %v1258_v34 = vpop.f32.mrb[41].mxu1 }
 0x27e   :  { %v1259_v35 = vadd.f32 %v1258_v34, %v4349_v41  ;;  %v3567_v36 = vpop.f32.mrb[42].mxu1 }
 0x27f   :  { %v1270_v37 = vadd.f32 %v3567_v36, %v4349_v41  ;;  %v1261_v38 = vpop.f32.mrb[43].mxu1  ;;  %v1395_v40 = vmax.f32 %v1267_v33, 0.0 }
 0x280   :  { %v1262_v39 = vadd.f32 %v1261_v38, %v4349_v41  ;;  %v1393_v43 = vmax.f32 %v1259_v35, 0.0 }
 0x281   :  { %v1396_v42 = vmax.f32 %v1270_v37, 0.0 }
 0x282   :  { %v1394_v44 = vmax.f32 %v1262_v39, 0.0 }
 0x283   :  { %v1438_v45 = vpack.c.bf16 %v1396_v42, %v1395_v40 }
 0x284   :  { %v1437_v46 = vpack.c.bf16 %v1394_v44, %v1393_v43 }
 0x286   :  { %3636 = vmatprep.mubr.msk.bf16.mxu1 %vm967_vm2, %v1437_v46 }
 0x287   :  { %3637 = vmatmul.mubr.msk.bf16.gmra.mrb[104].mxu1 %vm967_vm2, %v1438_v45  ;;  %v1459_v45 = vsub.s32 2, %v4199_v6 }
 0x28c   :  { %v3570_v47 = vpop.f32.mrb[44].mxu1 }
 0x28d   :  { %v1283_v48 = vadd.f32 %v3570_v47, %v4349_v41  ;;  %v1274_v49 = vpop.f32.mrb[45].mxu1 }
 0x28e   :  { %v1275_v11 = vadd.f32 %v1274_v49, %v4349_v41  ;;  %v3571_v50 = vpop.f32.mrb[46].mxu1 }
 0x28f   :  { %v1286_v51 = vadd.f32 %v3571_v50, %v4349_v41  ;;  %v1277_v52 = vpop.f32.mrb[47].mxu1  ;;  %v1399_v54 = vmax.f32 %v1283_v48, 0.0 }
 0x290   :  { %v1278_v53 = vadd.f32 %v1277_v52, %v4349_v41  ;;  %v1397_v55 = vmax.f32 %v1275_v11, 0.0  ;;  %v3911_v52 = vld [vmem:[%s4875_s3] sm:$0xff] }
 0x291   :  { %v1400_v9 = vmax.f32 %v1286_v51, 0.0 }
 0x292   :  { %v1398_v56 = vmax.f32 %v1278_v53, 0.0  ;;  %v4460_v53 = vrot.slane %v3911_v52, %v1459_v45 }
 0x293   :  { %v1440_v57 = vpack.c.bf16 %v1400_v9, %v1399_v54 }
 0x294   :  { %v1439_v58 = vpack.c.bf16 %v1398_v56, %v1397_v55 }
 0x296   :  { %3640 = vmatprep.mubr.msk.bf16.mxu1 %vm967_vm2, %v1439_v58 }
 0x297   :  { %3641 = vmatmul.mubr.msk.bf16.gmra.mrb[108].mxu1 %vm967_vm2, %v1440_v57 }
 0x29c   :  { %v3574_v59 = vpop.f32.mrb[48].mxu1 }
 0x29d   :  { %v1299_v60 = vadd.f32 %v3574_v59, %v4349_v41  ;;  %v1290_v61 = vpop.f32.mrb[49].mxu1 }
 0x29e   :  { %v1291_v62 = vadd.f32 %v1290_v61, %v4349_v41  ;;  %v3575_v63 = vpop.f32.mrb[50].mxu1 }
 0x29f   :  { %v1302_v1 = vadd.f32 %v3575_v63, %v4349_v41  ;;  %v1293_v2 = vpop.f32.mrb[51].mxu1  ;;  %v1403_v4 = vmax.f32 %v1299_v60, 0.0 }
 0x2a0   :  { %v1294_v3 = vadd.f32 %v1293_v2, %v4349_v41  ;;  %v1401_v7 = vmax.f32 %v1291_v62, 0.0 }
 0x2a1   :  { %v1404_v5 = vmax.f32 %v1302_v1, 0.0 }
 0x2a2   :  { %v1402_v8 = vmax.f32 %v1294_v3, 0.0 }
 0x2a3   :  { %v1442_v10 = vpack.c.bf16 %v1404_v5, %v1403_v4 }
 0x2a4   :  { %v1441_v12 = vpack.c.bf16 %v1402_v8, %v1401_v7 }
 0x2a6   :  { %3644 = vmatprep.mubr.msk.bf16.mxu1 %vm967_vm2, %v1441_v12 }
 0x2a7   :  { %3645 = vmatmul.mubr.msk.bf16.gmra.mrb[112].mxu1 %vm967_vm2, %v1442_v10 }
 0x2ac   :  { %v3578_v13 = vpop.f32.mrb[52].mxu1 }
 0x2ad   :  { %v1315_v14 = vadd.f32 %v3578_v13, %v4349_v41  ;;  %v1306_v15 = vpop.f32.mrb[53].mxu1 }
 0x2ae   :  { %v1307_v16 = vadd.f32 %v1306_v15, %v4349_v41  ;;  %v3579_v17 = vpop.f32.mrb[54].mxu1 }
 0x2af   :  { %v1318_v18 = vadd.f32 %v3579_v17, %v4349_v41  ;;  %v1309_v19 = vpop.f32.mrb[55].mxu1  ;;  %v1407_v21 = vmax.f32 %v1315_v14, 0.0 }
 0x2b0   :  { %v1310_v20 = vadd.f32 %v1309_v19, %v4349_v41  ;;  %v1405_v23 = vmax.f32 %v1307_v16, 0.0 }
 0x2b1   :  { %v1408_v22 = vmax.f32 %v1318_v18, 0.0 }
 0x2b2   :  { %v1406_v24 = vmax.f32 %v1310_v20, 0.0 }
 0x2b3   :  { %v1444_v25 = vpack.c.bf16 %v1408_v22, %v1407_v21 }
 0x2b4   :  { %v1443_v26 = vpack.c.bf16 %v1406_v24, %v1405_v23 }
 0x2b6   :  { %3648 = vmatprep.mubr.msk.bf16.mxu1 %vm967_vm2, %v1443_v26 }
 0x2b7   :  { %3649 = vmatmul.mubr.msk.bf16.gmra.mrb[116].mxu1 %vm967_vm2, %v1444_v25 }
 0x2bc   :  { %v3582_v27 = vpop.f32.mrb[56].mxu1 }
 0x2bd   :  { %v1331_v28 = vadd.f32 %v3582_v27, %v4349_v41  ;;  %v1322_v29 = vpop.f32.mrb[57].mxu1 }
 0x2be   :  { %v1323_v30 = vadd.f32 %v1322_v29, %v4349_v41  ;;  %v3583_v31 = vpop.f32.mrb[58].mxu1 }
 0x2bf   :  { %v1334_v32 = vadd.f32 %v3583_v31, %v4349_v41  ;;  %v1325_v33 = vpop.f32.mrb[59].mxu1  ;;  %v1411_v35 = vmax.f32 %v1331_v28, 0.0 }
 0x2c0   :  { %v1326_v34 = vadd.f32 %v1325_v33, %v4349_v41  ;;  %v1409_v37 = vmax.f32 %v1323_v30, 0.0 }
 0x2c1   :  { %v1412_v36 = vmax.f32 %v1334_v32, 0.0 }
 0x2c2   :  { %v1410_v38 = vmax.f32 %v1326_v34, 0.0 }
 0x2c3   :  { %v1446_v39 = vpack.c.bf16 %v1412_v36, %v1411_v35 }
 0x2c4   :  { %v1445_v40 = vpack.c.bf16 %v1410_v38, %v1409_v37 }
 0x2c6   :  { %3652 = vmatprep.mubr.msk.bf16.mxu1 %vm967_vm2, %v1445_v40 }
 0x2c7   :  { %3653 = vmatmul.mubr.msk.bf16.gmra.mrb[120].mxu1 %vm967_vm2, %v1446_v39 }
 0x2cc   :  { %v3586_v42 = vpop.f32.mrb[60].mxu1 }
 0x2cd   :  { %v1347_v43 = vadd.f32 %v3586_v42, %v4349_v41  ;;  %v1338_v44 = vpop.f32.mrb[61].mxu1 }
 0x2ce   :  { %v1339_v46 = vadd.f32 %v1338_v44, %v4349_v41  ;;  %v3587_v47 = vpop.f32.mrb[62].mxu1 }
 0x2cf   :  { %v1350_v48 = vadd.f32 %v3587_v47, %v4349_v41  ;;  %v1341_v49 = vpop.f32.mrb[63].mxu1  ;;  %v1415_v50 = vmax.f32 %v1347_v43, 0.0 }
 0x2d0   :  { %v1342_v11 = vadd.f32 %v1341_v49, %v4349_v41  ;;  %v1413_v54 = vmax.f32 %v1339_v46, 0.0 }
 0x2d1   :  { %v1416_v51 = vmax.f32 %v1350_v48, 0.0 }
 0x2d2   :  { %v1414_v9 = vmax.f32 %v1342_v11, 0.0 }
 0x2d3   :  { %v1448_v55 = vpack.c.bf16 %v1416_v51, %v1415_v50 }
 0x2d4   :  { %v1447_v56 = vpack.c.bf16 %v1414_v9, %v1413_v54  ;;  %v3598_v57 = vpop.f32.mrb[64].mxu1 }
 0x2d5   :  { %v1624_v58 = vadd.f32 %v3598_v57, %v4460_v53  ;;  %v1615_v59 = vpop.f32.mrb[65].mxu1 }
 0x2d6   :  { %v1616_v60 = vadd.f32 %v1615_v59, %v4460_v53  ;;  %v3599_v61 = vpop.f32.mrb[66].mxu1  ;;  %3656 = vmatprep.mubr.msk.bf16.mxu1 %vm967_vm2, %v1447_v56 }
 0x2d7   :  { %v1627_v41 = vadd.f32 %v3599_v61, %v4460_v53  ;;  %v1618_v62 = vpop.f32.mrb[67].mxu1  ;;  %3657 = vmatmul.mubr.msk.bf16.gmra.mrb[124].mxu1 %vm967_vm2, %v1448_v55  ;;  %v1872_v1 = vmax.f32 %v1624_v58, 0.0 }
 0x2d8   :  { %v1619_v63 = vadd.f32 %v1618_v62, %v4460_v53  ;;  %v1870_v3 = vmax.f32 %v1616_v60, 0.0 }
 0x2d9   :  { %v1873_v2 = vmax.f32 %v1627_v41, 0.0 }
 0x2da   :  { %v1871_v4 = vmax.f32 %v1619_v63, 0.0 }
 0x2db   :  { %v1941_v5 = vmax.f32 %v1872_v1, %v1873_v2 }
 0x2dc   :  { %v1934_v7 = vmax.f32 %v1870_v3, %v1871_v4  ;;  %v3602_v8 = vpop.f32.mrb[68].mxu1 }
 0x2dd   :  { %v1942_v10 = vrot.slane %v1941_v5, 4  ;;  %v1640_v12 = vadd.f32 %v3602_v8, %v4460_v53  ;;  %v1631_v13 = vpop.f32.mrb[69].mxu1 }
 0x2de   :  { %v1935_v14 = vrot.slane %v1934_v7, 4  ;;  %v1632_v15 = vadd.f32 %v1631_v13, %v4460_v53  ;;  %v3603_v16 = vpop.f32.mrb[70].mxu1 }
 0x2df   :  { %v1943_v17 = vmax.f32 %v1941_v5, %v1942_v10  ;;  %v1643_v18 = vadd.f32 %v3603_v16, %v4460_v53  ;;  %v1634_v19 = vpop.f32.mrb[71].mxu1  ;;  %v1876_v23 = vmax.f32 %v1640_v12, 0.0 }
 0x2e0   :  { %v1936_v20 = vmax.f32 %v1934_v7, %v1935_v14  ;;  %v1635_v21 = vadd.f32 %v1634_v19, %v4460_v53  ;;  %v1874_v26 = vmax.f32 %v1632_v15, 0.0 }
 0x2e1   :  { %v1944_v22 = vrot.slane %v1943_v17, 2  ;;  %v1877_v24 = vmax.f32 %v1643_v18, 0.0 }
 0x2e2   :  { %v1937_v25 = vrot.slane %v1936_v20, 2  ;;  %v1875_v27 = vmax.f32 %v1635_v21, 0.0 }
 0x2e3   :  { %v1945_v28 = vmax.f32 %v1943_v17, %v1944_v22  ;;  %v1955_v29 = vmax.f32 %v1876_v23, %v1877_v24 }
 0x2e4   :  { %v1938_v30 = vmax.f32 %v1936_v20, %v1937_v25  ;;  %v1948_v31 = vmax.f32 %v1874_v26, %v1875_v27  ;;  %v3606_v32 = vpop.f32.mrb[72].mxu1 }
 0x2e5   :  { %v1946_v33 = vrot.slane %v1945_v28, 1  ;;  %v1956_v34 = vrot.slane %v1955_v29, 4  ;;  %v1656_v35 = vadd.f32 %v3606_v32, %v4460_v53  ;;  %v1647_v36 = vpop.f32.mrb[73].mxu1 }
 0x2e6   :  { %v1939_v37 = vrot.slane %v1938_v30, 1  ;;  %v1949_v38 = vrot.slane %v1948_v31, 4  ;;  %v1648_v39 = vadd.f32 %v1647_v36, %v4460_v53  ;;  %v3607_v40 = vpop.f32.mrb[74].mxu1 }
 0x2e7   :  { %v1947_v42 = vmax.f32 %v1945_v28, %v1946_v33  ;;  %v1957_v43 = vmax.f32 %v1955_v29, %v1956_v34  ;;  %v1659_v44 = vadd.f32 %v3607_v40, %v4460_v53  ;;  %v1650_v45 = vpop.f32.mrb[75].mxu1  ;;  %v1880_v11 = vmax.f32 %v1656_v35, 0.0 }
 0x2e8   :  { %v1940_v46 = vmax.f32 %v1938_v30, %v1939_v37  ;;  %v1950_v47 = vmax.f32 %v1948_v31, %v1949_v38  ;;  %v1651_v48 = vadd.f32 %v1650_v45, %v4460_v53  ;;  %v1878_v54 = vmax.f32 %v1648_v39, 0.0 }
 0x2e9   :  { %v1958_v49 = vrot.slane %v1957_v43, 2  ;;  %v1881_v50 = vmax.f32 %v1659_v44, 0.0 }
 0x2ea   :  { %v2195_v51 = vsel %vm2194_vm3, %v1947_v42, %v1940_v46  ;;  %v1951_v52 = vrot.slane %v1950_v47, 2  ;;  %v1879_v9 = vmax.f32 %v1651_v48, 0.0 }
 0x2eb   :  { %v1959_v55 = vmax.f32 %v1957_v43, %v1958_v49  ;;  %v1969_v56 = vmax.f32 %v1880_v11, %v1881_v50 }
 0x2ec   :  { %v1952_v57 = vmax.f32 %v1950_v47, %v1951_v52  ;;  %v1962_v58 = vmax.f32 %v1878_v54, %v1879_v9  ;;  %v3610_v59 = vpop.f32.mrb[76].mxu1 }
 0x2ed   :  { %v1960_v60 = vrot.slane %v1959_v55, 1  ;;  %v1970_v61 = vrot.slane %v1969_v56, 4  ;;  %v1672_v41 = vadd.f32 %v3610_v59, %v4460_v53  ;;  %v1663_v62 = vpop.f32.mrb[77].mxu1 }
 0x2ee   :  { %v1953_v63 = vrot.slane %v1952_v57, 1  ;;  %v1963_v1 = vrot.slane %v1962_v58, 4  ;;  %v1664_v2 = vadd.f32 %v1663_v62, %v4460_v53  ;;  %v3611_v3 = vpop.f32.mrb[78].mxu1 }
 0x2ef   :  { %v1971_v4 = vmax.f32 %v1969_v56, %v1970_v61  ;;  %v1675_v5 = vadd.f32 %v3611_v3, %v4460_v53  ;;  %v1666_v7 = vpop.f32.mrb[79].mxu1  ;;  %v1961_v13 = vmax.f32 %v1959_v55, %v1960_v60  ;;  %v1884_v15 = vmax.f32 %v1672_v41, 0.0 }
 0x2f0   :  { %v1954_v8 = vmax.f32 %v1952_v57, %v1953_v63  ;;  %v1964_v10 = vmax.f32 %v1962_v58, %v1963_v1  ;;  %v1667_v12 = vadd.f32 %v1666_v7, %v4460_v53  ;;  %v1882_v19 = vmax.f32 %v1664_v2, 0.0 }
 0x2f1   :  { %v1972_v14 = vrot.slane %v1971_v4, 2  ;;  %v1885_v16 = vmax.f32 %v1675_v5, 0.0 }
 0x2f2   :  { %v2197_v17 = vsel %vm2196_vm4, %v1954_v8, %v2195_v51  ;;  %v1965_v18 = vrot.slane %v1964_v10, 2  ;;  %v1883_v20 = vmax.f32 %v1667_v12, 0.0 }
 0x2f3   :  { %v1973_v21 = vmax.f32 %v1971_v4, %v1972_v14  ;;  %v1983_v22 = vmax.f32 %v1884_v15, %v1885_v16  ;;  %v2199_v23 = vsel %vm2198_vm5, %v1961_v13, %v2197_v17 }
 0x2f4   :  { %v1966_v24 = vmax.f32 %v1964_v10, %v1965_v18  ;;  %v1976_v25 = vmax.f32 %v1882_v19, %v1883_v20 }
 0x2f5   :  { %v1974_v26 = vrot.slane %v1973_v21, 1  ;;  %v1984_v27 = vrot.slane %v1983_v22, 4 }
 0x2f6   :  { %v1967_v28 = vrot.slane %v1966_v24, 1  ;;  %v1977_v29 = vrot.slane %v1976_v25, 4 }
 0x2f7   :  { %v1985_v30 = vmax.f32 %v1983_v22, %v1984_v27  ;;  %v1975_v33 = vmax.f32 %v1973_v21, %v1974_v26 }
 0x2f8   :  { %v1968_v31 = vmax.f32 %v1966_v24, %v1967_v28  ;;  %v1978_v32 = vmax.f32 %v1976_v25, %v1977_v29 }
 0x2f9   :  { %v1986_v34 = vrot.slane %v1985_v30, 2 }
 0x2fa   :  { %v1979_v35 = vrot.slane %v1978_v32, 2  ;;  %v3614_v36 = vpop.f32.mrb[80].mxu1  ;;  %v2201_v37 = vsel %vm2200_vm6, %v1968_v31, %v2199_v23  ;;  %v3806_v31 = vld [vmem:[%s4874_s2 + $0x108] ss:$8 sps:$4 sm:$0xff]  }
 0x2fb   :  { %v1987_v38 = vmax.f32 %v1985_v30, %v1986_v34  ;;  %v1688_v39 = vadd.f32 %v3614_v36, %v4460_v53  ;;  %v1679_v40 = vpop.f32.mrb[81].mxu1  ;;  %v2203_v42 = vsel %vm2202_vm7, %v1975_v33, %v2201_v37  ;;  %2331 = vmatpush1.bf16.msra.mxu1 %v3806_v31 }
 0x2fc   :  { %v1980_v43 = vmax.f32 %v1978_v32, %v1979_v35  ;;  %v1680_v44 = vadd.f32 %v1679_v40, %v4460_v53  ;;  %v3615_v45 = vpop.f32.mrb[82].mxu1  ;;  %2332 = vmatprep.subr.bf16.mxu1 %v3937_v0 }
 0x2fd   :  { %v1691_v46 = vadd.f32 %v3615_v45, %v4460_v53  ;;  %v1682_v47 = vpop.f32.mrb[83].mxu1  ;;  %v1988_v48 = vrot.slane %v1987_v38, 1  ;;  %v1888_v50 = vmax.f32 %v1688_v39, 0.0  ;;  %v3807_v39 = vld [vmem:[%s4874_s2 + $0x118] ss:$8 sps:$4 sm:$0xff]  }
 0x2fe   :  { %v1981_v49 = vrot.slane %v1980_v43, 1  ;;  %v1683_v11 = vadd.f32 %v1682_v47, %v4460_v53  ;;  %v1886_v54 = vmax.f32 %v1680_v44, 0.0 }
 0x2ff   :  { %v1889_v51 = vmax.f32 %v1691_v46, 0.0  ;;  %v1989_v56 = vmax.f32 %v1987_v38, %v1988_v48  ;;  %2333 = vmatpush1.bf16.msra.mxu1 %v3807_v39 }
 0x300   :  { %v1982_v52 = vmax.f32 %v1980_v43, %v1981_v49  ;;  %v1887_v9 = vmax.f32 %v1683_v11, 0.0  ;;  %2334 = vmatprep.subr.bf16.mxu1 %v3937_v0 }
 0x301   :  { %v1997_v55 = vmax.f32 %v1888_v50, %v1889_v51  ;;  %v3808_v50 = vld [vmem:[%s4874_s2 + $0x128] ss:$8 sps:$4 sm:$0xff]  }
 0x302   :  { %v1990_v57 = vmax.f32 %v1886_v54, %v1887_v9  ;;  %v2205_v58 = vsel %vm2204_vm8, %v1982_v52, %v2203_v42 }
 0x303   :  { %v1998_v59 = vrot.slane %v1997_v55, 4  ;;  %v4491_v60 = vsel %vm2206_vm9, %v1989_v56, %v2205_v58  ;;  %2335 = vmatpush1.bf16.msra.mxu1 %v3808_v50  ;;  %v3809_v58 = vld [vmem:[%s4874_s2 + $0x138] ss:$8 sps:$4 sm:$0xff]  }
 0x304   :  { %v1991_v61 = vrot.slane %v1990_v57, 4  ;;  %2336 = vmatprep.subr.bf16.mxu1 %v3937_v0 }
 0x305   :  { %v1999_v41 = vmax.f32 %v1997_v55, %v1998_v59 }
 0x306   :  { %v1992_v62 = vmax.f32 %v1990_v57, %v1991_v61 }
 0x307   :  { %v2000_v63 = vrot.slane %v1999_v41, 2  ;;  %2337 = vmatpush1.bf16.msra.mxu1 %v3809_v58 }
 0x308   :  { %v1993_v1 = vrot.slane %v1992_v62, 2  ;;  %2338 = vmatprep.subr.bf16.mxu1 %v3937_v0 }
 0x309   :  { %v2001_v2 = vmax.f32 %v1999_v41, %v2000_v63  ;;  %v3810_v63 = vld [vmem:[%s4874_s2 + $0x148] ss:$8 sps:$4 sm:$0xff]  }
 0x30a   :  { %v1994_v3 = vmax.f32 %v1992_v62, %v1993_v1  ;;  %v3618_v4 = vpop.f32.mrb[84].mxu1 }
 0x30b   :  { %v2002_v5 = vrot.slane %v2001_v2, 1  ;;  %v1704_v7 = vadd.f32 %v3618_v4, %v4460_v53  ;;  %v1695_v8 = vpop.f32.mrb[85].mxu1  ;;  %2339 = vmatpush1.bf16.msra.mxu1 %v3810_v63  ;;  %v3815_v63 = vld [vmem:[%s4874_s2 + $0x190] ss:$8 sps:$4 sm:$0xff]  }
 0x30c   :  { %v1995_v10 = vrot.slane %v1994_v3, 1  ;;  %v1696_v12 = vadd.f32 %v1695_v8, %v4460_v53  ;;  %v3619_v13 = vpop.f32.mrb[86].mxu1  ;;  %2340 = vmatprep.subr.bf16.mxu1 %v3937_v0  ;;  %3660 = vmatprep.subr.bf16.mxu0 %v3815_v63 }
 0x30d   :  { %v2003_v14 = vmax.f32 %v2001_v2, %v2002_v5  ;;  %v1707_v15 = vadd.f32 %v3619_v13, %v4460_v53  ;;  %v1698_v16 = vpop.f32.mrb[87].mxu1  ;;  %v1892_v19 = vmax.f32 %v1704_v7, 0.0  ;;  %3661 = vmatpush3.bf16.msra.mxu0 %v3815_v63 }
 0x30e   :  { %v1996_v17 = vmax.f32 %v1994_v3, %v1995_v10  ;;  %v1699_v18 = vadd.f32 %v1698_v16, %v4460_v53  ;;  %v1890_v22 = vmax.f32 %v1696_v12, 0.0  ;;  %v3811_v10 = vld [vmem:[%s4874_s2 + $0x158] ss:$8 sps:$4 sm:$0xff]  }
 0x30f   :  { %v1893_v20 = vmax.f32 %v1707_v15, 0.0  ;;  %2341 = vmatpush1.bf16.msra.mxu1 %v3811_v10 }
 0x310   :  { %v2208_v21 = vsel %vm2194_vm3, %v2003_v14, %v1996_v17  ;;  %v1891_v23 = vmax.f32 %v1699_v18, 0.0  ;;  %2342 = vmatprep.subr.bf16.mxu1 %v3937_v0 }
 0x311   :  { %v2011_v24 = vmax.f32 %v1892_v19, %v1893_v20 }
 0x312   :  { %v2004_v25 = vmax.f32 %v1890_v22, %v1891_v23  ;;  %v3812_v22 = vld [vmem:[%s4874_s2 + $0x168] ss:$8 sps:$4 sm:$0xff]  }
 0x313   :  { %v2012_v26 = vrot.slane %v2011_v24, 4  ;;  %2343 = vmatpush1.bf16.msra.mxu1 %v3812_v22 }
 0x314   :  { %v2005_v27 = vrot.slane %v2004_v25, 4  ;;  %2344 = vmatprep.subr.bf16.mxu1 %v3937_v0 }
 0x315   :  { %v2013_v28 = vmax.f32 %v2011_v24, %v2012_v26 }
 0x316   :  { %v2006_v29 = vmax.f32 %v2004_v25, %v2005_v27 }
 0x317   :  { %v2014_v30 = vrot.slane %v2013_v28, 2 }
 0x318   :  { %v2007_v32 = vrot.slane %v2006_v29, 2 }
 0x319   :  { %v2015_v33 = vmax.f32 %v2013_v28, %v2014_v30  ;;  %v3813_v30 = vld [vmem:[%s4874_s2 + $0x178] ss:$8 sps:$4 sm:$0xff]  }
 0x31a   :  { %v2008_v34 = vmax.f32 %v2006_v29, %v2007_v32  ;;  %v3622_v35 = vpop.f32.mrb[88].mxu1  ;;  %2345 = vmatpush1.bf16.msra.mxu1 %v3813_v30 }
 0x31b   :  { %v2016_v36 = vrot.slane %v2015_v33, 1  ;;  %v1720_v37 = vadd.f32 %v3622_v35, %v4460_v53  ;;  %v1711_v38 = vpop.f32.mrb[89].mxu1  ;;  %2346 = vmatprep.subr.bf16.mxu1 %v3937_v0 }
 0x31c   :  { %v2009_v40 = vrot.slane %v2008_v34, 1  ;;  %v1712_v42 = vadd.f32 %v1711_v38, %v4460_v53  ;;  %v3623_v43 = vpop.f32.mrb[90].mxu1 }
 0x31d   :  { %v1723_v44 = vadd.f32 %v3623_v43, %v4460_v53  ;;  %v1714_v45 = vpop.f32.mrb[91].mxu1  ;;  %v2017_v48 = vmax.f32 %v2015_v33, %v2016_v36  ;;  %v1896_v49 = vmax.f32 %v1720_v37, 0.0 }
 0x31e   :  { %v2010_v46 = vmax.f32 %v2008_v34, %v2009_v40  ;;  %v1715_v47 = vadd.f32 %v1714_v45, %v4460_v53  ;;  %v1894_v52 = vmax.f32 %v1712_v42, 0.0  ;;  %v3814_v34 = vld [vmem:[%s4874_s2 + $0x188] ss:$0 sps:$4 sm:$0xff]  }
 0x31f   :  { %v1897_v11 = vmax.f32 %v1723_v44, 0.0  ;;  %v2328_v37 = vsel %vm542_vm1, %v3814_v34, 0 }
 0x320   :  { %v2209_v51 = vsel %vm2196_vm4, %v2010_v46, %v2208_v21  ;;  %v1895_v54 = vmax.f32 %v1715_v47, 0.0  ;;  %2347 = vmatpush1.bf16.msra.mxu1 %v2328_v37 }
 0x321   :  { %v2025_v9 = vmax.f32 %v1896_v49, %v1897_v11  ;;  %v2210_v55 = vsel %vm2198_vm5, %v2017_v48, %v2209_v51 }
 0x322   :  { %v2018_v56 = vmax.f32 %v1894_v52, %v1895_v54 }
 0x323   :  { %v2026_v57 = vrot.slane %v2025_v9, 4 }
 0x324   :  { %v2019_v59 = vrot.slane %v2018_v56, 4 }
 0x325   :  { %v2027_v61 = vmax.f32 %v2025_v9, %v2026_v57 }
 0x326   :  { %v2020_v41 = vmax.f32 %v2018_v56, %v2019_v59 }
 0x327   :  { %v2028_v62 = vrot.slane %v2027_v61, 2 }
 0x328   :  { %v2021_v1 = vrot.slane %v2020_v41, 2 }
 0x329   :  { %v2029_v2 = vmax.f32 %v2027_v61, %v2028_v62 }
 0x32a   :  { %v2022_v3 = vmax.f32 %v2020_v41, %v2021_v1  ;;  %v3626_v4 = vpop.f32.mrb[92].mxu1 }
 0x32b   :  { %v2030_v5 = vrot.slane %v2029_v2, 1  ;;  %v1736_v7 = vadd.f32 %v3626_v4, %v4460_v53  ;;  %v1727_v8 = vpop.f32.mrb[93].mxu1 }
 0x32c   :  { %v2023_v12 = vrot.slane %v2022_v3, 1  ;;  %v1728_v13 = vadd.f32 %v1727_v8, %v4460_v53  ;;  %v3627_v14 = vpop.f32.mrb[94].mxu1 }
 0x32d   :  { %v1739_v15 = vadd.f32 %v3627_v14, %v4460_v53  ;;  %v1730_v16 = vpop.f32.mrb[95].mxu1  ;;  %v2031_v19 = vmax.f32 %v2029_v2, %v2030_v5  ;;  %v1900_v20 = vmax.f32 %v1736_v7, 0.0 }
 0x32e   :  { %v2024_v17 = vmax.f32 %v2022_v3, %v2023_v12  ;;  %v1731_v18 = vadd.f32 %v1730_v16, %v4460_v53  ;;  %v1898_v23 = vmax.f32 %v1728_v13, 0.0 }
 0x32f   :  { %v1901_v21 = vmax.f32 %v1739_v15, 0.0 }
 0x330   :  { %v1899_v24 = vmax.f32 %v1731_v18, 0.0  ;;  %v2211_v25 = vsel %vm2200_vm6, %v2024_v17, %v2210_v55 }
 0x331   :  { %v2039_v26 = vmax.f32 %v1900_v20, %v1901_v21  ;;  %v2212_v27 = vsel %vm2202_vm7, %v2031_v19, %v2211_v25 }
 0x332   :  { %v2032_v28 = vmax.f32 %v1898_v23, %v1899_v24 }
 0x333   :  { %v2040_v29 = vrot.slane %v2039_v26, 4 }
 0x334   :  { %v2033_v31 = vrot.slane %v2032_v28, 4 }
 0x335   :  { %v2041_v32 = vmax.f32 %v2039_v26, %v2040_v29 }
 0x336   :  { %v2034_v33 = vmax.f32 %v2032_v28, %v2033_v31 }
 0x337   :  { %v2042_v35 = vrot.slane %v2041_v32, 2 }
 0x338   :  { %v2035_v36 = vrot.slane %v2034_v33, 2 }
 0x339   :  { %v2043_v38 = vmax.f32 %v2041_v32, %v2042_v35 }
 0x33a   :  { %v2036_v39 = vmax.f32 %v2034_v33, %v2035_v36  ;;  %v3630_v40 = vpop.f32.mrb[96].mxu1 }
 0x33b   :  { %v1752_v42 = vadd.f32 %v3630_v40, %v4460_v53  ;;  %v1743_v43 = vpop.f32.mrb[97].mxu1  ;;  %v2044_v44 = vrot.slane %v2043_v38, 1 }
 0x33c   :  { %v2037_v45 = vrot.slane %v2036_v39, 1  ;;  %v1744_v46 = vadd.f32 %v1743_v43, %v4460_v53  ;;  %v3631_v47 = vpop.f32.mrb[98].mxu1 }
 0x33d   :  { %v1755_v48 = vadd.f32 %v3631_v47, %v4460_v53  ;;  %v1746_v49 = vpop.f32.mrb[99].mxu1  ;;  %v1904_v51 = vmax.f32 %v1752_v42, 0.0  ;;  %v2045_v54 = vmax.f32 %v2043_v38, %v2044_v44 }
 0x33e   :  { %v2038_v11 = vmax.f32 %v2036_v39, %v2037_v45  ;;  %v1747_v50 = vadd.f32 %v1746_v49, %v4460_v53  ;;  %v1902_v9 = vmax.f32 %v1744_v46, 0.0 }
 0x33f   :  { %v1905_v52 = vmax.f32 %v1755_v48, 0.0 }
 0x340   :  { %v1903_v55 = vmax.f32 %v1747_v50, 0.0  ;;  %v2213_v56 = vsel %vm2204_vm8, %v2038_v11, %v2212_v27 }
 0x341   :  { %v2053_v57 = vmax.f32 %v1904_v51, %v1905_v52  ;;  %v2214_v58 = vsel %vm2206_vm9, %v2045_v54, %v2213_v56 }
 0x342   :  { %v2046_v59 = vmax.f32 %v1902_v9, %v1903_v55  ;;  %v3683_v61 = vpack.i.bf16 %v2214_v58, %v4491_v60 }
 0x343   :  { %v2054_v41 = vrot.slane %v2053_v57, 4 }
 0x344   :  { %v2047_v62 = vrot.slane %v2046_v59, 4  ;;  %3684 = vrot.lane.b32.xlu0 %v3683_v61, %s3938_s15 }
 0x345   :  { %v2055_v1 = vmax.f32 %v2053_v57, %v2054_v41 }
 0x346   :  { %v2048_v2 = vmax.f32 %v2046_v59, %v2047_v62 }
 0x347   :  { %v2056_v3 = vrot.slane %v2055_v1, 2 }
 0x348   :  { %v2049_v4 = vrot.slane %v2048_v2, 2 }
 0x349   :  { %v2057_v5 = vmax.f32 %v2055_v1, %v2056_v3 }
 0x34a   :  { %v2050_v7 = vmax.f32 %v2048_v2, %v2049_v4  ;;  %v3634_v8 = vpop.f32.mrb[100].mxu1 }
 0x34b   :  { %v2058_v10 = vrot.slane %v2057_v5, 1  ;;  %v1768_v60 = vadd.f32 %v3634_v8, %v4460_v53  ;;  %v1759_v12 = vpop.f32.mrb[101].mxu1 }
 0x34c   :  { %v2051_v13 = vrot.slane %v2050_v7, 1  ;;  %v1760_v14 = vadd.f32 %v1759_v12, %v4460_v53  ;;  %v3635_v15 = vpop.f32.mrb[102].mxu1 }
 0x34d   :  { %v2059_v16 = vmax.f32 %v2057_v5, %v2058_v10  ;;  %v1771_v17 = vadd.f32 %v3635_v15, %v4460_v53  ;;  %v1762_v18 = vpop.f32.mrb[103].mxu1  ;;  %v1908_v21 = vmax.f32 %v1768_v60, 0.0 }
 0x34e   :  { %v2052_v19 = vmax.f32 %v2050_v7, %v2051_v13  ;;  %v1763_v20 = vadd.f32 %v1762_v18, %v4460_v53  ;;  %v1906_v24 = vmax.f32 %v1760_v14, 0.0 }
 0x34f   :  { %v1909_v22 = vmax.f32 %v1771_v17, 0.0 }
 0x350   :  { %v2215_v23 = vsel %vm2194_vm3, %v2059_v16, %v2052_v19  ;;  %v1907_v25 = vmax.f32 %v1763_v20, 0.0 }
 0x351   :  { %v2067_v26 = vmax.f32 %v1908_v21, %v1909_v22 }
 0x352   :  { %v2060_v27 = vmax.f32 %v1906_v24, %v1907_v25 }
 0x353   :  { %v2068_v28 = vrot.slane %v2067_v26, 4 }
 0x354   :  { %v2061_v29 = vrot.slane %v2060_v27, 4 }
 0x355   :  { %v2069_v30 = vmax.f32 %v2067_v26, %v2068_v28 }
 0x356   :  { %v2062_v31 = vmax.f32 %v2060_v27, %v2061_v29 }
 0x357   :  { %v2070_v32 = vrot.slane %v2069_v30, 2 }
 0x358   :  { %v2063_v33 = vrot.slane %v2062_v31, 2 }
 0x359   :  { %v2071_v34 = vmax.f32 %v2069_v30, %v2070_v32 }
 0x35a   :  { %v2064_v35 = vmax.f32 %v2062_v31, %v2063_v33  ;;  %v3638_v36 = vpop.f32.mrb[104].mxu1 }
 0x35b   :  { %v2072_v37 = vrot.slane %v2071_v34, 1  ;;  %v1784_v38 = vadd.f32 %v3638_v36, %v4460_v53  ;;  %v1775_v39 = vpop.f32.mrb[105].mxu1 }
 0x35c   :  { %v2065_v40 = vrot.slane %v2064_v35, 1  ;;  %v1776_v42 = vadd.f32 %v1775_v39, %v4460_v53  ;;  %v3639_v43 = vpop.f32.mrb[106].mxu1 }
 0x35d   :  { %v1787_v44 = vadd.f32 %v3639_v43, %v4460_v53  ;;  %v1778_v45 = vpop.f32.mrb[107].mxu1  ;;  %v2073_v48 = vmax.f32 %v2071_v34, %v2072_v37  ;;  %v1912_v49 = vmax.f32 %v1784_v38, 0.0 }
 0x35e   :  { %v2066_v46 = vmax.f32 %v2064_v35, %v2065_v40  ;;  %v1779_v47 = vadd.f32 %v1778_v45, %v4460_v53  ;;  %v1910_v51 = vmax.f32 %v1776_v42, 0.0 }
 0x35f   :  { %v1913_v11 = vmax.f32 %v1787_v44, 0.0 }
 0x360   :  { %v2216_v50 = vsel %vm2196_vm4, %v2066_v46, %v2215_v23  ;;  %v1911_v52 = vmax.f32 %v1779_v47, 0.0 }
 0x361   :  { %v2081_v54 = vmax.f32 %v1912_v49, %v1913_v11  ;;  %v2217_v9 = vsel %vm2198_vm5, %v2073_v48, %v2216_v50 }
 0x362   :  { %v2074_v55 = vmax.f32 %v1910_v51, %v1911_v52 }
 0x363   :  { %v2082_v56 = vrot.slane %v2081_v54, 4 }
 0x364   :  { %v2075_v57 = vrot.slane %v2074_v55, 4 }
 0x365   :  { %v2083_v58 = vmax.f32 %v2081_v54, %v2082_v56 }
 0x366   :  { %v2076_v59 = vmax.f32 %v2074_v55, %v2075_v57 }
 0x367   :  { %v2084_v61 = vrot.slane %v2083_v58, 2 }
 0x368   :  { %v2077_v41 = vrot.slane %v2076_v59, 2 }
 0x369   :  { %v2085_v62 = vmax.f32 %v2083_v58, %v2084_v61 }
 0x36a   :  { %v2078_v63 = vmax.f32 %v2076_v59, %v2077_v41  ;;  %v3642_v1 = vpop.f32.mrb[108].mxu1 }
 0x36b   :  { %v2086_v2 = vrot.slane %v2085_v62, 1  ;;  %v1800_v3 = vadd.f32 %v3642_v1, %v4460_v53  ;;  %v1791_v4 = vpop.f32.mrb[109].mxu1 }
 0x36c   :  { %v2079_v5 = vrot.slane %v2078_v63, 1  ;;  %v1792_v7 = vadd.f32 %v1791_v4, %v4460_v53  ;;  %v3643_v8 = vpop.f32.mrb[110].mxu1 }
 0x36d   :  { %v1803_v10 = vadd.f32 %v3643_v8, %v4460_v53  ;;  %v1794_v60 = vpop.f32.mrb[111].mxu1  ;;  %v2087_v14 = vmax.f32 %v2085_v62, %v2086_v2  ;;  %v1916_v15 = vmax.f32 %v1800_v3, 0.0 }
 0x36e   :  { %v2080_v12 = vmax.f32 %v2078_v63, %v2079_v5  ;;  %v1795_v13 = vadd.f32 %v1794_v60, %v4460_v53  ;;  %v1914_v17 = vmax.f32 %v1792_v7, 0.0 }
 0x36f   :  { %v1917_v16 = vmax.f32 %v1803_v10, 0.0 }
 0x370   :  { %v1915_v18 = vmax.f32 %v1795_v13, 0.0  ;;  %v2218_v19 = vsel %vm2200_vm6, %v2080_v12, %v2217_v9 }
 0x371   :  { %v2095_v20 = vmax.f32 %v1916_v15, %v1917_v16  ;;  %v2219_v21 = vsel %vm2202_vm7, %v2087_v14, %v2218_v19 }
 0x372   :  { %v2088_v22 = vmax.f32 %v1914_v17, %v1915_v18 }
 0x373   :  { %v2096_v23 = vrot.slane %v2095_v20, 4 }
 0x374   :  { %v2089_v24 = vrot.slane %v2088_v22, 4 }
 0x375   :  { %v2097_v25 = vmax.f32 %v2095_v20, %v2096_v23 }
 0x376   :  { %v2090_v26 = vmax.f32 %v2088_v22, %v2089_v24 }
 0x377   :  { %v2098_v27 = vrot.slane %v2097_v25, 2 }
 0x378   :  { %v2091_v28 = vrot.slane %v2090_v26, 2 }
 0x379   :  { %v2099_v29 = vmax.f32 %v2097_v25, %v2098_v27 }
 0x37a   :  { %v2092_v30 = vmax.f32 %v2090_v26, %v2091_v28  ;;  %v3646_v31 = vpop.f32.mrb[112].mxu1 }
 0x37b   :  { %v2100_v32 = vrot.slane %v2099_v29, 1  ;;  %v1816_v33 = vadd.f32 %v3646_v31, %v4460_v53  ;;  %v1807_v34 = vpop.f32.mrb[113].mxu1 }
 0x37c   :  { %v2093_v35 = vrot.slane %v2092_v30, 1  ;;  %v1808_v36 = vadd.f32 %v1807_v34, %v4460_v53  ;;  %v3647_v37 = vpop.f32.mrb[114].mxu1 }
 0x37d   :  { %v1819_v38 = vadd.f32 %v3647_v37, %v4460_v53  ;;  %v1810_v39 = vpop.f32.mrb[115].mxu1  ;;  %v2101_v43 = vmax.f32 %v2099_v29, %v2100_v32  ;;  %v1920_v44 = vmax.f32 %v1816_v33, 0.0 }
 0x37e   :  { %v2094_v40 = vmax.f32 %v2092_v30, %v2093_v35  ;;  %v1811_v42 = vadd.f32 %v1810_v39, %v4460_v53  ;;  %v1918_v46 = vmax.f32 %v1808_v36, 0.0 }
 0x37f   :  { %v1921_v45 = vmax.f32 %v1819_v38, 0.0 }
 0x380   :  { %v1919_v47 = vmax.f32 %v1811_v42, 0.0  ;;  %v2220_v48 = vsel %vm2204_vm8, %v2094_v40, %v2219_v21 }
 0x381   :  { %v2109_v49 = vmax.f32 %v1920_v44, %v1921_v45  ;;  %v4580_v11 = vsel %vm2206_vm9, %v2101_v43, %v2220_v48 }
 0x382   :  { %v2102_v50 = vmax.f32 %v1918_v46, %v1919_v47 }
 0x383   :  { %v2110_v51 = vrot.slane %v2109_v49, 4 }
 0x384   :  { %v2103_v52 = vrot.slane %v2102_v50, 4 }
 0x385   :  { %v2111_v54 = vmax.f32 %v2109_v49, %v2110_v51 }
 0x386   :  { %v2104_v9 = vmax.f32 %v2102_v50, %v2103_v52 }
 0x387   :  { %v2112_v55 = vrot.slane %v2111_v54, 2 }
 0x388   :  { %v2105_v56 = vrot.slane %v2104_v9, 2 }
 0x389   :  { %v2113_v57 = vmax.f32 %v2111_v54, %v2112_v55 }
 0x38a   :  { %v2106_v58 = vmax.f32 %v2104_v9, %v2105_v56  ;;  %v3650_v59 = vpop.f32.mrb[116].mxu1 }
 0x38b   :  { %v2114_v61 = vrot.slane %v2113_v57, 1  ;;  %v1832_v41 = vadd.f32 %v3650_v59, %v4460_v53  ;;  %v1823_v62 = vpop.f32.mrb[117].mxu1 }
 0x38c   :  { %v2107_v63 = vrot.slane %v2106_v58, 1  ;;  %v1824_v1 = vadd.f32 %v1823_v62, %v4460_v53  ;;  %v3651_v2 = vpop.f32.mrb[118].mxu1 }
 0x38d   :  { %v2115_v3 = vmax.f32 %v2113_v57, %v2114_v61  ;;  %v1835_v4 = vadd.f32 %v3651_v2, %v4460_v53  ;;  %v1826_v5 = vpop.f32.mrb[119].mxu1  ;;  %v1924_v10 = vmax.f32 %v1832_v41, 0.0 }
 0x38e   :  { %v2108_v7 = vmax.f32 %v2106_v58, %v2107_v63  ;;  %v1827_v8 = vadd.f32 %v1826_v5, %v4460_v53  ;;  %v1922_v13 = vmax.f32 %v1824_v1, 0.0 }
 0x38f   :  { %v1925_v60 = vmax.f32 %v1835_v4, 0.0 }
 0x390   :  { %v2222_v12 = vsel %vm2194_vm3, %v2115_v3, %v2108_v7  ;;  %v1923_v14 = vmax.f32 %v1827_v8, 0.0 }
 0x391   :  { %v2123_v15 = vmax.f32 %v1924_v10, %v1925_v60 }
 0x392   :  { %v2116_v16 = vmax.f32 %v1922_v13, %v1923_v14 }
 0x393   :  { %v2124_v17 = vrot.slane %v2123_v15, 4 }
 0x394   :  { %v2117_v18 = vrot.slane %v2116_v16, 4 }
 0x395   :  { %v2125_v19 = vmax.f32 %v2123_v15, %v2124_v17  ;;  %v2158_v17 = vld [vmem:[%s4873_s1] sm:$0xff] }
 0x396   :  { %v2118_v20 = vmax.f32 %v2116_v16, %v2117_v18 }
 0x397   :  { %v2126_v21 = vrot.slane %v2125_v19, 2 }
 0x398   :  { %v2119_v22 = vrot.slane %v2118_v20, 2 }
 0x399   :  { %v2127_v23 = vmax.f32 %v2125_v19, %v2126_v21 }
 0x39a   :  { %v2120_v24 = vmax.f32 %v2118_v20, %v2119_v22  ;;  %v3654_v25 = vpop.f32.mrb[120].mxu1 }
 0x39b   :  { %v2128_v26 = vrot.slane %v2127_v23, 1  ;;  %v1848_v27 = vadd.f32 %v3654_v25, %v4460_v53  ;;  %v1839_v28 = vpop.f32.mrb[121].mxu1 }
 0x39c   :  { %v2121_v29 = vrot.slane %v2120_v24, 1  ;;  %v1840_v30 = vadd.f32 %v1839_v28, %v4460_v53  ;;  %v3655_v31 = vpop.f32.mrb[122].mxu1 }
 0x39d   :  { %v1851_v32 = vadd.f32 %v3655_v31, %v4460_v53  ;;  %v1842_v33 = vpop.f32.mrb[123].mxu1  ;;  %v2129_v36 = vmax.f32 %v2127_v23, %v2128_v26  ;;  %v1928_v37 = vmax.f32 %v1848_v27, 0.0  ;;  %v3816_v27 = vld [vmem:[%s4874_s2 + $0x1a0] ss:$8 sps:$4 sm:$0xff]  }
 0x39e   :  { %v2122_v34 = vmax.f32 %v2120_v24, %v2121_v29  ;;  %v1843_v35 = vadd.f32 %v1842_v33, %v4460_v53  ;;  %v1926_v40 = vmax.f32 %v1840_v30, 0.0  ;;  %3662 = vmatprep.subr.bf16.mxu0 %v3816_v27  ;;  %v3818_v33 = vld [vmem:[%s4874_s2 + $0x1c0] ss:$8 sps:$4 sm:$0xff]  }
 0x39f   :  { %v1929_v38 = vmax.f32 %v1851_v32, 0.0  ;;  %3663 = vmatpush3.bf16.msra.mxu0 %v3816_v27  ;;  %v3817_v32 = vld [vmem:[%s4874_s2 + $0x1b0] ss:$8 sps:$4 sm:$0xff]  }
 0x3a0   :  { %v2223_v39 = vsel %vm2196_vm4, %v2122_v34, %v2222_v12  ;;  %v1927_v42 = vmax.f32 %v1843_v35, 0.0  ;;  %3664 = vmatprep.subr.bf16.mxu0 %v3817_v32  ;;  %v3847_v27 = vld [vmem:[%s4874_s2 + $0x290] ss:$8 sps:$4 sm:$0xff]  }
 0x3a1   :  { %v2137_v43 = vmax.f32 %v1928_v37, %v1929_v38  ;;  %v2224_v44 = vsel %vm2198_vm5, %v2129_v36, %v2223_v39  ;;  %v3819_v39 = vld [vmem:[%s4874_s2 + $0x1d0] ss:$8 sps:$4 sm:$0xff]  }
 0x3a2   :  { %v2130_v45 = vmax.f32 %v1926_v40, %v1927_v42  ;;  %v3820_v40 = vld [vmem:[%s4874_s2 + $0x1e0] ss:$8 sps:$4 sm:$0xff]   ;;  %v3821_v42 = vld [vmem:[%s4874_s2 + $0x1f0] ss:$8 sps:$4 sm:$0xff]  }
 0x3a3   :  { %v2138_v46 = vrot.slane %v2137_v43, 4  ;;  %3665 = vmatpush3.bf16.msra.mxu0 %v3817_v32  ;;  %v3853_v32 = vld [vmem:[%s4874_s2 + $0x2b0] ss:$8 sps:$4 sm:$0xff]  }
 0x3a4   :  { %v2131_v47 = vrot.slane %v2130_v45, 4  ;;  %3666 = vmatprep.subr.bf16.mxu0 %v3818_v33 }
 0x3a5   :  { %v2139_v48 = vmax.f32 %v2137_v43, %v2138_v46 }
 0x3a6   :  { %v2132_v49 = vmax.f32 %v2130_v45, %v2131_v47  ;;  %v2161_v45 = vld [vmem:[%s4873_s1 + $0x18] sm:$0xff] }
 0x3a7   :  { %v2140_v50 = vrot.slane %v2139_v48, 2  ;;  %3667 = vmatpush3.bf16.msra.mxu0 %v3818_v33  ;;  %v3858_v33 = vld [vmem:[%s4874_s2 + $0x2c4] ss:$8 sps:$4 sm:$0xff]  }
 0x3a8   :  { %v2133_v51 = vrot.slane %v2132_v49, 2  ;;  %3668 = vmatprep.subr.bf16.mxu0 %v3819_v39 }
 0x3a9   :  { %v2141_v52 = vmax.f32 %v2139_v48, %v2140_v50 }
 0x3aa   :  { %v2134_v54 = vmax.f32 %v2132_v49, %v2133_v51  ;;  %v3658_v9 = vpop.f32.mrb[124].mxu1 }
 0x3ab   :  { %v2142_v55 = vrot.slane %v2141_v52, 1  ;;  %v1864_v56 = vadd.f32 %v3658_v9, %v4460_v53  ;;  %v1855_v57 = vpop.f32.mrb[125].mxu1  ;;  %3669 = vmatpush3.bf16.msra.mxu0 %v3819_v39  ;;  %v3867_v39 = vld [vmem:[%s4874_s2 + $0x2f4] ss:$8 sps:$4 sm:$0xff]  }
 0x3ac   :  { %v2135_v58 = vrot.slane %v2134_v54, 1  ;;  %v1856_v59 = vadd.f32 %v1855_v57, %v4460_v53  ;;  %v3659_v61 = vpop.f32.mrb[126].mxu1  ;;  %3670 = vmatprep.subr.bf16.mxu0 %v3820_v40 }
 0x3ad   :  { %v1867_v41 = vadd.f32 %v3659_v61, %v4460_v53  ;;  %v1858_v62 = vpop.f32.mrb[127].mxu1  ;;  %v2143_v2 = vmax.f32 %v2141_v52, %v2142_v55  ;;  %v1932_v3 = vmax.f32 %v1864_v56, 0.0  ;;  %v2268_v52 = vsub.s32 3, %v4199_v6 }
 0x3ae   :  { %v2136_v63 = vmax.f32 %v2134_v54, %v2135_v58  ;;  %v1859_v1 = vadd.f32 %v1858_v62, %v4460_v53  ;;  %v1930_v5 = vmax.f32 %v1856_v59, 0.0  ;;  %v2159_v53 = vld [vmem:[%s4873_s1 + $0x8] sm:$0xff]  ;;  %v4647_v54 = vld [vmem:[%s4875_s3] sm:$0xff] }
 0x3af   :  { %v1933_v4 = vmax.f32 %v1867_v41, 0.0  ;;  %3671 = vmatpush3.bf16.msra.mxu0 %v3820_v40  ;;  %v2269_v9 = vrot.slane %v4647_v54, %v2268_v52  ;;  %v3865_v40 = vld [vmem:[%s4874_s2 + $0x2f0] ss:$8 sps:$4 sm:$0xff]  }
 0x3b0   :  { %v1931_v7 = vmax.f32 %v1859_v1, 0.0  ;;  %v2225_v8 = vsel %vm2200_vm6, %v2136_v63, %v2224_v44  ;;  %3672 = vmatprep.subr.bf16.mxu0 %v3821_v42  ;;  %v2160_v44 = vld [vmem:[%s4873_s1 + $0x10] sm:$0xff] }
 0x3b1   :  { %v2151_v10 = vmax.f32 %v1932_v3, %v1933_v4  ;;  %v2226_v60 = vsel %vm2202_vm7, %v2143_v2, %v2225_v8  ;;  %v3823_v1 = vld [vmem:[%s4874_s2 + $0x210] ss:$8 sps:$4 sm:$0xff]   ;;  %v3825_v2 = vld [vmem:[%s4874_s2 + $0x214] ss:$8 sps:$4 sm:$0xff]   ;;  %v3828_v3 = vld [vmem:[%s4874_s2 + $0x224] ss:$8 sps:$4 sm:$0xff]  }
 0x3b2   :  { %v2144_v12 = vmax.f32 %v1930_v5, %v1931_v7  ;;  %2612 = vmatprep.subr.bf16.mxu1 %v3825_v2  ;;  %v3826_v4 = vld [vmem:[%s4874_s2 + $0x220] ss:$8 sps:$4 sm:$0xff]   ;;  %v3831_v5 = vld [vmem:[%s4874_s2 + $0x234] ss:$8 sps:$4 sm:$0xff]   ;;  %v3829_v7 = vld [vmem:[%s4874_s2 + $0x230] ss:$8 sps:$4 sm:$0xff]  }
 0x3b3   :  { %v2152_v13 = vrot.slane %v2151_v10, 4  ;;  %3673 = vmatpush3.bf16.msra.mxu0 %v3821_v42  ;;  %v3834_v8 = vld [vmem:[%s4874_s2 + $0x244] ss:$8 sps:$4 sm:$0xff]   ;;  %v2403_v42 = vsub.s32 4, %v4199_v6 }
 0x3b4   :  { %v2145_v14 = vrot.slane %v2144_v12, 4  ;;  %v3882_v2 = vld [vmem:[%s4874_s2 + $0x344] ss:$8 sps:$4 sm:$0xff]  }
 0x3b5   :  { %v2153_v15 = vmax.f32 %v2151_v10, %v2152_v13  ;;  %v3832_v10 = vld [vmem:[%s4874_s2 + $0x240] ss:$8 sps:$4 sm:$0xff]   ;;  %v3840_v13 = vld [vmem:[%s4874_s2 + $0x264] ss:$8 sps:$4 sm:$0xff]  }
 0x3b6   :  { %v2146_v16 = vmax.f32 %v2144_v12, %v2145_v14  ;;  %v3685_v18 = vpop.permute.xlu0 %3684  ;;  %v3835_v12 = vld [vmem:[%s4874_s2 + $0x250] ss:$8 sps:$4 sm:$0xff]   ;;  %v3838_v14 = vld [vmem:[%s4874_s2 + $0x260] ss:$8 sps:$4 sm:$0xff]  }
 0x3b7   :  { %v2154_v19 = vrot.slane %v2153_v15, 2  ;;  %v3687_v20 = vunpack.i.h.bf16 %v3685_v18  ;;  %v3686_v21 = vunpack.i.l.bf16 %v3685_v18 }
 0x3b8   :  { %v2147_v22 = vrot.slane %v2146_v16, 2 }
 0x3b9   :  { %v2155_v23 = vmax.f32 %v2153_v15, %v2154_v19  ;;  %v2242_v24 = vsel %vm445_vm0, %v2159_v53, %v3687_v20  ;;  %v2241_v25 = vsel %vm445_vm0, %v2158_v17, %v3686_v21  ;;  %v2246_v26 = vpack.c.bf16 %v3687_v20, %v3686_v21 }
 0x3ba   :  { %v2148_v28 = vmax.f32 %v2146_v16, %v2147_v22  ;;  %v2245_v29 = vpack.c.bf16 %v2242_v24, %v2241_v25  ;;  %v3841_v24 = vld [vmem:[%s4874_s2 + $0x270] ss:$8 sps:$4 sm:$0xff]   ;;  %v3846_v25 = vld [vmem:[%s4874_s2 + $0x284] ss:$8 sps:$4 sm:$0xff]  }
 0x3bb   :  { %v2156_v30 = vrot.slane %v2155_v23, 1  ;;  %3338 = vmatprep.mubr.msk.bf16.mxu1 %vm445_vm0, %v2246_v26  ;;  %v3844_v26 = vld [vmem:[%s4874_s2 + $0x280] ss:$8 sps:$4 sm:$0xff]  }
 0x3bc   :  { %v2149_v31 = vrot.slane %v2148_v28, 1  ;;  %2363 = vmatmul.mubr.bf16.vlgmr.msra.gmra.mrb[128].mxu1 %v2245_v29  ;;  %v3852_v29 = vld [vmem:[%s4874_s2 + $0x2a4] ss:$8 sps:$4 sm:$0xff]  }
 0x3bd   :  { %v2157_v35 = vmax.f32 %v2155_v23, %v2156_v30  ;;  %2613 = vmatpush1.bf16.msra.mxu1 %v3823_v1  ;;  %v3843_v23 = vld [vmem:[%s4874_s2 + $0x274] ss:$8 sps:$4 sm:$0xff]   ;;  %v3850_v30 = vld [vmem:[%s4874_s2 + $0x2a0] ss:$8 sps:$4 sm:$0xff]   ;;  %v3877_v1 = vld [vmem:[%s4874_s2 + $0x330] ss:$8 sps:$4 sm:$0xff]  }
 0x3be   :  { %v2150_v34 = vmax.f32 %v2148_v28, %v2149_v31  ;;  %2614 = vmatprep.subr.bf16.mxu1 %v3828_v3  ;;  %v3849_v28 = vld [vmem:[%s4874_s2 + $0x294] ss:$8 sps:$4 sm:$0xff]   ;;  %v3880_v3 = vld [vmem:[%s4874_s2 + $0x340] ss:$8 sps:$4 sm:$0xff]  }
 0x3bf   :  { %v3855_v31 = vld [vmem:[%s4874_s2 + $0x2b4] ss:$8 sps:$4 sm:$0xff]  }
 0x3c0   :  { %v2227_v36 = vsel %vm2204_vm8, %v2150_v34, %v2226_v60  ;;  %v3837_v60 = vld [vmem:[%s4874_s2 + $0x254] ss:$8 sps:$4 sm:$0xff]   ;;  %v3856_v34 = vld [vmem:[%s4874_s2 + $0x2c0] ss:$8 sps:$4 sm:$0xff]  }
 0x3c1   :  { %v2228_v37 = vsel %vm2206_vm9, %v2157_v35, %v2227_v36  ;;  %2615 = vmatpush1.bf16.msra.mxu1 %v3826_v4  ;;  %v3861_v35 = vld [vmem:[%s4874_s2 + $0x2d4] ss:$8 sps:$4 sm:$0xff]   ;;  %v3859_v36 = vld [vmem:[%s4874_s2 + $0x2d0] ss:$8 sps:$4 sm:$0xff]  }
 0x3c2   :  { %v3688_v38 = vpack.i.bf16 %v2228_v37, %v4580_v11  ;;  %v3822_v11 = vld [vmem:[%s4874_s2 + $0x200] ss:$8 sps:$4 sm:$0xff]   ;;  %2616 = vmatprep.subr.bf16.mxu1 %v3831_v5  ;;  %v3864_v37 = vld [vmem:[%s4874_s2 + $0x2e4] ss:$8 sps:$4 sm:$0xff]   ;;  %v3885_v4 = vld [vmem:[%s4874_s2 + $0x354] ss:$8 sps:$4 sm:$0xff]  }
 0x3c3   :  { %3674 = vmatprep.subr.bf16.mxu0 %v3822_v11  ;;  %v3883_v5 = vld [vmem:[%s4874_s2 + $0x350] ss:$8 sps:$4 sm:$0xff]  }
 0x3c4   :  { %3689 = vrot.lane.b32.xlu0 %v3688_v38, %s3938_s15  ;;  %3675 = vmatpush3.bf16.msra.mxu0 %v3822_v11  ;;  %v3862_v38 = vld [vmem:[%s4874_s2 + $0x2e0] ss:$8 sps:$4 sm:$0xff]   ;;  %v2404_v11 = vrot.slane %v4647_v54, %v2403_v42 }
 0x3c5   :  { %2617 = vmatpush1.bf16.msra.mxu1 %v3829_v7  ;;  %2919 = vmatprep.subr.bf16.mxu0 %v3849_v28  ;;  %v3888_v7 = vld [vmem:[%s4874_s2 + $0x364] ss:$8 sps:$4 sm:$0xff]  }
 0x3c6   :  { %2618 = vmatprep.subr.bf16.mxu1 %v3834_v8  ;;  %v3886_v8 = vld [vmem:[%s4874_s2 + $0x360] ss:$8 sps:$4 sm:$0xff]  }
 0x3c9   :  { %2619 = vmatpush1.bf16.msra.mxu1 %v3832_v10  ;;  %v3891_v10 = vld [vmem:[%s4874_s2 + $0x374] ss:$8 sps:$4 sm:$0xff]  }
 0x3ca   :  { %2620 = vmatprep.subr.bf16.mxu1 %v3837_v60  ;;  %v3889_v60 = vld [vmem:[%s4874_s2 + $0x370] ss:$8 sps:$4 sm:$0xff]  }
 0x3cd   :  { %2621 = vmatpush1.bf16.msra.mxu1 %v3835_v12  ;;  %v3892_v12 = vld [vmem:[%s4874_s2 + $0x380] ss:$8 sps:$4 sm:$0xff]  }
 0x3ce   :  { %2622 = vmatprep.subr.bf16.mxu1 %v3840_v13  ;;  %v3894_v13 = vld [vmem:[%s4874_s2 + $0x384] ss:$8 sps:$4 sm:$0xff]  }
 0x3d1   :  { %2623 = vmatpush1.bf16.msra.mxu1 %v3838_v14  ;;  %v3895_v14 = vld [vmem:[%s4874_s2 + $0x410] ss:$8 sps:$4 sm:$0xff]  }
 0x3d2   :  { %2624 = vmatprep.subr.bf16.mxu1 %v3843_v23  ;;  %v3905_v23 = vld [vmem:[%s4874_s2 + $0x460] ss:$8 sps:$4 sm:$0xff]  }
 0x3d5   :  { %2625 = vmatpush1.bf16.msra.mxu1 %v3841_v24  ;;  %v3906_v24 = vld [vmem:[%s4874_s2 + $0x3e0] ss:$8 sps:$4 sm:$0xff]  }
 0x3d6   :  { %2626 = vmatprep.subr.bf16.mxu1 %v3846_v25  ;;  %v2526_v25 = vsub.s32 5, %v4199_v6 }
 0x3d9   :  { %2627 = vmatpush1.bf16.msra.mxu1 %v3844_v26  ;;  %v4837_v26 = vld [vmem:[%s4875_s3 + $0x8] sm:$0xff] }
 0x3da   :  { %3494 = vmatprep.subr.bf16.mxu1 %v3895_v14  ;;  %v2531_v28 = vrot.slane %v4837_v26, %v2526_v25 }
 0x436   :  { %v3690_v43 = vpop.permute.xlu0 %3689 }
 0x437   :  { %v3692_v46 = vunpack.i.h.bf16 %v3690_v43  ;;  %v3691_v47 = vunpack.i.l.bf16 %v3690_v43 }
 0x439   :  { %v2248_v48 = vpack.c.bf16 %v3692_v46, %v3691_v47  ;;  %v2243_v49 = vsel %vm445_vm0, %v2160_v44, %v3691_v47  ;;  %v2244_v50 = vsel %vm445_vm0, %v2161_v45, %v3692_v46 }
 0x43a   :  { %v2247_v51 = vpack.c.bf16 %v2244_v50, %v2243_v49 }
 0x43b   :  { %3339 = vmatprep.mubr.msk.bf16.mxu1 %vm445_vm0, %v2248_v48 }
 0x43c   :  { %2371 = vmatmul.mubr.bf16.gmra.mrb[132].mxu1 %v2247_v51 }
 0x43d   :  { %2644 = vmatprep.mubr.bf16.mxu1 %v3937_v0 }
 0x48f   :  { %v2364_v55 = vpop.f32.mrb[128].mxu1 }
 0x490   :  { %v2365_v56 = vadd.f32 %v2364_v55, %v2269_v9  ;;  %v2366_v57 = vpop.f32.mrb[129].mxu1 }
 0x491   :  { %v2367_v58 = vpop.f32.mrb[130].mxu1 }
 0x492   :  { %v2368_v59 = vadd.f32 %v2367_v58, %v2269_v9  ;;  %v2369_v61 = vpop.f32.mrb[131].mxu1  ;;  %v2379_v41 = vmax.f32 %v2365_v56, 0.0  ;;  %v3870_v58 = vld [vmem:[%s4874_s2 + $0x304] ss:$8 sps:$4 sm:$0xff]  }
 0x493   :  { %v3873_v61 = vld [vmem:[%s4874_s2 + $0x314] ss:$8 sps:$4 sm:$0xff]  }
 0x494   :  { %v2380_v62 = vmax.f32 %v2368_v59, 0.0  ;;  %v3868_v59 = vld [vmem:[%s4874_s2 + $0x300] ss:$8 sps:$4 sm:$0xff]  }
 0x496   :  { %v2383_v63 = vpack.c.bf16 %v2380_v62, %v2379_v41  ;;  %v3871_v41 = vld [vmem:[%s4874_s2 + $0x310] ss:$8 sps:$4 sm:$0xff]   ;;  %v3874_v62 = vld [vmem:[%s4874_s2 + $0x320] ss:$8 sps:$4 sm:$0xff]  }
 0x498   :  { %3676 = vmatprep.mubr.bf16.mxu0 %v2383_v63  ;;  %v3879_v63 = vld [vmem:[%s4874_s2 + $0x334] ss:$8 sps:$4 sm:$0xff]  }
 0x50f   :  { %v2372_v15 = vpop.f32.mrb[132].mxu1 }
 0x510   :  { %v2373_v16 = vadd.f32 %v2372_v15, %v2269_v9  ;;  %v2374_v17 = vpop.f32.mrb[133].mxu1  ;;  %v3896_v15 = vld [vmem:[%s4874_s2 + $0x390] ss:$8 sps:$4 sm:$0xff]  }
 0x511   :  { %v2375_v53 = vpop.f32.mrb[134].mxu1  ;;  %v3898_v17 = vld [vmem:[%s4874_s2 + $0x3a0] ss:$8 sps:$4 sm:$0xff]  }
 0x512   :  { %v2376_v18 = vadd.f32 %v2375_v53, %v2269_v9  ;;  %v2377_v19 = vpop.f32.mrb[135].mxu1  ;;  %v2381_v20 = vmax.f32 %v2373_v16, 0.0  ;;  %v3897_v16 = vld [vmem:[%s4874_s2 + $0x420] ss:$8 sps:$4 sm:$0xff]   ;;  %v3899_v53 = vld [vmem:[%s4874_s2 + $0x430] ss:$8 sps:$4 sm:$0xff]  }
 0x513   :  { %v3901_v19 = vld [vmem:[%s4874_s2 + $0x440] ss:$8 sps:$4 sm:$0xff]  }
 0x514   :  { %v2382_v21 = vmax.f32 %v2376_v18, 0.0  ;;  %v3900_v18 = vld [vmem:[%s4874_s2 + $0x3b0] ss:$8 sps:$4 sm:$0xff]  }
 0x516   :  { %v2384_v22 = vpack.c.bf16 %v2382_v21, %v2381_v20  ;;  %v3902_v20 = vld [vmem:[%s4874_s2 + $0x3c0] ss:$8 sps:$4 sm:$0xff]   ;;  %v3903_v21 = vld [vmem:[%s4874_s2 + $0x450] ss:$8 sps:$4 sm:$0xff]  }
 0x518   :  { %3677 = vmatmul.mubr.bf16.vlgmr.msra.gmra.mrb[128].mxu0 %v2384_v22  ;;  %v3904_v22 = vld [vmem:[%s4874_s2 + $0x3d0] ss:$8 sps:$4 sm:$0xff]  }
 0x519   :  { %2920 = vmatpush1.bf16.msra.mxu0 %v3847_v27  ;;  %v2527_v27 = vrot.slane %v4647_v54, %v2526_v25 }
 0x51a   :  { %2921 = vmatprep.subr.bf16.mxu0 %v3852_v29 }
 0x51d   :  { %2922 = vmatpush1.bf16.msra.mxu0 %v3850_v30 }
 0x51e   :  { %2923 = vmatprep.subr.bf16.mxu0 %v3855_v31 }
 0x521   :  { %2924 = vmatpush1.bf16.msra.mxu0 %v3853_v32 }
 0x522   :  { %2925 = vmatprep.subr.bf16.mxu0 %v3858_v33 }
 0x525   :  { %2926 = vmatpush1.bf16.msra.mxu0 %v3856_v34 }
 0x526   :  { %2927 = vmatprep.subr.bf16.mxu0 %v3861_v35 }
 0x529   :  { %2928 = vmatpush1.bf16.msra.mxu0 %v3859_v36 }
 0x52a   :  { %2929 = vmatprep.subr.bf16.mxu0 %v3864_v37 }
 0x52d   :  { %2930 = vmatpush1.bf16.msra.mxu0 %v3862_v38 }
 0x52e   :  { %2931 = vmatprep.subr.bf16.mxu0 %v3867_v39 }
 0x531   :  { %2932 = vmatpush1.bf16.msra.mxu0 %v3865_v40 }
 0x532   :  { %2933 = vmatprep.subr.bf16.mxu0 %v3870_v58 }
 0x535   :  { %2934 = vmatpush1.bf16.msra.mxu0 %v3868_v59 }
 0x536   :  { %2935 = vmatprep.subr.bf16.mxu0 %v3873_v61 }
 0x539   :  { %2936 = vmatpush1.bf16.msra.mxu0 %v3871_v41 }
 0x5eb   :  { %v3678_v43 = vpop.f32.mrb[128].mxu0 }
 0x5ec   :  { %v2496_v44 = vadd.f32 %v3678_v43, %v2404_v11  ;;  %v2487_v45 = vpop.f32.mrb[129].mxu0 }
 0x5ed   :  { %v2488_v46 = vadd.f32 %v2487_v45, %v2404_v11  ;;  %v3679_v47 = vpop.f32.mrb[130].mxu0 }
 0x5ee   :  { %v2499_v48 = vadd.f32 %v3679_v47, %v2404_v11  ;;  %v2490_v49 = vpop.f32.mrb[131].mxu0  ;;  %v2504_v51 = vmax.f32 %v2496_v44, 0.0 }
 0x5ef   :  { %v2491_v50 = vadd.f32 %v2490_v49, %v2404_v11  ;;  %v2502_v9 = vmax.f32 %v2488_v46, 0.0 }
 0x5f0   :  { %v2505_v52 = vmax.f32 %v2499_v48, 0.0 }
 0x5f1   :  { %v2503_v55 = vmax.f32 %v2491_v50, 0.0 }
 0x5f2   :  { %v2507_v56 = vpack.c.bf16 %v2505_v52, %v2504_v51 }
 0x5f3   :  { %v2506_v57 = vpack.c.bf16 %v2503_v55, %v2502_v9 }
 0x5f5   :  { %2645 = vmatmul.mubr.bf16.vlgmr.msra.gmra.mrb[136].mxu1 %v2506_v57 }
 0x5f6   :  { %2654 = vmatprep.mubr.bf16.mxu1 %v3937_v0  ;;  %v3876_v0 = vld [vmem:[%s4874_s2 + $0x324] ss:$8 sps:$4 sm:$0xff]   ;;  %3495 = vmatpush3.bf16.msra.mxu1 %v3896_v15 }
 0x5f7   :  { %2937 = vmatprep.subr.bf16.mxu0 %v3876_v0  ;;  %3496 = vmatprep.subr.bf16.mxu1 %v3897_v16 }
 0x5f8   :  { %2938 = vmatpush1.bf16.msra.mxu0 %v3874_v62 }
 0x5f9   :  { %2939 = vmatprep.subr.bf16.mxu0 %v3879_v63 }
 0x5fa   :  { %3497 = vmatpush3.bf16.msra.mxu1 %v3898_v17 }
 0x5fb   :  { %3498 = vmatprep.subr.bf16.mxu1 %v3899_v53 }
 0x5fc   :  { %2940 = vmatpush1.bf16.msra.mxu0 %v3877_v1 }
 0x5fd   :  { %2655 = vmatmul.mubr.bf16.gmra.mrb[140].mxu1 %v2507_v56  ;;  %2941 = vmatprep.subr.bf16.mxu0 %v3882_v2 }
 0x5fe   :  { %3499 = vmatpush3.bf16.msra.mxu1 %v3900_v18 }
 0x5ff   :  { %3500 = vmatprep.subr.bf16.mxu1 %v3901_v19 }
 0x600   :  { %2942 = vmatpush1.bf16.msra.mxu0 %v3880_v3 }
 0x601   :  { %2943 = vmatprep.subr.bf16.mxu0 %v3885_v4 }
 0x602   :  { %3501 = vmatpush3.bf16.msra.mxu1 %v3902_v20 }
 0x603   :  { %3502 = vmatprep.subr.bf16.mxu1 %v3903_v21 }
 0x604   :  { %2944 = vmatpush1.bf16.msra.mxu0 %v3883_v5 }
 0x605   :  { %2945 = vmatprep.subr.bf16.mxu0 %v3888_v7 }
 0x606   :  { %3503 = vmatpush3.bf16.msra.mxu1 %v3904_v22 }
 0x607   :  { %3504 = vmatprep.subr.bf16.mxu1 %v3905_v23 }
 0x608   :  { %2946 = vmatpush1.bf16.msra.mxu0 %v3886_v8 }
 0x609   :  { %2947 = vmatprep.subr.bf16.mxu0 %v3891_v10 }
 0x60a   :  { %3505 = vmatpush3.bf16.msra.mxu1 %v3906_v24 }
 0x60c   :  { %2948 = vmatpush1.bf16.msra.mxu0 %v3889_v60 }
 0x60d   :  { %2949 = vmatprep.subr.bf16.mxu0 %v3894_v13 }
 0x610   :  { %2950 = vmatpush1.bf16.msra.mxu0 %v3892_v12 }
 0x6c8   :  { %v2646_v29 = vpop.f32.mrb[136].mxu1 }
 0x6c9   :  { %v2647_v30 = vadd.f32 %v2646_v29, %v2527_v27  ;;  %v2648_v31 = vpop.f32.mrb[137].mxu1 }
 0x6ca   :  { %v2649_v32 = vadd.f32 %v2648_v31, %v2531_v28  ;;  %v2650_v33 = vpop.f32.mrb[138].mxu1 }
 0x6cb   :  { %v2651_v34 = vadd.f32 %v2650_v33, %v2527_v27  ;;  %v2652_v35 = vpop.f32.mrb[139].mxu1  ;;  %v2665_v37 = vmax.f32 %v2647_v30, 0.0  ;;  %v3908_v33 = vld [vmem:[%s4874_s2 + $0x3f0] ss:$8 sps:$4 sm:$0xff]  }
 0x6cc   :  { %v2653_v36 = vadd.f32 %v2652_v35, %v2531_v28  ;;  %v2666_v39 = vmax.f32 %v2649_v32, 0.0  ;;  %v3907_v32 = vld [vmem:[%s4874_s2 + $0x470] ss:$8 sps:$4 sm:$0xff]   ;;  %v3910_v35 = vld [vmem:[%s4874_s2 + $0x400] ss:$8 sps:$4 sm:$0xff]  }
 0x6cd   :  { %v2667_v38 = vmax.f32 %v2651_v34, 0.0  ;;  %3506 = vmatprep.subr.bf16.mxu1 %v3907_v32  ;;  %v3909_v34 = vld [vmem:[%s4874_s2 + $0x480] ss:$8 sps:$4 sm:$0xff]   ;;  %s3939_s2 = smov [#allocation2]  }
 0x6ce   :  { %v2668_v40 = vmax.f32 %v2653_v36, 0.0  ;;  %3507 = vmatpush3.bf16.msra.mxu1 %v3908_v33  ;;  %v2739_v36 = vsub.s32 6, %v4199_v6  ;;  %s3144_s5 = sshll.u32 %s3939_s2, 4  ;;  %s3145_s5 = int_to_ptr.vmem [resolvable:$true] %s3144_s5 }
 0x6cf   :  { %v2673_v42 = vmax.f32 %v2665_v37, %v2667_v38  ;;  %3508 = vmatprep.subr.bf16.mxu1 %v3909_v34  ;;  %s3913_s6 = scalar_lea.vmem %s3145_s5, 32  ;;  %p3918_p1 = scmp.lt.s32.totalorder %s3145_s5, %s3145_s5 }
 0x6d0   :  { %v2680_v11 = vmax.f32 %v2666_v39, %v2668_v40  ;;  %v2656_v43 = vpop.f32.mrb[140].mxu1  ;;  %v2740_v37 = vrot.slane %v4647_v54, %v2739_v36  ;;  %v2744_v38 = vrot.slane %v4837_v26, %v2739_v36  ;;  %p3914_p0 = scmp.ne.s32.totalorder %s3145_s5, %s3913_s6  ;;  %p3919_p2 = scmp.lt.s32.totalorder %s3913_s6, %s3913_s6 }
 0x6d1   :  { %v2674_v44 = vrot.slane %v2673_v42, 4  ;;  %v2657_v45 = vadd.f32 %v2656_v43, %v2527_v27  ;;  %v2658_v46 = vpop.f32.mrb[141].mxu1 }
 0x6d2   :  { %v2681_v47 = vrot.slane %v2680_v11, 4  ;;  %v2659_v48 = vadd.f32 %v2658_v46, %v2531_v28  ;;  %v2660_v49 = vpop.f32.mrb[142].mxu1  ;;  %3509 = vmatpush3.bf16.msra.mxu1 %v3910_v35  ;;  %p3920_p3 = por %p3919_p2, %p3918_p1 }
 0x6d3   :  { %v2675_v50 = vmax.f32 %v2673_v42, %v2674_v44  ;;  %v2661_v51 = vadd.f32 %v2660_v49, %v2527_v27  ;;  %v2662_v52 = vpop.f32.mrb[143].mxu1  ;;  %v2669_v57 = vmax.f32 %v2657_v45, 0.0  ;;  %v2998_v49 = vsub.s32 7, %v4199_v6 }
 0x6d4   :  { %v2682_v9 = vmax.f32 %v2680_v11, %v2681_v47  ;;  %v2663_v55 = vadd.f32 %v2662_v52, %v2531_v28  ;;  %v2670_v61 = vmax.f32 %v2659_v48, 0.0  ;;  %p3921_p4 = pnand %p3920_p3, %p3914_p0 }
 0x6d5   :  { %v2676_v56 = vrot.slane %v2675_v50, 2  ;;  %v2671_v58 = vmax.f32 %v2661_v51, 0.0  ;;  %v2999_v51 = vrot.slane %v4647_v54, %v2998_v49 }
 0x6d6   :  { %v2683_v59 = vrot.slane %v2682_v9, 2  ;;  %v2672_v41 = vmax.f32 %v2663_v55, 0.0 }
 0x6d7   :  { %v2677_v0 = vmax.f32 %v2675_v50, %v2676_v56  ;;  %v2687_v62 = vmax.f32 %v2669_v57, %v2671_v58 }
 0x6d8   :  { %v2684_v63 = vmax.f32 %v2682_v9, %v2683_v59  ;;  %v2694_v1 = vmax.f32 %v2670_v61, %v2672_v41 }
 0x6d9   :  { %v2688_v2 = vrot.slane %v2687_v62, 4  ;;  %v2678_v4 = vrot.slane %v2677_v0, 1 }
 0x6da   :  { %v2695_v3 = vrot.slane %v2694_v1, 4  ;;  %v2685_v7 = vrot.slane %v2684_v63, 1 }
 0x6db   :  { %v2689_v5 = vmax.f32 %v2687_v62, %v2688_v2  ;;  %v2679_v12 = vmax.f32 %v2677_v0, %v2678_v4 }
 0x6dc   :  { %v2696_v8 = vmax.f32 %v2694_v1, %v2695_v3  ;;  %v2686_v14 = vmax.f32 %v2684_v63, %v2685_v7 }
 0x6dd   :  { %v2690_v10 = vrot.slane %v2689_v5, 2  ;;  %v2701_v53 = vpack.c.bf16 %v2679_v12, %v2679_v12 }
 0x6de   :  { %v2697_v60 = vrot.slane %v2696_v8, 2  ;;  %v2702_v20 = vpack.c.bf16 %v2686_v14, %v2686_v14 }
 0x6df   :  { %v2691_v13 = vmax.f32 %v2689_v5, %v2690_v10  ;;  %v2749_v23 = vunpack.c.l.b16 %v2701_v53 }
 0x6e0   :  { %v2698_v15 = vmax.f32 %v2696_v8, %v2697_v60  ;;  %v2750_v25 = vunpack.c.l.b16 %v2702_v20 }
 0x6e1   :  { %v2692_v16 = vrot.slane %v2691_v13, 1 }
 0x6e2   :  { %v2699_v17 = vrot.slane %v2698_v15, 1 }
 0x6e3   :  { %v2693_v18 = vmax.f32 %v2691_v13, %v2692_v16 }
 0x6e4   :  { %v2700_v19 = vmax.f32 %v2698_v15, %v2699_v17 }
 0x6e5   :  { %v2703_v21 = vpack.c.bf16 %v2693_v18, %v2693_v18 }
 0x6e6   :  { %v2704_v22 = vpack.c.bf16 %v2700_v19, %v2700_v19 }
 0x6e7   :  { %v2751_v24 = vunpack.c.l.b16 %v2703_v21 }
 0x6e8   :  { %v2752_v27 = vunpack.c.l.b16 %v2704_v22 }
 0x6e9   :  { %v2753_v28 = vsel %vm2194_vm3, %v2751_v24, %v2749_v23 }
 0x6ea   :  { %v2754_v29 = vsel %vm2194_vm3, %v2752_v27, %v2750_v25  ;;  %v2755_v31 = vpack.c.b16 %v2753_v28, %v2753_v28 }
 0x6eb   :  { %v2756_v30 = vpack.c.b16 %v2754_v29, %v2754_v29 }
 0x6ed   :  { %2951 = vmatprep.mubr.bf16.mxu0 %v2756_v30 }
 0x6ee   :  { %2952 = vmatmul.mubr.bf16.vlgmr.msra.gmra.mrb[132].mxu0 %v2755_v31 }
 0x7c1   :  { %v2953_v39 = vpop.f32.mrb[132].mxu0 }
 0x7c2   :  { %v2954_v40 = vadd.f32 %v2953_v39, %v2740_v37  ;;  %v2955_v42 = vpop.f32.mrb[133].mxu0 }
 0x7c3   :  { %v2956_v11 = vadd.f32 %v2955_v42, %v2744_v38  ;;  %v2957_v43 = vpop.f32.mrb[134].mxu0 }
 0x7c4   :  { %v2960_v44 = vmax.f32 %v2954_v40, 0.0  ;;  %v2958_v45 = vpop.f32.mrb[135].mxu0 }
 0x7c5   :  { %v2961_v46 = vmax.f32 %v2956_v11, 0.0 }
 0x7c6   :  { %v2962_v48 = vpack.c.bf16 %v2960_v44, %v2960_v44 }
 0x7c7   :  { %v2963_v47 = vpack.c.bf16 %v2961_v46, %v2961_v46 }
 0x7c9   :  { %3128 = vmatprep.mubr.bf16.mxu1 %v2963_v47 }
 0x7ca   :  { %3129 = vmatmul.mubr.bf16.vlgmr.msra.gmra.mrb[144].mxu1 %v2962_v48 }
 0x89d   :  { %v3510_v50 = vpop.f32.mrb[144].mxu1 }
 0x89e   :  { %v3511_v52 = vpop.f32.mrb[145].mxu1 }
 0x89f   :  { %v3512_v9 = vadd.f32 %v3511_v52, %v3510_v50  ;;  %v3513_v26 = vpop.f32.mrb[146].mxu1 }
 0x8a0   :  { %v3514_v55 = vpop.f32.mrb[147].mxu1 }
 0x8a1   :  { %v3131_v56 = vadd.f32 %v3512_v9, %v2999_v51 }
 0x8a3   :  { %v3136_v57 = vmax.f32 %v3131_v56, 0.0 }
 0x8a5   :  { %3137 = vst [vmem:[#allocation2] sm:$0x3] %v3136_v57 }
 0x8a6   :  { %3924 = shalt.err (!%p3921_p4)
}
 0x8a7   :  { %s3925_s9 = scalar_lea.hbm %s4876_s4, 32 }
 0x8a8   :  { %p3926_p5 = scmp.ne.s32.totalorder %s4876_s4, %s3925_s9  ;;  %p3929_p6 = scmp.lt.u32.totalorder %s3925_s9, %s4876_s4 }
 0x8aa   :  { %p3931_p7 = pnand %p3929_p6, %p3926_p5 }
 0x8ac   :  { %3934 = shalt.err (!%p3931_p7)
}
 0x8ad   :  { %3147 = dma.vmem_to_hbm [thread:$0]  %s3145_s5, 32, %s4876_s4, [#allocation3]  }
 0x8ae   :  { %3935 = dma.done.wait [#allocation3], 32  }
 0x8af   :  { %3936 = vsyncadd [#allocation3], 4294967264 }
 0x8b0   :  { %3151 = vsyncpa [#allocation3], 1 }

</bundles_post_ra>
